<compile_context>
chip_gen: v7x
topology: tpu7x:2x2x1
jax: 0.10.0
libtpu: 0.0.40
codegen_flags: <defaults>
</compile_context>

<pallas_src>
import functools
import math

import jax
import jax.numpy as jnp
from jax.experimental import pallas as pl
from jax.experimental.pallas import tpu as pltpu

BN_EPS = 1e-5
BN_SCALE = 1.0 / math.sqrt(1.0 + BN_EPS)
_I32_MIN = -2147483648
_I32_MAX = 2147483647


# ----------------------------------------------------------------------------
# EdgeConv body (traced inline inside the fused backbone kernel).
# ----------------------------------------------------------------------------
def _edge_conv(X, K, wx, wn, b1, extras):
    """X: [N, F] f32; wx/wn: [F, C1] bf16; b1: [1, C1] f32;
    extras: tuple of (w bf16 [Ci, Co], b f32 [1, Co]).  Returns [N, Cout] f32."""
    N, _ = X.shape

    # ---- pairwise "distance", f32 for faithful neighbor ordering ----
    #   d_ij = ||x_j||^2 - 2 x_i.x_j    (row-constant ||x_i||^2 dropped; it
    #   does not change the per-row ordering used by torch.sort(dim=1)).
    XX = X * X
    sq_cols = jax.lax.dot_general(jnp.ones_like(X), XX, (((1,), (1,)), ((), ())),
                                  preferred_element_type=jnp.float32)   # [N, N]
    gram = jax.lax.dot_general(X, X, (((1,), (1,)), ((), ())),
                               preferred_element_type=jnp.float32)      # [N, N]
    dist = sq_cols - 2.0 * gram

    # ---- order-preserving int32 key, column index packed into low bits ----
    # One XLU min per argmin; exactly one minimum per row even under ties.
    i32 = pltpu.bitcast(dist, jnp.int32)
    key = jnp.where(i32 < 0,
                    jnp.bitwise_xor(jnp.invert(i32), jnp.int32(_I32_MIN)),
                    i32)
    nbits = max(1, (N - 1).bit_length())
    iota = jax.lax.broadcasted_iota(jnp.int32, (N, N), 1)
    key = jnp.bitwise_or(jnp.bitwise_and(key, jnp.int32(~((1 << nbits) - 1))),
                         iota)

    def argmin_onehot(k):
        return k == jnp.min(k, axis=1, keepdims=True)       # bool [N, N]

    # Exclude the closest point (self), like sorted_indices[:, 1:K+1].
    oh = argmin_onehot(key)
    key = jnp.where(oh, jnp.int32(_I32_MAX), key)

    # ---- loop-invariant MLP pieces (reassociated edge features) ----
    #   relu(x@wx + (nb - x)@wn + b) == relu(h0 + oh @ (x@wn)),
    #   with h0 = x@wx + b - x@wn and nb = oh @ x.
    Xb = X.astype(jnp.bfloat16)
    Xn = jnp.dot(Xb, wn, preferred_element_type=jnp.float32)            # [N, C1]
    h0 = jnp.dot(Xb, wx, preferred_element_type=jnp.float32) + b1 - Xn  # [N, C1]
    Xn_b = Xn.astype(jnp.bfloat16)
    out_c = extras[-1][0].shape[1] if extras else wx.shape[1]

    def step(key, acc):
        oh = argmin_onehot(key)                              # k-th neighbor
        key = jnp.where(oh, jnp.int32(_I32_MAX), key)
        ohb = jnp.where(oh, 1.0, 0.0).astype(jnp.bfloat16)
        h = jnp.maximum(
            h0 + jnp.dot(ohb, Xn_b, preferred_element_type=jnp.float32), 0.0)
        for (w, b) in extras:
            h = jnp.maximum(
                jnp.dot(h.astype(jnp.bfloat16), w,
                        preferred_element_type=jnp.float32) + b, 0.0)
        return key, jnp.maximum(acc, h)      # every layer ends in ReLU => h >= 0

    acc = jnp.zeros((N, out_c), jnp.float32)
    if K <= 8:                               # small K: full unroll
        for _ in range(K):
            key, acc = step(key, acc)
    else:                                    # large K: bound code size / vregs
        key, acc = jax.lax.fori_loop(0, K, lambda _, c: step(*c),
                                     (key, acc), unroll=2)
    return acc


# ----------------------------------------------------------------------------
# Fused backbone kernel: EdgeConv1 -> EdgeConv2 -> conv_block_3 -> max over N.
# One grid step per point cloud; output is the pooled [1, 1024] feature.
# ----------------------------------------------------------------------------
def _backbone_kernel(x_ref,
                     wx1, wn1, b1, w12, b12, w13, b13,
                     wx2, wn2, b2, w22, b22,
                     w3, b3, out_ref, *, K):
    X = x_ref[0]                                                        # [N, 3]
    h = _edge_conv(X, K, wx1[...], wn1[...], b1[...],
                   ((w12[...], b12[...]), (w13[...], b13[...])))        # [N, 64]
    h = _edge_conv(h, K, wx2[...], wn2[...], b2[...],
                   ((w22[...], b22[...]),))                             # [N, 256]
    h = jnp.maximum(
        jnp.dot(h.astype(jnp.bfloat16), w3[...],
                preferred_element_type=jnp.float32) + b3[...], 0.0)     # [N,1024]
    out_ref[0] = jnp.max(h, axis=0, keepdims=True)                      # [1,1024]


def backbone(x, weights, K):
    B, N, F = x.shape
    in_specs = [pl.BlockSpec((1, N, F), lambda b: (b, 0, 0))]
    in_specs += [pl.BlockSpec(w.shape, lambda b: (0, 0)) for w in weights]
    kernel = functools.partial(_backbone_kernel, K=K)
    return pl.pallas_call(
        kernel,
        grid=(B,),
        in_specs=in_specs,
        out_specs=pl.BlockSpec((1, 1, 1024), lambda b: (b, 0, 0)),
        out_shape=jax.ShapeDtypeStruct((B, 1, 1024), jnp.float32),
        compiler_params=pltpu.CompilerParams(
            dimension_semantics=("parallel",)),
    )(x, *weights)


# ----------------------------------------------------------------------------
# Batched FC head: fc_block_4 -> fc_block_5 -> fc_6 -> log_softmax (all B rows
# in one kernel invocation; dropout is identity in eval mode).
# ----------------------------------------------------------------------------
def _fc_head_kernel(g_ref, w4, b4, w5, b5, w6, b6, o_ref):
    bf16 = jnp.bfloat16
    h = jnp.maximum(
        jnp.dot(g_ref[...].astype(bf16), w4[...],
                preferred_element_type=jnp.float32) + b4[...], 0.0)
    h = jnp.maximum(
        jnp.dot(h.astype(bf16), w5[...],
                preferred_element_type=jnp.float32) + b5[...], 0.0)
    logits = jnp.dot(h.astype(bf16), w6[...],
                     preferred_element_type=jnp.float32) + b6[...]
    z = logits - jnp.max(logits, axis=1, keepdims=True)
    o_ref[...] = z - jnp.log(jnp.sum(jnp.exp(z), axis=1, keepdims=True))


def fc_head(g, weights, num_classes):
    B = g.shape[0]
    args = (g,) + tuple(weights)
    in_specs = [pl.BlockSpec(a.shape, lambda i: (0, 0)) for a in args]
    return pl.pallas_call(
        _fc_head_kernel,
        grid=(1,),
        in_specs=in_specs,
        out_specs=pl.BlockSpec((B, num_classes), lambda i: (0, 0)),
        out_shape=jax.ShapeDtypeStruct((B, num_classes), jnp.float32),
    )(*args)


# ----------------------------------------------------------------------------
# Deterministic parameter construction (xavier_normal weights, zero bias,
# BN folded as a scale since gamma=1, beta=0, mean=0, var=1).  Matmul weights
# are pre-cast to bf16 (f32 accumulation in-kernel); biases stay f32.
# ----------------------------------------------------------------------------
def _linear(key, in_c, out_c, with_bn):
    std = math.sqrt(2.0 / (in_c + out_c))
    w = std * jax.random.normal(key, (out_c, in_c), dtype=jnp.float32)  # [out,in]
    if with_bn:
        w = w * BN_SCALE
    return w.T, jnp.zeros((1, out_c), jnp.float32)                      # [in,out]


def init_params(key, num_classes):
    ks = jax.random.split(key, 9)
    # EdgeConv 1: layers [3, 32, 64, 64]   (first conv takes 2*3 = 6 channels)
    w1, b1 = _linear(ks[0], 6, 32, True)
    w12, b12 = _linear(ks[1], 32, 64, True)
    w13, b13 = _linear(ks[2], 64, 64, True)
    # EdgeConv 2: layers [64, 128, 256]    (first conv takes 2*64 = 128)
    w2, b2 = _linear(ks[3], 128, 128, True)
    w22, b22 = _linear(ks[4], 128, 256, True)
    # conv_block_3 (256 -> 1024)
    w3, b3 = _linear(ks[5], 256, 1024, True)
    # fc_block_4 (1024 -> 512), fc_block_5 (512 -> 256), fc_6 (256 -> classes)
    w4, b4 = _linear(ks[6], 1024, 512, True)
    w5, b5 = _linear(ks[7], 512, 256, True)
    w6, b6 = _linear(ks[8], 256, num_classes, False)

    bf = lambda w: w.astype(jnp.bfloat16)
    backbone_w = (bf(w1[:3]), bf(w1[3:]), b1, bf(w12), b12, bf(w13), b13,
                  bf(w2[:64]), bf(w2[64:]), b2, bf(w22), b22,
                  bf(w3), b3)
    head_fc = (bf(w4), b4, bf(w5), b5, bf(w6), b6)
    return {"backbone": backbone_w, "head_fc": head_fc}


def dgcnn_forward(x, params, K, num_classes):
    B, N, C = x.shape
    assert C == 3, "dimension of x does not match"
    assert K + 1 <= N, "iterative KNN masking requires K < N"
    pooled = backbone(x, params["backbone"], K)                # [B, 1, 1024]
    return fc_head(pooled.reshape(B, 1024), params["head_fc"], num_classes)


if __name__ == "__main__":
    B, N = 2, 16
    K = 4             # Args.K
    num_classes = 10

    key = jax.random.PRNGKey(0)
    kx, kp = jax.random.split(key)
    x = jax.random.normal(kx, (B, N, 3), dtype=jnp.float32)
    params = init_params(kp, num_classes)

    out = dgcnn_forward(x, params, K, num_classes)
    out = jax.block_until_ready(out)
    assert out.shape == (B, num_classes), out.shape
    assert bool(jnp.all(jnp.isfinite(out)))
    # log_softmax rows must exponentiate to a probability distribution.
    assert bool(jnp.all(jnp.abs(jnp.sum(jnp.exp(out), axis=-1) - 1.0) < 1e-3))
    print("KERNEL_OK")
</pallas_src>

<mosaic_0001>
module attributes {stable_mosaic.version = 11 : i64} {
  func.func @_backbone_kernel(%arg0: i32, %arg1: memref<1x16x3xf32, #tpu.memory_space<vmem>>, %arg2: memref<3x32xbf16, #tpu.memory_space<vmem>>, %arg3: memref<3x32xbf16, #tpu.memory_space<vmem>>, %arg4: memref<1x32xf32, #tpu.memory_space<vmem>>, %arg5: memref<32x64xbf16, #tpu.memory_space<vmem>>, %arg6: memref<1x64xf32, #tpu.memory_space<vmem>>, %arg7: memref<64x64xbf16, #tpu.memory_space<vmem>>, %arg8: memref<1x64xf32, #tpu.memory_space<vmem>>, %arg9: memref<64x128xbf16, #tpu.memory_space<vmem>>, %arg10: memref<64x128xbf16, #tpu.memory_space<vmem>>, %arg11: memref<1x128xf32, #tpu.memory_space<vmem>>, %arg12: memref<128x256xbf16, #tpu.memory_space<vmem>>, %arg13: memref<1x256xf32, #tpu.memory_space<vmem>>, %arg14: memref<256x1024xbf16, #tpu.memory_space<vmem>>, %arg15: memref<1x1024xf32, #tpu.memory_space<vmem>>, %arg16: memref<1x1x1024xf32, #tpu.memory_space<vmem>>) attributes {dimension_semantics = [#tpu.dimension_semantics<parallel>], iteration_bounds = array<i64: 2>, scalar_prefetch = 0 : i64, scratch_operands = 0 : i64, tpu.core_type = #tpu.core_type<tc>, window_params = [{transform_indices = @transform_0, window_bounds = array<i64: 1, 16, 3>}, {pipeline_mode = #tpu.pipeline_mode<synchronous>, transform_indices = @transform_1, window_bounds = array<i64: 3, 32>}, {pipeline_mode = #tpu.pipeline_mode<synchronous>, transform_indices = @transform_2, window_bounds = array<i64: 3, 32>}, {pipeline_mode = #tpu.pipeline_mode<synchronous>, transform_indices = @transform_3, window_bounds = array<i64: 1, 32>}, {pipeline_mode = #tpu.pipeline_mode<synchronous>, transform_indices = @transform_4, window_bounds = array<i64: 32, 64>}, {pipeline_mode = #tpu.pipeline_mode<synchronous>, transform_indices = @transform_5, window_bounds = array<i64: 1, 64>}, {pipeline_mode = #tpu.pipeline_mode<synchronous>, transform_indices = @transform_6, window_bounds = array<i64: 64, 64>}, {pipeline_mode = #tpu.pipeline_mode<synchronous>, transform_indices = @transform_7, window_bounds = array<i64: 1, 64>}, {pipeline_mode = #tpu.pipeline_mode<synchronous>, transform_indices = @transform_8, window_bounds = array<i64: 64, 128>}, {pipeline_mode = #tpu.pipeline_mode<synchronous>, transform_indices = @transform_9, window_bounds = array<i64: 64, 128>}, {pipeline_mode = #tpu.pipeline_mode<synchronous>, transform_indices = @transform_10, window_bounds = array<i64: 1, 128>}, {pipeline_mode = #tpu.pipeline_mode<synchronous>, transform_indices = @transform_11, window_bounds = array<i64: 128, 256>}, {pipeline_mode = #tpu.pipeline_mode<synchronous>, transform_indices = @transform_12, window_bounds = array<i64: 1, 256>}, {pipeline_mode = #tpu.pipeline_mode<synchronous>, transform_indices = @transform_13, window_bounds = array<i64: 256, 1024>}, {pipeline_mode = #tpu.pipeline_mode<synchronous>, transform_indices = @transform_14, window_bounds = array<i64: 1, 1024>}, {transform_indices = @transform_15, window_bounds = array<i64: 1, 1, 1024>}]} {
    %c0 = arith.constant 0 : index
    %c0_0 = arith.constant 0 : index
    %c0_1 = arith.constant 0 : index
    %0 = vector.load %arg1[%c0, %c0_0, %c0_1] : memref<1x16x3xf32, #tpu.memory_space<vmem>>, vector<1x16x3xf32>
    %1 = vector.shape_cast %0 : vector<1x16x3xf32> to vector<16x3xf32>
    %c0_2 = arith.constant 0 : index
    %c0_3 = arith.constant 0 : index
    %2 = vector.load %arg2[%c0_2, %c0_3] : memref<3x32xbf16, #tpu.memory_space<vmem>>, vector<3x32xbf16>
    %c0_4 = arith.constant 0 : index
    %c0_5 = arith.constant 0 : index
    %3 = vector.load %arg3[%c0_4, %c0_5] : memref<3x32xbf16, #tpu.memory_space<vmem>>, vector<3x32xbf16>
    %c0_6 = arith.constant 0 : index
    %c0_7 = arith.constant 0 : index
    %4 = vector.load %arg4[%c0_6, %c0_7] : memref<1x32xf32, #tpu.memory_space<vmem>>, vector<1x32xf32>
    %c0_8 = arith.constant 0 : index
    %c0_9 = arith.constant 0 : index
    %5 = vector.load %arg5[%c0_8, %c0_9] : memref<32x64xbf16, #tpu.memory_space<vmem>>, vector<32x64xbf16>
    %c0_10 = arith.constant 0 : index
    %c0_11 = arith.constant 0 : index
    %6 = vector.load %arg6[%c0_10, %c0_11] : memref<1x64xf32, #tpu.memory_space<vmem>>, vector<1x64xf32>
    %c0_12 = arith.constant 0 : index
    %c0_13 = arith.constant 0 : index
    %7 = vector.load %arg7[%c0_12, %c0_13] : memref<64x64xbf16, #tpu.memory_space<vmem>>, vector<64x64xbf16>
    %c0_14 = arith.constant 0 : index
    %c0_15 = arith.constant 0 : index
    %8 = vector.load %arg8[%c0_14, %c0_15] : memref<1x64xf32, #tpu.memory_space<vmem>>, vector<1x64xf32>
    %9 = arith.mulf %1, %1 : vector<16x3xf32>
    %cst = arith.constant 1.000000e+00 : f32
    %10 = vector.broadcast %cst : f32 to vector<16x3xf32>
    %cst_16 = arith.constant dense<0.000000e+00> : vector<16x16xf32>
    %11 = tpu.matmul %10, %9, %cst_16 {dimension_numbers = #tpu.dot_dimension_numbers<[1], [1], [0], [0], [0, 0, 1, 0], [], []>} : vector<16x3xf32>, vector<16x3xf32>, vector<16x16xf32> -> vector<16x16xf32>
    %cst_17 = arith.constant dense<0.000000e+00> : vector<16x16xf32>
    %12 = tpu.matmul %1, %1, %cst_17 {dimension_numbers = #tpu.dot_dimension_numbers<[1], [1], [0], [0], [0, 0, 1, 0], [], []>} : vector<16x3xf32>, vector<16x3xf32>, vector<16x16xf32> -> vector<16x16xf32>
    %cst_18 = arith.constant 2.000000e+00 : f32
    %13 = vector.broadcast %cst_18 : f32 to vector<16x16xf32>
    %14 = arith.mulf %13, %12 : vector<16x16xf32>
    %15 = arith.subf %11, %14 : vector<16x16xf32>
    %16 = tpu.bitcast %15 : vector<16x16xf32> -> vector<16x16xi32>
    %c0_i32 = arith.constant 0 : i32
    %17 = vector.broadcast %c0_i32 : i32 to vector<16x16xi32>
    %18 = arith.cmpi slt, %16, %17 : vector<16x16xi32>
    %cst_19 = arith.constant dense<-1> : vector<16x16xi32>
    %19 = arith.xori %16, %cst_19 : vector<16x16xi32>
    %c-2147483648_i32 = arith.constant -2147483648 : i32
    %20 = vector.broadcast %c-2147483648_i32 : i32 to vector<16x16xi32>
    %21 = arith.xori %19, %20 : vector<16x16xi32>
    %22 = arith.select %18, %21, %16 : vector<16x16xi1>, vector<16x16xi32>
    %23 = tpu.iota {dimensions = array<i32: 1>} : vector<16x16xi32>
    %c-16_i32 = arith.constant -16 : i32
    %24 = vector.broadcast %c-16_i32 : i32 to vector<16x16xi32>
    %25 = arith.andi %22, %24 : vector<16x16xi32>
    %26 = arith.ori %25, %23 : vector<16x16xi32>
    %cst_20 = arith.constant dense<2147483647> : vector<16xi32>
    %27 = vector.multi_reduction <minsi>, %26, %cst_20 [1] : vector<16x16xi32> to vector<16xi32>
    %28 = vector.shape_cast %27 : vector<16xi32> to vector<16x1xi32>
    %29 = vector.broadcast %28 : vector<16x1xi32> to vector<16x16xi32>
    %30 = arith.cmpi eq, %26, %29 : vector<16x16xi32>
    %c2147483647_i32 = arith.constant 2147483647 : i32
    %31 = vector.broadcast %c2147483647_i32 : i32 to vector<16x16xi32>
    %32 = arith.select %30, %31, %26 : vector<16x16xi1>, vector<16x16xi32>
    %33 = arith.truncf %1 : vector<16x3xf32> to vector<16x3xbf16>
    %cst_21 = arith.constant dense<0.000000e+00> : vector<16x32xf32>
    %34 = tpu.matmul %33, %3, %cst_21 {dimension_numbers = #tpu.dot_dimension_numbers<[1], [0], [0], [1], [0, 0, 1, 1], [], []>} : vector<16x3xbf16>, vector<3x32xbf16>, vector<16x32xf32> -> vector<16x32xf32>
    %cst_22 = arith.constant dense<0.000000e+00> : vector<16x32xf32>
    %35 = tpu.matmul %33, %2, %cst_22 {dimension_numbers = #tpu.dot_dimension_numbers<[1], [0], [0], [1], [0, 0, 1, 1], [], []>} : vector<16x3xbf16>, vector<3x32xbf16>, vector<16x32xf32> -> vector<16x32xf32>
    %36 = vector.broadcast %4 : vector<1x32xf32> to vector<16x32xf32>
    %37 = arith.addf %35, %36 : vector<16x32xf32>
    %38 = arith.subf %37, %34 : vector<16x32xf32>
    %39 = arith.truncf %34 : vector<16x32xf32> to vector<16x32xbf16>
    %cst_23 = arith.constant 0.000000e+00 : f32
    %40 = vector.broadcast %cst_23 : f32 to vector<16x64xf32>
    %cst_24 = arith.constant dense<2147483647> : vector<16xi32>
    %41 = vector.multi_reduction <minsi>, %32, %cst_24 [1] : vector<16x16xi32> to vector<16xi32>
    %42 = vector.shape_cast %41 : vector<16xi32> to vector<16x1xi32>
    %43 = vector.broadcast %42 : vector<16x1xi32> to vector<16x16xi32>
    %44 = arith.cmpi eq, %32, %43 : vector<16x16xi32>
    %c2147483647_i32_25 = arith.constant 2147483647 : i32
    %45 = vector.broadcast %c2147483647_i32_25 : i32 to vector<16x16xi32>
    %46 = arith.select %44, %45, %32 : vector<16x16xi1>, vector<16x16xi32>
    %cst_26 = arith.constant 1.000000e+00 : f32
    %cst_27 = arith.constant 0.000000e+00 : f32
    %47 = vector.broadcast %cst_26 : f32 to vector<16x16xf32>
    %48 = vector.broadcast %cst_27 : f32 to vector<16x16xf32>
    %49 = arith.select %44, %47, %48 : vector<16x16xi1>, vector<16x16xf32>
    %50 = arith.truncf %49 : vector<16x16xf32> to vector<16x16xbf16>
    %cst_28 = arith.constant dense<0.000000e+00> : vector<16x32xf32>
    %51 = tpu.matmul %50, %39, %cst_28 {dimension_numbers = #tpu.dot_dimension_numbers<[1], [0], [0], [1], [0, 0, 1, 1], [], []>} : vector<16x16xbf16>, vector<16x32xbf16>, vector<16x32xf32> -> vector<16x32xf32>
    %52 = arith.addf %38, %51 : vector<16x32xf32>
    %cst_29 = arith.constant 0.000000e+00 : f32
    %53 = vector.broadcast %cst_29 : f32 to vector<16x32xf32>
    %54 = arith.maximumf %52, %53 : vector<16x32xf32>
    %55 = arith.truncf %54 : vector<16x32xf32> to vector<16x32xbf16>
    %cst_30 = arith.constant dense<0.000000e+00> : vector<16x64xf32>
    %56 = tpu.matmul %55, %5, %cst_30 {dimension_numbers = #tpu.dot_dimension_numbers<[1], [0], [0], [1], [0, 0, 1, 1], [], []>} : vector<16x32xbf16>, vector<32x64xbf16>, vector<16x64xf32> -> vector<16x64xf32>
    %57 = vector.broadcast %6 : vector<1x64xf32> to vector<16x64xf32>
    %58 = arith.addf %56, %57 : vector<16x64xf32>
    %cst_31 = arith.constant 0.000000e+00 : f32
    %59 = vector.broadcast %cst_31 : f32 to vector<16x64xf32>
    %60 = arith.maximumf %58, %59 : vector<16x64xf32>
    %61 = arith.truncf %60 : vector<16x64xf32> to vector<16x64xbf16>
    %cst_32 = arith.constant dense<0.000000e+00> : vector<16x64xf32>
    %62 = tpu.matmul %61, %7, %cst_32 {dimension_numbers = #tpu.dot_dimension_numbers<[1], [0], [0], [1], [0, 0, 1, 1], [], []>} : vector<16x64xbf16>, vector<64x64xbf16>, vector<16x64xf32> -> vector<16x64xf32>
    %63 = vector.broadcast %8 : vector<1x64xf32> to vector<16x64xf32>
    %64 = arith.addf %62, %63 : vector<16x64xf32>
    %cst_33 = arith.constant 0.000000e+00 : f32
    %65 = vector.broadcast %cst_33 : f32 to vector<16x64xf32>
    %66 = arith.maximumf %64, %65 : vector<16x64xf32>
    %67 = arith.maximumf %40, %66 : vector<16x64xf32>
    %cst_34 = arith.constant dense<2147483647> : vector<16xi32>
    %68 = vector.multi_reduction <minsi>, %46, %cst_34 [1] : vector<16x16xi32> to vector<16xi32>
    %69 = vector.shape_cast %68 : vector<16xi32> to vector<16x1xi32>
    %70 = vector.broadcast %69 : vector<16x1xi32> to vector<16x16xi32>
    %71 = arith.cmpi eq, %46, %70 : vector<16x16xi32>
    %c2147483647_i32_35 = arith.constant 2147483647 : i32
    %72 = vector.broadcast %c2147483647_i32_35 : i32 to vector<16x16xi32>
    %73 = arith.select %71, %72, %46 : vector<16x16xi1>, vector<16x16xi32>
    %cst_36 = arith.constant 1.000000e+00 : f32
    %cst_37 = arith.constant 0.000000e+00 : f32
    %74 = vector.broadcast %cst_36 : f32 to vector<16x16xf32>
    %75 = vector.broadcast %cst_37 : f32 to vector<16x16xf32>
    %76 = arith.select %71, %74, %75 : vector<16x16xi1>, vector<16x16xf32>
    %77 = arith.truncf %76 : vector<16x16xf32> to vector<16x16xbf16>
    %cst_38 = arith.constant dense<0.000000e+00> : vector<16x32xf32>
    %78 = tpu.matmul %77, %39, %cst_38 {dimension_numbers = #tpu.dot_dimension_numbers<[1], [0], [0], [1], [0, 0, 1, 1], [], []>} : vector<16x16xbf16>, vector<16x32xbf16>, vector<16x32xf32> -> vector<16x32xf32>
    %79 = arith.addf %38, %78 : vector<16x32xf32>
    %cst_39 = arith.constant 0.000000e+00 : f32
    %80 = vector.broadcast %cst_39 : f32 to vector<16x32xf32>
    %81 = arith.maximumf %79, %80 : vector<16x32xf32>
    %82 = arith.truncf %81 : vector<16x32xf32> to vector<16x32xbf16>
    %cst_40 = arith.constant dense<0.000000e+00> : vector<16x64xf32>
    %83 = tpu.matmul %82, %5, %cst_40 {dimension_numbers = #tpu.dot_dimension_numbers<[1], [0], [0], [1], [0, 0, 1, 1], [], []>} : vector<16x32xbf16>, vector<32x64xbf16>, vector<16x64xf32> -> vector<16x64xf32>
    %84 = vector.broadcast %6 : vector<1x64xf32> to vector<16x64xf32>
    %85 = arith.addf %83, %84 : vector<16x64xf32>
    %cst_41 = arith.constant 0.000000e+00 : f32
    %86 = vector.broadcast %cst_41 : f32 to vector<16x64xf32>
    %87 = arith.maximumf %85, %86 : vector<16x64xf32>
    %88 = arith.truncf %87 : vector<16x64xf32> to vector<16x64xbf16>
    %cst_42 = arith.constant dense<0.000000e+00> : vector<16x64xf32>
    %89 = tpu.matmul %88, %7, %cst_42 {dimension_numbers = #tpu.dot_dimension_numbers<[1], [0], [0], [1], [0, 0, 1, 1], [], []>} : vector<16x64xbf16>, vector<64x64xbf16>, vector<16x64xf32> -> vector<16x64xf32>
    %90 = vector.broadcast %8 : vector<1x64xf32> to vector<16x64xf32>
    %91 = arith.addf %89, %90 : vector<16x64xf32>
    %cst_43 = arith.constant 0.000000e+00 : f32
    %92 = vector.broadcast %cst_43 : f32 to vector<16x64xf32>
    %93 = arith.maximumf %91, %92 : vector<16x64xf32>
    %94 = arith.maximumf %67, %93 : vector<16x64xf32>
    %cst_44 = arith.constant dense<2147483647> : vector<16xi32>
    %95 = vector.multi_reduction <minsi>, %73, %cst_44 [1] : vector<16x16xi32> to vector<16xi32>
    %96 = vector.shape_cast %95 : vector<16xi32> to vector<16x1xi32>
    %97 = vector.broadcast %96 : vector<16x1xi32> to vector<16x16xi32>
    %98 = arith.cmpi eq, %73, %97 : vector<16x16xi32>
    %c2147483647_i32_45 = arith.constant 2147483647 : i32
    %99 = vector.broadcast %c2147483647_i32_45 : i32 to vector<16x16xi32>
    %100 = arith.select %98, %99, %73 : vector<16x16xi1>, vector<16x16xi32>
    %cst_46 = arith.constant 1.000000e+00 : f32
    %cst_47 = arith.constant 0.000000e+00 : f32
    %101 = vector.broadcast %cst_46 : f32 to vector<16x16xf32>
    %102 = vector.broadcast %cst_47 : f32 to vector<16x16xf32>
    %103 = arith.select %98, %101, %102 : vector<16x16xi1>, vector<16x16xf32>
    %104 = arith.truncf %103 : vector<16x16xf32> to vector<16x16xbf16>
    %cst_48 = arith.constant dense<0.000000e+00> : vector<16x32xf32>
    %105 = tpu.matmul %104, %39, %cst_48 {dimension_numbers = #tpu.dot_dimension_numbers<[1], [0], [0], [1], [0, 0, 1, 1], [], []>} : vector<16x16xbf16>, vector<16x32xbf16>, vector<16x32xf32> -> vector<16x32xf32>
    %106 = arith.addf %38, %105 : vector<16x32xf32>
    %cst_49 = arith.constant 0.000000e+00 : f32
    %107 = vector.broadcast %cst_49 : f32 to vector<16x32xf32>
    %108 = arith.maximumf %106, %107 : vector<16x32xf32>
    %109 = arith.truncf %108 : vector<16x32xf32> to vector<16x32xbf16>
    %cst_50 = arith.constant dense<0.000000e+00> : vector<16x64xf32>
    %110 = tpu.matmul %109, %5, %cst_50 {dimension_numbers = #tpu.dot_dimension_numbers<[1], [0], [0], [1], [0, 0, 1, 1], [], []>} : vector<16x32xbf16>, vector<32x64xbf16>, vector<16x64xf32> -> vector<16x64xf32>
    %111 = vector.broadcast %6 : vector<1x64xf32> to vector<16x64xf32>
    %112 = arith.addf %110, %111 : vector<16x64xf32>
    %cst_51 = arith.constant 0.000000e+00 : f32
    %113 = vector.broadcast %cst_51 : f32 to vector<16x64xf32>
    %114 = arith.maximumf %112, %113 : vector<16x64xf32>
    %115 = arith.truncf %114 : vector<16x64xf32> to vector<16x64xbf16>
    %cst_52 = arith.constant dense<0.000000e+00> : vector<16x64xf32>
    %116 = tpu.matmul %115, %7, %cst_52 {dimension_numbers = #tpu.dot_dimension_numbers<[1], [0], [0], [1], [0, 0, 1, 1], [], []>} : vector<16x64xbf16>, vector<64x64xbf16>, vector<16x64xf32> -> vector<16x64xf32>
    %117 = vector.broadcast %8 : vector<1x64xf32> to vector<16x64xf32>
    %118 = arith.addf %116, %117 : vector<16x64xf32>
    %cst_53 = arith.constant 0.000000e+00 : f32
    %119 = vector.broadcast %cst_53 : f32 to vector<16x64xf32>
    %120 = arith.maximumf %118, %119 : vector<16x64xf32>
    %121 = arith.maximumf %94, %120 : vector<16x64xf32>
    %cst_54 = arith.constant dense<2147483647> : vector<16xi32>
    %122 = vector.multi_reduction <minsi>, %100, %cst_54 [1] : vector<16x16xi32> to vector<16xi32>
    %123 = vector.shape_cast %122 : vector<16xi32> to vector<16x1xi32>
    %124 = vector.broadcast %123 : vector<16x1xi32> to vector<16x16xi32>
    %125 = arith.cmpi eq, %100, %124 : vector<16x16xi32>
    %cst_55 = arith.constant 1.000000e+00 : f32
    %cst_56 = arith.constant 0.000000e+00 : f32
    %126 = vector.broadcast %cst_55 : f32 to vector<16x16xf32>
    %127 = vector.broadcast %cst_56 : f32 to vector<16x16xf32>
    %128 = arith.select %125, %126, %127 : vector<16x16xi1>, vector<16x16xf32>
    %129 = arith.truncf %128 : vector<16x16xf32> to vector<16x16xbf16>
    %cst_57 = arith.constant dense<0.000000e+00> : vector<16x32xf32>
    %130 = tpu.matmul %129, %39, %cst_57 {dimension_numbers = #tpu.dot_dimension_numbers<[1], [0], [0], [1], [0, 0, 1, 1], [], []>} : vector<16x16xbf16>, vector<16x32xbf16>, vector<16x32xf32> -> vector<16x32xf32>
    %131 = arith.addf %38, %130 : vector<16x32xf32>
    %cst_58 = arith.constant 0.000000e+00 : f32
    %132 = vector.broadcast %cst_58 : f32 to vector<16x32xf32>
    %133 = arith.maximumf %131, %132 : vector<16x32xf32>
    %134 = arith.truncf %133 : vector<16x32xf32> to vector<16x32xbf16>
    %cst_59 = arith.constant dense<0.000000e+00> : vector<16x64xf32>
    %135 = tpu.matmul %134, %5, %cst_59 {dimension_numbers = #tpu.dot_dimension_numbers<[1], [0], [0], [1], [0, 0, 1, 1], [], []>} : vector<16x32xbf16>, vector<32x64xbf16>, vector<16x64xf32> -> vector<16x64xf32>
    %136 = vector.broadcast %6 : vector<1x64xf32> to vector<16x64xf32>
    %137 = arith.addf %135, %136 : vector<16x64xf32>
    %cst_60 = arith.constant 0.000000e+00 : f32
    %138 = vector.broadcast %cst_60 : f32 to vector<16x64xf32>
    %139 = arith.maximumf %137, %138 : vector<16x64xf32>
    %140 = arith.truncf %139 : vector<16x64xf32> to vector<16x64xbf16>
    %cst_61 = arith.constant dense<0.000000e+00> : vector<16x64xf32>
    %141 = tpu.matmul %140, %7, %cst_61 {dimension_numbers = #tpu.dot_dimension_numbers<[1], [0], [0], [1], [0, 0, 1, 1], [], []>} : vector<16x64xbf16>, vector<64x64xbf16>, vector<16x64xf32> -> vector<16x64xf32>
    %142 = vector.broadcast %8 : vector<1x64xf32> to vector<16x64xf32>
    %143 = arith.addf %141, %142 : vector<16x64xf32>
    %cst_62 = arith.constant 0.000000e+00 : f32
    %144 = vector.broadcast %cst_62 : f32 to vector<16x64xf32>
    %145 = arith.maximumf %143, %144 : vector<16x64xf32>
    %146 = arith.maximumf %121, %145 : vector<16x64xf32>
    %c0_63 = arith.constant 0 : index
    %c0_64 = arith.constant 0 : index
    %147 = vector.load %arg9[%c0_63, %c0_64] : memref<64x128xbf16, #tpu.memory_space<vmem>>, vector<64x128xbf16>
    %c0_65 = arith.constant 0 : index
    %c0_66 = arith.constant 0 : index
    %148 = vector.load %arg10[%c0_65, %c0_66] : memref<64x128xbf16, #tpu.memory_space<vmem>>, vector<64x128xbf16>
    %c0_67 = arith.constant 0 : index
    %c0_68 = arith.constant 0 : index
    %149 = vector.load %arg11[%c0_67, %c0_68] : memref<1x128xf32, #tpu.memory_space<vmem>>, vector<1x128xf32>
    %c0_69 = arith.constant 0 : index
    %c0_70 = arith.constant 0 : index
    %150 = vector.load %arg12[%c0_69, %c0_70] : memref<128x256xbf16, #tpu.memory_space<vmem>>, vector<128x256xbf16>
    %c0_71 = arith.constant 0 : index
    %c0_72 = arith.constant 0 : index
    %151 = vector.load %arg13[%c0_71, %c0_72] : memref<1x256xf32, #tpu.memory_space<vmem>>, vector<1x256xf32>
    %152 = arith.mulf %146, %146 : vector<16x64xf32>
    %cst_73 = arith.constant 1.000000e+00 : f32
    %153 = vector.broadcast %cst_73 : f32 to vector<16x64xf32>
    %cst_74 = arith.constant dense<0.000000e+00> : vector<16x16xf32>
    %154 = tpu.matmul %153, %152, %cst_74 {dimension_numbers = #tpu.dot_dimension_numbers<[1], [1], [0], [0], [0, 0, 1, 0], [], []>} : vector<16x64xf32>, vector<16x64xf32>, vector<16x16xf32> -> vector<16x16xf32>
    %cst_75 = arith.constant dense<0.000000e+00> : vector<16x16xf32>
    %155 = tpu.matmul %146, %146, %cst_75 {dimension_numbers = #tpu.dot_dimension_numbers<[1], [1], [0], [0], [0, 0, 1, 0], [], []>} : vector<16x64xf32>, vector<16x64xf32>, vector<16x16xf32> -> vector<16x16xf32>
    %cst_76 = arith.constant 2.000000e+00 : f32
    %156 = vector.broadcast %cst_76 : f32 to vector<16x16xf32>
    %157 = arith.mulf %156, %155 : vector<16x16xf32>
    %158 = arith.subf %154, %157 : vector<16x16xf32>
    %159 = tpu.bitcast %158 : vector<16x16xf32> -> vector<16x16xi32>
    %c0_i32_77 = arith.constant 0 : i32
    %160 = vector.broadcast %c0_i32_77 : i32 to vector<16x16xi32>
    %161 = arith.cmpi slt, %159, %160 : vector<16x16xi32>
    %cst_78 = arith.constant dense<-1> : vector<16x16xi32>
    %162 = arith.xori %159, %cst_78 : vector<16x16xi32>
    %c-2147483648_i32_79 = arith.constant -2147483648 : i32
    %163 = vector.broadcast %c-2147483648_i32_79 : i32 to vector<16x16xi32>
    %164 = arith.xori %162, %163 : vector<16x16xi32>
    %165 = arith.select %161, %164, %159 : vector<16x16xi1>, vector<16x16xi32>
    %166 = tpu.iota {dimensions = array<i32: 1>} : vector<16x16xi32>
    %c-16_i32_80 = arith.constant -16 : i32
    %167 = vector.broadcast %c-16_i32_80 : i32 to vector<16x16xi32>
    %168 = arith.andi %165, %167 : vector<16x16xi32>
    %169 = arith.ori %168, %166 : vector<16x16xi32>
    %cst_81 = arith.constant dense<2147483647> : vector<16xi32>
    %170 = vector.multi_reduction <minsi>, %169, %cst_81 [1] : vector<16x16xi32> to vector<16xi32>
    %171 = vector.shape_cast %170 : vector<16xi32> to vector<16x1xi32>
    %172 = vector.broadcast %171 : vector<16x1xi32> to vector<16x16xi32>
    %173 = arith.cmpi eq, %169, %172 : vector<16x16xi32>
    %c2147483647_i32_82 = arith.constant 2147483647 : i32
    %174 = vector.broadcast %c2147483647_i32_82 : i32 to vector<16x16xi32>
    %175 = arith.select %173, %174, %169 : vector<16x16xi1>, vector<16x16xi32>
    %176 = arith.truncf %146 : vector<16x64xf32> to vector<16x64xbf16>
    %cst_83 = arith.constant dense<0.000000e+00> : vector<16x128xf32>
    %177 = tpu.matmul %176, %148, %cst_83 {dimension_numbers = #tpu.dot_dimension_numbers<[1], [0], [0], [1], [0, 0, 1, 1], [], []>} : vector<16x64xbf16>, vector<64x128xbf16>, vector<16x128xf32> -> vector<16x128xf32>
    %cst_84 = arith.constant dense<0.000000e+00> : vector<16x128xf32>
    %178 = tpu.matmul %176, %147, %cst_84 {dimension_numbers = #tpu.dot_dimension_numbers<[1], [0], [0], [1], [0, 0, 1, 1], [], []>} : vector<16x64xbf16>, vector<64x128xbf16>, vector<16x128xf32> -> vector<16x128xf32>
    %179 = vector.broadcast %149 : vector<1x128xf32> to vector<16x128xf32>
    %180 = arith.addf %178, %179 : vector<16x128xf32>
    %181 = arith.subf %180, %177 : vector<16x128xf32>
    %182 = arith.truncf %177 : vector<16x128xf32> to vector<16x128xbf16>
    %cst_85 = arith.constant 0.000000e+00 : f32
    %183 = vector.broadcast %cst_85 : f32 to vector<16x256xf32>
    %cst_86 = arith.constant dense<2147483647> : vector<16xi32>
    %184 = vector.multi_reduction <minsi>, %175, %cst_86 [1] : vector<16x16xi32> to vector<16xi32>
    %185 = vector.shape_cast %184 : vector<16xi32> to vector<16x1xi32>
    %186 = vector.broadcast %185 : vector<16x1xi32> to vector<16x16xi32>
    %187 = arith.cmpi eq, %175, %186 : vector<16x16xi32>
    %c2147483647_i32_87 = arith.constant 2147483647 : i32
    %188 = vector.broadcast %c2147483647_i32_87 : i32 to vector<16x16xi32>
    %189 = arith.select %187, %188, %175 : vector<16x16xi1>, vector<16x16xi32>
    %cst_88 = arith.constant 1.000000e+00 : f32
    %cst_89 = arith.constant 0.000000e+00 : f32
    %190 = vector.broadcast %cst_88 : f32 to vector<16x16xf32>
    %191 = vector.broadcast %cst_89 : f32 to vector<16x16xf32>
    %192 = arith.select %187, %190, %191 : vector<16x16xi1>, vector<16x16xf32>
    %193 = arith.truncf %192 : vector<16x16xf32> to vector<16x16xbf16>
    %cst_90 = arith.constant dense<0.000000e+00> : vector<16x128xf32>
    %194 = tpu.matmul %193, %182, %cst_90 {dimension_numbers = #tpu.dot_dimension_numbers<[1], [0], [0], [1], [0, 0, 1, 1], [], []>} : vector<16x16xbf16>, vector<16x128xbf16>, vector<16x128xf32> -> vector<16x128xf32>
    %195 = arith.addf %181, %194 : vector<16x128xf32>
    %cst_91 = arith.constant 0.000000e+00 : f32
    %196 = vector.broadcast %cst_91 : f32 to vector<16x128xf32>
    %197 = arith.maximumf %195, %196 : vector<16x128xf32>
    %198 = arith.truncf %197 : vector<16x128xf32> to vector<16x128xbf16>
    %cst_92 = arith.constant dense<0.000000e+00> : vector<16x256xf32>
    %199 = tpu.matmul %198, %150, %cst_92 {dimension_numbers = #tpu.dot_dimension_numbers<[1], [0], [0], [1], [0, 0, 1, 1], [], []>} : vector<16x128xbf16>, vector<128x256xbf16>, vector<16x256xf32> -> vector<16x256xf32>
    %200 = vector.broadcast %151 : vector<1x256xf32> to vector<16x256xf32>
    %201 = arith.addf %199, %200 : vector<16x256xf32>
    %cst_93 = arith.constant 0.000000e+00 : f32
    %202 = vector.broadcast %cst_93 : f32 to vector<16x256xf32>
    %203 = arith.maximumf %201, %202 : vector<16x256xf32>
    %204 = arith.maximumf %183, %203 : vector<16x256xf32>
    %cst_94 = arith.constant dense<2147483647> : vector<16xi32>
    %205 = vector.multi_reduction <minsi>, %189, %cst_94 [1] : vector<16x16xi32> to vector<16xi32>
    %206 = vector.shape_cast %205 : vector<16xi32> to vector<16x1xi32>
    %207 = vector.broadcast %206 : vector<16x1xi32> to vector<16x16xi32>
    %208 = arith.cmpi eq, %189, %207 : vector<16x16xi32>
    %c2147483647_i32_95 = arith.constant 2147483647 : i32
    %209 = vector.broadcast %c2147483647_i32_95 : i32 to vector<16x16xi32>
    %210 = arith.select %208, %209, %189 : vector<16x16xi1>, vector<16x16xi32>
    %cst_96 = arith.constant 1.000000e+00 : f32
    %cst_97 = arith.constant 0.000000e+00 : f32
    %211 = vector.broadcast %cst_96 : f32 to vector<16x16xf32>
    %212 = vector.broadcast %cst_97 : f32 to vector<16x16xf32>
    %213 = arith.select %208, %211, %212 : vector<16x16xi1>, vector<16x16xf32>
    %214 = arith.truncf %213 : vector<16x16xf32> to vector<16x16xbf16>
    %cst_98 = arith.constant dense<0.000000e+00> : vector<16x128xf32>
    %215 = tpu.matmul %214, %182, %cst_98 {dimension_numbers = #tpu.dot_dimension_numbers<[1], [0], [0], [1], [0, 0, 1, 1], [], []>} : vector<16x16xbf16>, vector<16x128xbf16>, vector<16x128xf32> -> vector<16x128xf32>
    %216 = arith.addf %181, %215 : vector<16x128xf32>
    %cst_99 = arith.constant 0.000000e+00 : f32
    %217 = vector.broadcast %cst_99 : f32 to vector<16x128xf32>
    %218 = arith.maximumf %216, %217 : vector<16x128xf32>
    %219 = arith.truncf %218 : vector<16x128xf32> to vector<16x128xbf16>
    %cst_100 = arith.constant dense<0.000000e+00> : vector<16x256xf32>
    %220 = tpu.matmul %219, %150, %cst_100 {dimension_numbers = #tpu.dot_dimension_numbers<[1], [0], [0], [1], [0, 0, 1, 1], [], []>} : vector<16x128xbf16>, vector<128x256xbf16>, vector<16x256xf32> -> vector<16x256xf32>
    %221 = vector.broadcast %151 : vector<1x256xf32> to vector<16x256xf32>
    %222 = arith.addf %220, %221 : vector<16x256xf32>
    %cst_101 = arith.constant 0.000000e+00 : f32
    %223 = vector.broadcast %cst_101 : f32 to vector<16x256xf32>
    %224 = arith.maximumf %222, %223 : vector<16x256xf32>
    %225 = arith.maximumf %204, %224 : vector<16x256xf32>
    %cst_102 = arith.constant dense<2147483647> : vector<16xi32>
    %226 = vector.multi_reduction <minsi>, %210, %cst_102 [1] : vector<16x16xi32> to vector<16xi32>
    %227 = vector.shape_cast %226 : vector<16xi32> to vector<16x1xi32>
    %228 = vector.broadcast %227 : vector<16x1xi32> to vector<16x16xi32>
    %229 = arith.cmpi eq, %210, %228 : vector<16x16xi32>
    %c2147483647_i32_103 = arith.constant 2147483647 : i32
    %230 = vector.broadcast %c2147483647_i32_103 : i32 to vector<16x16xi32>
    %231 = arith.select %229, %230, %210 : vector<16x16xi1>, vector<16x16xi32>
    %cst_104 = arith.constant 1.000000e+00 : f32
    %cst_105 = arith.constant 0.000000e+00 : f32
    %232 = vector.broadcast %cst_104 : f32 to vector<16x16xf32>
    %233 = vector.broadcast %cst_105 : f32 to vector<16x16xf32>
    %234 = arith.select %229, %232, %233 : vector<16x16xi1>, vector<16x16xf32>
    %235 = arith.truncf %234 : vector<16x16xf32> to vector<16x16xbf16>
    %cst_106 = arith.constant dense<0.000000e+00> : vector<16x128xf32>
    %236 = tpu.matmul %235, %182, %cst_106 {dimension_numbers = #tpu.dot_dimension_numbers<[1], [0], [0], [1], [0, 0, 1, 1], [], []>} : vector<16x16xbf16>, vector<16x128xbf16>, vector<16x128xf32> -> vector<16x128xf32>
    %237 = arith.addf %181, %236 : vector<16x128xf32>
    %cst_107 = arith.constant 0.000000e+00 : f32
    %238 = vector.broadcast %cst_107 : f32 to vector<16x128xf32>
    %239 = arith.maximumf %237, %238 : vector<16x128xf32>
    %240 = arith.truncf %239 : vector<16x128xf32> to vector<16x128xbf16>
    %cst_108 = arith.constant dense<0.000000e+00> : vector<16x256xf32>
    %241 = tpu.matmul %240, %150, %cst_108 {dimension_numbers = #tpu.dot_dimension_numbers<[1], [0], [0], [1], [0, 0, 1, 1], [], []>} : vector<16x128xbf16>, vector<128x256xbf16>, vector<16x256xf32> -> vector<16x256xf32>
    %242 = vector.broadcast %151 : vector<1x256xf32> to vector<16x256xf32>
    %243 = arith.addf %241, %242 : vector<16x256xf32>
    %cst_109 = arith.constant 0.000000e+00 : f32
    %244 = vector.broadcast %cst_109 : f32 to vector<16x256xf32>
    %245 = arith.maximumf %243, %244 : vector<16x256xf32>
    %246 = arith.maximumf %225, %245 : vector<16x256xf32>
    %cst_110 = arith.constant dense<2147483647> : vector<16xi32>
    %247 = vector.multi_reduction <minsi>, %231, %cst_110 [1] : vector<16x16xi32> to vector<16xi32>
    %248 = vector.shape_cast %247 : vector<16xi32> to vector<16x1xi32>
    %249 = vector.broadcast %248 : vector<16x1xi32> to vector<16x16xi32>
    %250 = arith.cmpi eq, %231, %249 : vector<16x16xi32>
    %cst_111 = arith.constant 1.000000e+00 : f32
    %cst_112 = arith.constant 0.000000e+00 : f32
    %251 = vector.broadcast %cst_111 : f32 to vector<16x16xf32>
    %252 = vector.broadcast %cst_112 : f32 to vector<16x16xf32>
    %253 = arith.select %250, %251, %252 : vector<16x16xi1>, vector<16x16xf32>
    %254 = arith.truncf %253 : vector<16x16xf32> to vector<16x16xbf16>
    %cst_113 = arith.constant dense<0.000000e+00> : vector<16x128xf32>
    %255 = tpu.matmul %254, %182, %cst_113 {dimension_numbers = #tpu.dot_dimension_numbers<[1], [0], [0], [1], [0, 0, 1, 1], [], []>} : vector<16x16xbf16>, vector<16x128xbf16>, vector<16x128xf32> -> vector<16x128xf32>
    %256 = arith.addf %181, %255 : vector<16x128xf32>
    %cst_114 = arith.constant 0.000000e+00 : f32
    %257 = vector.broadcast %cst_114 : f32 to vector<16x128xf32>
    %258 = arith.maximumf %256, %257 : vector<16x128xf32>
    %259 = arith.truncf %258 : vector<16x128xf32> to vector<16x128xbf16>
    %cst_115 = arith.constant dense<0.000000e+00> : vector<16x256xf32>
    %260 = tpu.matmul %259, %150, %cst_115 {dimension_numbers = #tpu.dot_dimension_numbers<[1], [0], [0], [1], [0, 0, 1, 1], [], []>} : vector<16x128xbf16>, vector<128x256xbf16>, vector<16x256xf32> -> vector<16x256xf32>
    %261 = vector.broadcast %151 : vector<1x256xf32> to vector<16x256xf32>
    %262 = arith.addf %260, %261 : vector<16x256xf32>
    %cst_116 = arith.constant 0.000000e+00 : f32
    %263 = vector.broadcast %cst_116 : f32 to vector<16x256xf32>
    %264 = arith.maximumf %262, %263 : vector<16x256xf32>
    %265 = arith.maximumf %246, %264 : vector<16x256xf32>
    %266 = arith.truncf %265 : vector<16x256xf32> to vector<16x256xbf16>
    %c0_117 = arith.constant 0 : index
    %c0_118 = arith.constant 0 : index
    %267 = vector.load %arg14[%c0_117, %c0_118] : memref<256x1024xbf16, #tpu.memory_space<vmem>>, vector<256x1024xbf16>
    %cst_119 = arith.constant dense<0.000000e+00> : vector<16x1024xf32>
    %268 = tpu.matmul %266, %267, %cst_119 {dimension_numbers = #tpu.dot_dimension_numbers<[1], [0], [0], [1], [0, 0, 1, 1], [], []>} : vector<16x256xbf16>, vector<256x1024xbf16>, vector<16x1024xf32> -> vector<16x1024xf32>
    %c0_120 = arith.constant 0 : index
    %c0_121 = arith.constant 0 : index
    %269 = vector.load %arg15[%c0_120, %c0_121] : memref<1x1024xf32, #tpu.memory_space<vmem>>, vector<1x1024xf32>
    %270 = vector.broadcast %269 : vector<1x1024xf32> to vector<16x1024xf32>
    %271 = arith.addf %268, %270 : vector<16x1024xf32>
    %cst_122 = arith.constant 0.000000e+00 : f32
    %272 = vector.broadcast %cst_122 : f32 to vector<16x1024xf32>
    %273 = arith.maximumf %271, %272 : vector<16x1024xf32>
    %cst_123 = arith.constant dense<0xFF800000> : vector<1024xf32>
    %274 = vector.multi_reduction <maximumf>, %273, %cst_123 [0] : vector<16x1024xf32> to vector<1024xf32>
    %275 = vector.shape_cast %274 : vector<1024xf32> to vector<1x1024xf32>
    %c0_124 = arith.constant 0 : index
    %c0_125 = arith.constant 0 : index
    %c0_126 = arith.constant 0 : index
    %276 = vector.load %arg16[%c0_124, %c0_125, %c0_126] : memref<1x1x1024xf32, #tpu.memory_space<vmem>>, vector<1x1x1024xf32>
    %277 = vector.shape_cast %276 : vector<1x1x1024xf32> to vector<1x1024xf32>
    %278 = vector.shape_cast %275 : vector<1x1024xf32> to vector<1x1x1024xf32>
    tpu.vector_store %arg16[%c0_124, %c0_125, %c0_126], %278 {strides = array<i32>} : memref<1x1x1024xf32, #tpu.memory_space<vmem>>, vector<1x1x1024xf32>,
    return
  }
  func.func @transform_0(%arg0: i32) -> (i32, i32, i32) {
    %c0_i32 = arith.constant 0 : i32
    %c0_i32_0 = arith.constant 0 : i32
    %c0_i32_1 = arith.constant 0 : i32
    return %arg0, %c0_i32, %c0_i32_0 : i32, i32, i32
  }
  func.func @transform_1(%arg0: i32) -> (i32, i32) {
    %c0_i32 = arith.constant 0 : i32
    %c0_i32_0 = arith.constant 0 : i32
    %c0_i32_1 = arith.constant 0 : i32
    return %c0_i32, %c0_i32_0 : i32, i32
  }
  func.func @transform_2(%arg0: i32) -> (i32, i32) {
    %c0_i32 = arith.constant 0 : i32
    %c0_i32_0 = arith.constant 0 : i32
    %c0_i32_1 = arith.constant 0 : i32
    return %c0_i32, %c0_i32_0 : i32, i32
  }
  func.func @transform_3(%arg0: i32) -> (i32, i32) {
    %c0_i32 = arith.constant 0 : i32
    %c0_i32_0 = arith.constant 0 : i32
    %c0_i32_1 = arith.constant 0 : i32
    return %c0_i32, %c0_i32_0 : i32, i32
  }
  func.func @transform_4(%arg0: i32) -> (i32, i32) {
    %c0_i32 = arith.constant 0 : i32
    %c0_i32_0 = arith.constant 0 : i32
    %c0_i32_1 = arith.constant 0 : i32
    return %c0_i32, %c0_i32_0 : i32, i32
  }
  func.func @transform_5(%arg0: i32) -> (i32, i32) {
    %c0_i32 = arith.constant 0 : i32
    %c0_i32_0 = arith.constant 0 : i32
    %c0_i32_1 = arith.constant 0 : i32
    return %c0_i32, %c0_i32_0 : i32, i32
  }
  func.func @transform_6(%arg0: i32) -> (i32, i32) {
    %c0_i32 = arith.constant 0 : i32
    %c0_i32_0 = arith.constant 0 : i32
    %c0_i32_1 = arith.constant 0 : i32
    return %c0_i32, %c0_i32_0 : i32, i32
  }
  func.func @transform_7(%arg0: i32) -> (i32, i32) {
    %c0_i32 = arith.constant 0 : i32
    %c0_i32_0 = arith.constant 0 : i32
    %c0_i32_1 = arith.constant 0 : i32
    return %c0_i32, %c0_i32_0 : i32, i32
  }
  func.func @transform_8(%arg0: i32) -> (i32, i32) {
    %c0_i32 = arith.constant 0 : i32
    %c0_i32_0 = arith.constant 0 : i32
    %c0_i32_1 = arith.constant 0 : i32
    return %c0_i32, %c0_i32_0 : i32, i32
  }
  func.func @transform_9(%arg0: i32) -> (i32, i32) {
    %c0_i32 = arith.constant 0 : i32
    %c0_i32_0 = arith.constant 0 : i32
    %c0_i32_1 = arith.constant 0 : i32
    return %c0_i32, %c0_i32_0 : i32, i32
  }
  func.func @transform_10(%arg0: i32) -> (i32, i32) {
    %c0_i32 = arith.constant 0 : i32
    %c0_i32_0 = arith.constant 0 : i32
    %c0_i32_1 = arith.constant 0 : i32
    return %c0_i32, %c0_i32_0 : i32, i32
  }
  func.func @transform_11(%arg0: i32) -> (i32, i32) {
    %c0_i32 = arith.constant 0 : i32
    %c0_i32_0 = arith.constant 0 : i32
    %c0_i32_1 = arith.constant 0 : i32
    return %c0_i32, %c0_i32_0 : i32, i32
  }
  func.func @transform_12(%arg0: i32) -> (i32, i32) {
    %c0_i32 = arith.constant 0 : i32
    %c0_i32_0 = arith.constant 0 : i32
    %c0_i32_1 = arith.constant 0 : i32
    return %c0_i32, %c0_i32_0 : i32, i32
  }
  func.func @transform_13(%arg0: i32) -> (i32, i32) {
    %c0_i32 = arith.constant 0 : i32
    %c0_i32_0 = arith.constant 0 : i32
    %c0_i32_1 = arith.constant 0 : i32
    return %c0_i32, %c0_i32_0 : i32, i32
  }
  func.func @transform_14(%arg0: i32) -> (i32, i32) {
    %c0_i32 = arith.constant 0 : i32
    %c0_i32_0 = arith.constant 0 : i32
    %c0_i32_1 = arith.constant 0 : i32
    return %c0_i32, %c0_i32_0 : i32, i32
  }
  func.func @transform_15(%arg0: i32) -> (i32, i32, i32) {
    %c0_i32 = arith.constant 0 : i32
    %c0_i32_0 = arith.constant 0 : i32
    %c0_i32_1 = arith.constant 0 : i32
    return %arg0, %c0_i32, %c0_i32_0 : i32, i32, i32
  }
}

</mosaic_0001>

<bundles_post_ra>
// kernel: tpu_custom_call.1
= control target key start
LH: loop header
LB: loop body
LE: loop exit
PB: predicated region body
PF: predicated region fallthrough
CT: control target
= control target key end

     0   :  { %s6105_s0 = inlined_call_operand.vmem [shape: f32[2,16,3], index: 0, kind: input, shape index: {}]   ;;  %s6106_s1 = inlined_call_operand.hbm [shape: bf16[3,32], index: 1, kind: input, shape index: {}]   ;;  %s6107_s2 = inlined_call_operand.hbm [shape: bf16[3,32], index: 2, kind: input, shape index: {}]   ;;  %s6108_s3 = inlined_call_operand.hbm [shape: f32[1,32], index: 3, kind: input, shape index: {}]   ;;  %s6109_s4 = inlined_call_operand.hbm [shape: bf16[32,64], index: 4, kind: input, shape index: {}]   ;;  %s6110_s5 = inlined_call_operand.hbm [shape: f32[1,64], index: 5, kind: input, shape index: {}]   ;;  %s6111_s6 = inlined_call_operand.vmem [shape: bf16[64,64], index: 6, kind: input, shape index: {}]   ;;  %s6112_s7 = inlined_call_operand.hbm [shape: f32[1,64], index: 7, kind: input, shape index: {}]   ;;  %s6113_s8 = inlined_call_operand.vmem [shape: bf16[64,128], index: 8, kind: input, shape index: {}]   ;;  %s6114_s9 = inlined_call_operand.hbm [shape: bf16[64,128], index: 9, kind: input, shape index: {}]   ;;  %s6115_s10 = inlined_call_operand.vmem [shape: f32[1,128], index: 10, kind: input, shape index: {}]   ;;  %s6116_s11 = inlined_call_operand.hbm [shape: bf16[128,256], index: 11, kind: input, shape index: {}]   ;;  %s6117_s12 = inlined_call_operand.vmem [shape: f32[1,256], index: 12, kind: input, shape index: {}]   ;;  %s6118_s13 = inlined_call_operand.hbm [shape: bf16[256,1024], index: 13, kind: input, shape index: {}]   ;;  %s6119_s14 = inlined_call_operand.vmem [shape: f32[1,1024], index: 14, kind: input, shape index: {}]   ;;  %s6120_s15 = inlined_call_operand.hbm [shape: f32[2,1,1024], index: 15, kind: output, shape index: {}]  }
   0x1   :  { %6136 = sst [smem:[#allocation32_spill]] %s6107_s2 }
   0x2   :  { %6137 = sst [smem:[#allocation33_spill]] %s6109_s4 }
   0x3   :  { %6138 = sst [smem:[#allocation34_spill]] %s6120_s15 }
   0x4   :  { %20 = vsyncpa [#allocation3], 0 }
   0x5   :  { %21 = vsyncpa [#allocation6], 0 }
   0x6   :  { %22 = vsyncpa [#allocation9], 0 }
   0x7   :  { %23 = vsyncpa [#allocation12], 0 }
   0x8   :  { %24 = vsyncpa [#allocation15], 0 }
   0x9   :  { %25 = vsyncpa [#allocation4], 0 }
   0xa   :  { %27 = vsyncpa [#allocation4 + $0x1], 0  ;;  %s5185_s18 = smov 0   ;;  %s5187_s19 = smov 0  }
   0xb   :  { %s5189_s20 = smov 0   ;;  %s5191_s21 = smov 0  }
   0xc LB: > { %6139 = sst [smem:[#allocation24_spill]] %s5069_s18  ;;  %s5206_s22 = sadd.s32 4294967295, %s5081_s21   ;;  %s5081_s21 = sphi %s5191_s21, %s6175_s21   ;;  %s5077_s20 = sphi %s5189_s20, %s6178_s20   ;;  %s5073_s19 = sphi %s5187_s19, %s6177_s19   ;;  %s5069_s18 = sphi %s5185_s18, %s6176_s18  }
   0xd   : > { %6140 = sst [smem:[#allocation25_spill]] %s5073_s19  ;;  %s4043_s23 = sadd.s32 4294967294, %s5081_s21  }
   0xe   : > { %6141 = sst [smem:[#allocation26_spill]] %s5077_s20  ;;  %s5210_s24 = sadd.s32 1, %s5081_s21  }
   0xf   : > { %6142 = sst [smem:[#allocation27_spill]] %s5081_s21  ;;  %s360_s25 = sadd.s32 1, %s5077_s20 }
  0x10   : > { %6143 = sst [smem:[#allocation28_spill]] %s5210_s24  ;;  %s357_s26 = ssub.s32 %s5081_s21, %s5210_s24 }
  0x11   : > { %p370_p0 = scmp.ne.s32.totalorder %s5077_s20, %s5073_s19  ;;  %p358_p1 = scmp.eq.s32.totalorder %s357_s26, 0 }
  0x12   : > { %p371_p2 = scmp.eq.s32.totalorder %s5206_s22, 1  ;;  %p376_p3 = scmp.ne.s32.totalorder %s5073_s19, %s5069_s18 }
  0x13   : > { %p377_p4 = scmp.eq.s32.totalorder %s4043_s23, 1  ;;  %p4044_p7 = scmp.ge.s32.totalorder %s5081_s21, 1 }
  0x14   : > { %s5221_s27 = scalar_select %p358_p1, %s5077_s20, %s360_s25  }
  0x15   : > { %p5223_p5 = por %p371_p2, %p370_p0  ;;  %p5227_p6 = por %p377_p4, %p376_p3 }
  0x16   : > { %6144 = sst [smem:[#allocation29_spill]] %s5221_s27  ;;  %p384_p8 = scmp.lt.s32.totalorder %s5081_s21, 3 }
  0x17   : > { %s6145_s28 = scalar_select %p5223_p5, 1, 0 }
  0x18   : > { %s6147_s29 = scalar_select %p5227_p6, 1, 0 }
  0x19   : > { %6146 = sst [smem:[#allocation30_spill]] %s6145_s28  ;;  %p6128_p9 = scmp.eq.s32.totalorder %s5206_s22, 0 }
  0x1a   : > { %6148 = sst [smem:[#allocation31_spill]] %s6147_s29  ;;  %p5234_p10 = pnand %p4044_p7, %p384_p8 }
  0x1b   : > { %s5083_s16 = smov [#allocation5]   ;;  %s5084_s23 = smov [#allocation8]  }
  0x1c   : > { %s6149_s30 = scalar_select %p5234_p10, 1, 0 }
  0x1d   : > { %s408_s17 = sshll.u32 %s5083_s16, 4  ;;  %p4605_p11 = pneg %p5234_p10  ;;  %s409_s17 = int_to_ptr.vmem [resolvable:$true] %s408_s17 }
  0x1e   : > { %s429_s25 = sshll.u32 %s5084_s23, 4  ;;  %s5085_s27 = smov [#allocation11]   ;;  %s5246_s25 = int_to_ptr.vmem [resolvable:$true] %s429_s25 }
  0x1f   : > { %p5242_p12 = pnand %p6128_p9, %p4605_p11  ;;  %s5248_s20 = sshll.u32 %s5085_s27, 4  ;;  %s458_s20 = int_to_ptr.vmem [resolvable:$true] %s5248_s20 }
  0x20   : > { %s6151_s2 = sld [smem:[#allocation32_spill]] }
  0x21   : > { %p5258_p0 = pneg %p5242_p12 }
  0x26   : > { %s4747_s16 = scalar_lea.hbm %s6151_s2, 32 }
  0x27   : > { %p4748_p13 = scmp.ne.s32.totalorder %s6151_s2, %s4747_s16  ;;  %p4754_p3 = scmp.lt.u32.totalorder %s4747_s16, %s6151_s2 }
  0x29   : > { %p4750_p1 = pnand %p5258_p0, %p4748_p13 }
  0x2b   : > { %p4751_p2 = pneg %p4750_p1 }
  0x2d   : > { %p4756_p4 = pnand %p4754_p3, %p4751_p2 }
  0x2f   : > { %4759 = shalt.err (!%p4756_p4)
}
  0x30   : > { %s4760_s24 = scalar_lea.vmem %s409_s17, 32  ;;  %p4768_p9 = scmp.lt.s32.totalorder %s409_s17, %s409_s17 }
  0x31   : > { %p4761_p7 = scmp.ne.s32.totalorder %s409_s17, %s4760_s24  ;;  %p4769_p6 = scmp.lt.s32.totalorder %s4760_s24, %s4760_s24 }
  0x33   : > { %p4763_p8 = pnand %p4761_p7, %p5258_p0  ;;  %p4770_p5 = por %p4769_p6, %p4768_p9 }
  0x35   : > { %p4764_p11 = pneg %p4763_p8 }
  0x37   : > { %p4771_p10 = pnand %p4770_p5, %p4764_p11 }
  0x39   : > { %4774 = shalt.err (!%p4771_p10)
}
  0x3a   : > { %4611 = dma.hbm_to_vmem [thread:$0]  (!%p5242_p12), %s6151_s2, 32, %s409_s17, [#allocation6]  }
  0x3b   : > { %s6153_s4 = sld [smem:[#allocation33_spill]] }
  0x41   : > { %s4775_s16 = scalar_lea.hbm %s6153_s4, 256 }
  0x42   : > { %p4776_p13 = scmp.ne.s32.totalorder %s6153_s4, %s4775_s16  ;;  %p4782_p5 = scmp.lt.u32.totalorder %s4775_s16, %s6153_s4 }
  0x44   : > { %p4778_p1 = pnand %p4776_p13, %p5258_p0 }
  0x46   : > { %p4779_p6 = pneg %p4778_p1 }
  0x48   : > { %p4784_p9 = pnand %p4782_p5, %p4779_p6 }
  0x4a   : > { %4787 = shalt.err (!%p4784_p9)
}
  0x4b   : > { %s4788_s17 = scalar_lea.vmem %s5246_s25, 256  ;;  %p4796_p4 = scmp.lt.s32.totalorder %s5246_s25, %s5246_s25 }
  0x4c   : > { %p4789_p10 = scmp.ne.s32.totalorder %s5246_s25, %s4788_s17  ;;  %p4797_p7 = scmp.lt.s32.totalorder %s4788_s17, %s4788_s17 }
  0x4e   : > { %p4791_p2 = pnand %p4789_p10, %p5258_p0  ;;  %p4798_p8 = por %p4797_p7, %p4796_p4 }
  0x50   : > { %p4792_p3 = pneg %p4791_p2 }
  0x52   : > { %p4799_p11 = pnand %p4798_p8, %p4792_p3 }
  0x54   : > { %4802 = shalt.err (!%p4799_p11)
}
  0x55   : > { %s6134_s28 = smov 64   ;;  %s6135_s19 = smov 4  }
  0x56   : > { %4617 = dma.hbm_to_vmem [thread:$0]  (!%p5242_p12), %s6153_s4, 256, %s5246_s25, [#allocation9], %s6134_s28, %s6134_s28, %s6135_s19  }
  0x57   : > { %s4803_s16 = scalar_lea.hbm %s6112_s7, 16 }
  0x58   : > { %p4804_p13 = scmp.ne.s32.totalorder %s6112_s7, %s4803_s16  ;;  %p4810_p5 = scmp.lt.u32.totalorder %s4803_s16, %s6112_s7 }
  0x5a   : > { %p4806_p1 = pnand %p4804_p13, %p5258_p0 }
  0x5c   : > { %p4807_p6 = pneg %p4806_p1 }
  0x5e   : > { %p4812_p9 = pnand %p4810_p5, %p4807_p6 }
  0x60   : > { %4815 = shalt.err (!%p4812_p9)
}
  0x61   : > { %s4816_s18 = scalar_lea.vmem %s458_s20, 16  ;;  %s4823_s25 = scalar_lea.vmem %s458_s20, 32 }
  0x62   : > { %p4817_p10 = scmp.ne.s32.totalorder %s458_s20, %s4816_s18  ;;  %p4824_p4 = scmp.lt.s32.totalorder %s458_s20, %s458_s20 }
  0x63   : > { %p4825_p7 = scmp.lt.s32.totalorder %s4823_s25, %s4816_s18 }
  0x64   : > { %p4819_p2 = pnand %p4817_p10, %p5258_p0 }
  0x65   : > { %p4826_p8 = por %p4825_p7, %p4824_p4 }
  0x66   : > { %p4820_p3 = pneg %p4819_p2 }
  0x68   : > { %p4827_p11 = pnand %p4826_p8, %p4820_p3 }
  0x6a   : > { %4830 = shalt.err (!%p4827_p11)
}
  0x6b   : > { %4623 = dma.hbm_to_vmem [thread:$0]  (!%p5242_p12), %s6112_s7, 16, %s458_s20, [#allocation12]  }
  0x6c   : > { %s5088_s2 = smov [#allocation14]   ;;  %s4831_s24 = scalar_lea.hbm %s6116_s11, 2048 }
  0x6d   : > { %s486_s29 = sshll.u32 %s5088_s2, 4  ;;  %p4832_p13 = scmp.ne.s32.totalorder %s6116_s11, %s4831_s24  ;;  %s487_s29 = int_to_ptr.vmem [resolvable:$true] %s486_s29 }
  0x6e   : > { %p4838_p5 = scmp.lt.u32.totalorder %s4831_s24, %s6116_s11 }
  0x6f   : > { %p4834_p1 = pnand %p4832_p13, %p5258_p0 }
  0x71   : > { %p4835_p6 = pneg %p4834_p1 }
  0x73   : > { %p4840_p9 = pnand %p4838_p5, %p4835_p6 }
  0x75   : > { %4843 = shalt.err (!%p4840_p9)
}
  0x76   : > { %s4844_s20 = scalar_lea.vmem %s487_s29, 2048  ;;  %p4852_p4 = scmp.lt.s32.totalorder %s487_s29, %s487_s29 }
  0x77   : > { %p4845_p10 = scmp.ne.s32.totalorder %s487_s29, %s4844_s20  ;;  %p4853_p7 = scmp.lt.s32.totalorder %s4844_s20, %s4844_s20 }
  0x79   : > { %p4847_p2 = pnand %p4845_p10, %p5258_p0  ;;  %p4854_p8 = por %p4853_p7, %p4852_p4 }
  0x7b   : > { %p4848_p3 = pneg %p4847_p2 }
  0x7d   : > { %p4855_p11 = pnand %p4854_p8, %p4848_p3 }
  0x7f   : > { %4858 = shalt.err (!%p4855_p11)
}
  0x80   : > { %s5089_s28 = smov 128   ;;  %s5090_s21 = smov 8  }
  0x81   : > { %4629 = dma.hbm_to_vmem [thread:$0]  (!%p5242_p12), %s6116_s11, 2048, %s487_s29, [#allocation15], %s5089_s28, %s5089_s28, %s5090_s21  }
  0x82   : > { %s5091_s16 = smov [#allocation2]   ;;  %s5092_s24 = smov [#allocation7]  }
  0x83   : > { %s397_s27 = sshll.u32 %s5091_s16, 4  ;;  %s419_s17 = sshll.u32 %s5092_s24, 4  ;;  %s398_s27 = int_to_ptr.vmem [resolvable:$true] %s397_s27  ;;  %s5337_s17 = int_to_ptr.vmem [resolvable:$true] %s419_s17 }
  0x84   : > { %s4859_s20 = scalar_lea.hbm %s6106_s1, 32 }
  0x85   : > { %p4860_p13 = scmp.ne.s32.totalorder %s6106_s1, %s4859_s20  ;;  %p4866_p5 = scmp.lt.u32.totalorder %s4859_s20, %s6106_s1 }
  0x87   : > { %p4862_p1 = pnand %p4860_p13, %p5258_p0 }
  0x89   : > { %p4863_p6 = pneg %p4862_p1 }
  0x8b   : > { %p4868_p9 = pnand %p4866_p5, %p4863_p6 }
  0x8d   : > { %4871 = shalt.err (!%p4868_p9)
}
  0x8e   : > { %s4872_s28 = scalar_lea.vmem %s398_s27, 32  ;;  %p4880_p4 = scmp.lt.s32.totalorder %s398_s27, %s398_s27 }
  0x8f   : > { %p4873_p10 = scmp.ne.s32.totalorder %s398_s27, %s4872_s28  ;;  %p4881_p7 = scmp.lt.s32.totalorder %s4872_s28, %s4872_s28 }
  0x91   : > { %p4875_p2 = pnand %p4873_p10, %p5258_p0  ;;  %p4882_p8 = por %p4881_p7, %p4880_p4 }
  0x93   : > { %p4876_p3 = pneg %p4875_p2 }
  0x95   : > { %p4883_p11 = pnand %p4882_p8, %p4876_p3 }
  0x97   : > { %4886 = shalt.err (!%p4883_p11)
}
  0x98   : > { %4608 = dma.hbm_to_vmem [thread:$0]  (!%p5242_p12), %s6106_s1, 32, %s398_s27, [#allocation3]  }
  0x99   : > { %s4887_s16 = scalar_lea.hbm %s6108_s3, 16 }
  0x9a   : > { %p4888_p13 = scmp.ne.s32.totalorder %s6108_s3, %s4887_s16  ;;  %p4894_p5 = scmp.lt.u32.totalorder %s4887_s16, %s6108_s3 }
  0x9c   : > { %p4890_p1 = pnand %p4888_p13, %p5258_p0 }
  0x9e   : > { %p4891_p6 = pneg %p4890_p1 }
  0xa0   : > { %p4896_p9 = pnand %p4894_p5, %p4891_p6 }
  0xa2   : > { %4899 = shalt.err (!%p4896_p9)
}
  0xa3   : > { %s4900_s27 = scalar_lea.vmem %s5337_s17, 16  ;;  %s4907_s15 = scalar_lea.vmem %s5337_s17, 32 }
  0xa4   : > { %p4901_p10 = scmp.ne.s32.totalorder %s5337_s17, %s4900_s27  ;;  %p4908_p4 = scmp.lt.s32.totalorder %s5337_s17, %s5337_s17 }
  0xa5   : > { %p4909_p7 = scmp.lt.s32.totalorder %s4907_s15, %s4900_s27 }
  0xa6   : > { %p4903_p2 = pnand %p4901_p10, %p5258_p0 }
  0xa7   : > { %p4910_p8 = por %p4909_p7, %p4908_p4 }
  0xa8   : > { %p4904_p3 = pneg %p4903_p2 }
  0xaa   : > { %p4911_p11 = pnand %p4910_p8, %p4904_p3 }
  0xac   : > { %4914 = shalt.err (!%p4911_p11)
}
  0xad   : > { %4614 = dma.hbm_to_vmem [thread:$0]  (!%p5242_p12), %s6108_s3, 16, %s5337_s17, [#allocation6]  }
  0xae   : > { %s5093_s4 = smov [#allocation10]   ;;  %s5094_s21 = smov [#allocation13]  }
  0xaf   : > { %s443_s19 = sshll.u32 %s5093_s4, 4  ;;  %s470_s2 = sshll.u32 %s5094_s21, 4  ;;  %s444_s19 = int_to_ptr.vmem [resolvable:$true] %s443_s19  ;;  %s5381_s2 = int_to_ptr.vmem [resolvable:$true] %s470_s2 }
  0xb0   : > { %s4915_s18 = scalar_lea.hbm %s6110_s5, 16 }
  0xb1   : > { %p4916_p13 = scmp.ne.s32.totalorder %s6110_s5, %s4915_s18  ;;  %p4922_p5 = scmp.lt.u32.totalorder %s4915_s18, %s6110_s5 }
  0xb3   : > { %p4918_p1 = pnand %p4916_p13, %p5258_p0 }
  0xb5   : > { %p4919_p6 = pneg %p4918_p1 }
  0xb7   : > { %p4924_p9 = pnand %p4922_p5, %p4919_p6 }
  0xb9   : > { %4927 = shalt.err (!%p4924_p9)
}
  0xba   : > { %s4928_s15 = scalar_lea.vmem %s444_s19, 16  ;;  %s4935_s29 = scalar_lea.vmem %s444_s19, 32 }
  0xbb   : > { %p4929_p10 = scmp.ne.s32.totalorder %s444_s19, %s4928_s15  ;;  %p4936_p4 = scmp.lt.s32.totalorder %s444_s19, %s444_s19 }
  0xbc   : > { %p4937_p7 = scmp.lt.s32.totalorder %s4935_s29, %s4928_s15 }
  0xbd   : > { %p4931_p2 = pnand %p4929_p10, %p5258_p0 }
  0xbe   : > { %p4938_p8 = por %p4937_p7, %p4936_p4 }
  0xbf   : > { %p4932_p3 = pneg %p4931_p2 }
  0xc1   : > { %p4939_p11 = pnand %p4938_p8, %p4932_p3 }
  0xc3   : > { %4942 = shalt.err (!%p4939_p11)
}
  0xc4   : > { %4620 = dma.hbm_to_vmem [thread:$0]  (!%p5242_p12), %s6110_s5, 16, %s444_s19, [#allocation9]  }
  0xc5   : > { %s4943_s24 = scalar_lea.hbm %s6114_s9, 512 }
  0xc6   : > { %p4944_p13 = scmp.ne.s32.totalorder %s6114_s9, %s4943_s24  ;;  %p4950_p5 = scmp.lt.u32.totalorder %s4943_s24, %s6114_s9 }
  0xc8   : > { %p4946_p1 = pnand %p4944_p13, %p5258_p0 }
  0xca   : > { %p4947_p6 = pneg %p4946_p1 }
  0xcc   : > { %p4952_p9 = pnand %p4950_p5, %p4947_p6 }
  0xce   : > { %4955 = shalt.err (!%p4952_p9)
}
  0xcf   : > { %s4956_s19 = scalar_lea.vmem %s5381_s2, 512  ;;  %p4964_p4 = scmp.lt.s32.totalorder %s5381_s2, %s5381_s2 }
  0xd0   : > { %p4957_p10 = scmp.ne.s32.totalorder %s5381_s2, %s4956_s19  ;;  %p4965_p7 = scmp.lt.s32.totalorder %s4956_s19, %s4956_s19 }
  0xd2   : > { %p4959_p2 = pnand %p4957_p10, %p5258_p0  ;;  %p4966_p8 = por %p4965_p7, %p4964_p4 }
  0xd4   : > { %p4960_p3 = pneg %p4959_p2 }
  0xd6   : > { %p4967_p11 = pnand %p4966_p8, %p4960_p3 }
  0xd8   : > { %4970 = shalt.err (!%p4967_p11)
}
  0xd9   : > { %s6154_s17 = smov 4   ;;  %s6155_s15 = smov 64  }
  0xda   : > { %4626 = dma.hbm_to_vmem [thread:$0]  (!%p5242_p12), %s6114_s9, 512, %s5381_s2, [#allocation12], %s6155_s15, %s6155_s15, %s6154_s17  }
  0xdb   : > { %s5095_s4 = smov [#allocation16]   ;;  %s4971_s18 = scalar_lea.hbm %s6118_s13, 16384 }
  0xdc   : > { %s502_s21 = sshll.u32 %s5095_s4, 4  ;;  %p4972_p13 = scmp.ne.s32.totalorder %s6118_s13, %s4971_s18  ;;  %s503_s21 = int_to_ptr.vmem [resolvable:$true] %s502_s21 }
  0xdd   : > { %p4978_p5 = scmp.lt.u32.totalorder %s4971_s18, %s6118_s13 }
  0xde   : > { %p4974_p1 = pnand %p4972_p13, %p5258_p0 }
  0xe0   : > { %p4975_p6 = pneg %p4974_p1 }
  0xe2   : > { %p4980_p9 = pnand %p4978_p5, %p4975_p6 }
  0xe4   : > { %4983 = shalt.err (!%p4980_p9)
}
  0xe5   : > { %s4984_s2 = scalar_lea.vmem %s503_s21, 16384  ;;  %p4992_p4 = scmp.lt.s32.totalorder %s503_s21, %s503_s21 }
  0xe6   : > { %p4985_p10 = scmp.ne.s32.totalorder %s503_s21, %s4984_s2  ;;  %p4993_p7 = scmp.lt.s32.totalorder %s4984_s2, %s4984_s2 }
  0xe8   : > { %p4987_p2 = pnand %p4985_p10, %p5258_p0  ;;  %p4994_p8 = por %p4993_p7, %p4992_p4 }
  0xea   : > { %p4988_p3 = pneg %p4987_p2 }
  0xec   : > { %p4995_p11 = pnand %p4994_p8, %p4988_p3 }
  0xee   : > { %4998 = shalt.err (!%p4995_p11)
}
  0xef   : > { %s5096_s17 = smov 512   ;;  %s5097_s15 = smov 32  }
  0xf0   : > { %4632 = dma.hbm_to_vmem [thread:$0]  (!%p5242_p12), %s6118_s13, 16384, %s503_s21, [#allocation15], %s5096_s17, %s5096_s17, %s5097_s15  }
  0xf1   : > { %p6156_p13 = scmp.ne.s32.totalorder %s6149_s30, 0 }
  0xf2   : > { %p6157_p1 = scmp.eq.s32.totalorder (!%p6156_p13), %s5206_s22, 0 }
  0xf3   : > { %529 = sbr.rel (%p6156_p13) target bundleno = 5166 (0x142e), region = 80 }
  0xfa   : > { %5044 = dma.done.wait (%p6157_p1), [#allocation3], 32   ;;  %p6158_p0 = pmov %p6157_p1 }
  0xfc   : > { %5046 = vsyncadd (%p6158_p0), [#allocation3], 4294967264  ;;  %p6159_p6 = pmov %p6158_p0 }
  0xfd   : > { %p6160_p5 = pmov %p6158_p0 }
  0xfe   : > { %5048 = dma.done.wait (%p6159_p6), [#allocation6], 48  }
  0xff   : > { %5050 = vsyncadd (%p6160_p5), [#allocation6], 4294967248  ;;  %p6161_p9 = pmov %p6158_p0 }
 0x100   : > { %p6162_p12 = pmov %p6158_p0 }
 0x101   : > { %5052 = dma.done.wait (%p6161_p9), [#allocation9], 272  }
 0x102   : > { %5054 = vsyncadd (%p6162_p12), [#allocation9], 4294967024  ;;  %p6163_p10 = pmov %p6158_p0 }
 0x103   : > { %p6164_p2 = pmov %p6158_p0 }
 0x104   : > { %5056 = dma.done.wait (%p6163_p10), [#allocation12], 528  }
 0x105   : > { %5058 = vsyncadd (%p6164_p2), [#allocation12], 4294966768  ;;  %p6165_p3 = pmov %p6158_p0 }
 0x106   : > { %p6166_p4 = pmov %p6158_p0 }
 0x107   : > { %5060 = dma.done.wait (%p6165_p3), [#allocation15], 18432  }
 0x108   : > { %5062 = vsyncadd (%p6166_p4), [#allocation15], 4294948864  ;;  %p609_p7 = scmp.lt.s32.totalorder %s5206_s22, 1  ;;  %vm636_vm0 = vcmask 23552   ;;  %v5098_v0 = vmov 1.0   ;;  %v816_v15 = vlaneseq  ;;  %vm822_vm4 = vcmask 130048  }
 0x109   : > { %4355 = vmatprep.mubr.msk.f32.mxu1 %vm636_vm0, %v5098_v0  ;;  %vm4544_vm1 = vmpackc.low %vm636_vm0, %vm636_vm0  ;;  %v617_v41 = vld [vmem:[#allocation2] sm:$0x3]  ;;  %vm861_vm7 = vcmask 1040384   ;;  %v5099_v42 = vmov 0.0   ;;  %v618_v43 = vld [vmem:[#allocation5] sm:$0x3] }
 0x10a   : > { %s610_s30 = scalar_select %p609_p7, %s5206_s22, 1  ;;  %v5485_v20 = vand.u32 127, %v816_v15  ;;  %4365 = vmatprep.subr.bf16.mxu0 %v5099_v42  ;;  %vm862_vm8 = vcmask 1041408   ;;  %v5100_v44 = vmov 65535   ;;  %vm5101_vm9 = vmmov 0  }
 0x10b   : > { %v863_v45 = vsel %vm861_vm7, 4294967295, %v5100_v44  ;;  %4367 = vmatprep.mubr.msk.bf16.mxu0 %vm5101_vm9, %v5099_v42  ;;  %s6167_s27 = sld [smem:[#allocation25_spill]]  ;;  %s6168_s17 = sld [smem:[#allocation30_spill]] }
 0x10c   : > { %s4271_s26 = sshll.u32 %s610_s30, 4  ;;  %v864_v46 = vsel %vm862_vm8, %v863_v45, 0  ;;  %s4272_s15 = sshll.u32 %s5206_s22, 7 }
 0x10d   : > { %s613_s21 = scalar_lea.vmem %s6105_s0, %s4271_s26  ;;  %v866_v47 = vand.u32 %v864_v46, %v618_v43  ;;  %v916_v48 = vand.u32 %v864_v46, %v617_v41  ;;  %s6169_s23 = sld [smem:[#allocation34_spill]] }
 0x10e   : > { %v615_v1 = vld [vmem:[%s613_s21] sm:$0xff]  ;;  %v616_v2 = vld [vmem:[%s613_s21 + $0x8] sm:$0xff]  ;;  %s5104_s16 = smov [#allocation17]  }
 0x10f   : > { %v634_v3 = vmul.f32 %v615_v1, %v615_v1  ;;  %v635_v4 = vmul.f32 %v616_v2, %v616_v2  ;;  %v5476_v6 = vpack.c.bf16 %v616_v2, %v615_v1  ;;  %4366 = vmatpush3.bf16.msra.mxu0 %v866_v47  ;;  %s5003_s24 = sshll.u32 %s5104_s16, 4  ;;  %s5004_s24 = int_to_ptr.vmem [resolvable:$false] %s5003_s24 }
 0x110   : > { %4377 = vmatprep.subr.bf16.mxu0 %v5099_v42  ;;  %s5005_s18 = scalar_lea.vmem %s5004_s24, 256 }
 0x111   : > { %v4543_v5 = vpack.c.bf16 %v635_v4, %v634_v3  ;;  %s606_s19 = sand.u32 1, %s6167_s27   ;;  %p6170_p11 = scmp.ne.s32.totalorder %s6168_s17, 0 }
 0x112   : > { %4368 = vmatmul.mubr.msk.bf16.vlgmr.msra.gmra.mrb[0].mxu0 %vm636_vm0, %v5476_v6  ;;  %s4065_s2 = sshll.u32 %s606_s19, 3  ;;  %s3882_s22 = scalar_lea.sflag [#allocation4], %s606_s19 }
 0x113   : > { %4545 = vmatprep.subr.msk.bf16.mxu1 %vm4544_vm1, %v4543_v5  ;;  %4379 = vmatprep.mubr.msk.bf16.mxu0 %vm5101_vm9, %v5099_v42  ;;  %s608_s29 = scalar_lea.vmem [#allocation17], %s4065_s2  ;;  %s6063_s4 = scalar_lea.hbm %s6169_s23, %s4272_s15 }
 0x114   : > { %4548 = vmatpush3.bf16.xpose.msk.msra.mxu1 %vm4544_vm1, %v4543_v5  ;;  %s3896_s28 = sshll.u32 %s608_s29, 4  ;;  %s6065_s28 = int_to_ptr.vmem [resolvable:$true] %s3896_s28 }
 0x115   : > { %4551 = vmatprep.subr.msk.bf16.mxu1 %vm4544_vm1, %v5476_v6  ;;  %s4999_s21 = scalar_lea.vmem %s6065_s28, 128  ;;  %p5006_p0 = scmp.lt.s32.totalorder %s6065_s28, %s5004_s24 }
 0x116   : > { %p5000_p8 = scmp.ne.s32.totalorder %s6065_s28, %s4999_s21  ;;  %p5007_p6 = scmp.lt.s32.totalorder %s5005_s18, %s4999_s21 }
 0x118   : > { %p5001_p13 = pnand %p5000_p8, %p6170_p11  ;;  %p5008_p5 = por %p5007_p6, %p5006_p0 }
 0x11a   : > { %p5002_p1 = pneg %p5001_p13 }
 0x11b   : > { %4356 = vmatmul.mubr.msk.f32.vlgmr.msra.gmra.mrb[0].mxu1 %vm636_vm0, %v5098_v0 }
 0x11c   : > { %4554 = vmatpush3.bf16.xpose.msk.msra.mxu1 %vm4544_vm1, %v5476_v6  ;;  %4362 = vmatprep.mubr.msk.f32.mxu1 %vm636_vm0, %v615_v1  ;;  %p5009_p9 = pnand %p5008_p5, %p5002_p1 }
 0x11d   : > { %4371 = vmatprep.subr.bf16.mxu1 %v5099_v42 }
 0x123   : > { %4363 = vmatmul.mubr.msk.f32.vlgmr.msra.gmra.mrb[2].mxu1 %vm636_vm0, %v616_v2 }
 0x124   : > { %4373 = vmatprep.mubr.msk.bf16.mxu1 %vm5101_vm9, %v5099_v42  ;;  %4372 = vmatpush3.bf16.msra.mxu1 %v916_v48 }
 0x125   : > { %4383 = vmatprep.subr.bf16.mxu1 %v5099_v42 }
 0x127   : > { %4374 = vmatmul.mubr.msk.bf16.vlgmr.msra.gmra.mrb[4].mxu1 %vm636_vm0, %v5476_v6 }
 0x128   : > { %4387 = vmatprep.mubr.msk.bf16.mxu1 %vm5101_vm9, %v5099_v42 }
 0x1ee   : > { %v4357_v7 = vpop.f32.mrb[0].mxu1 }
 0x1ef   : > { %v712_v8 = vpop.f32.mrb[1].mxu1 }
 0x1f6   : > { %v4364_v9 = vpop.f32.mrb[2].mxu1 }
 0x1f7   : > { %v803_v10 = vmul.f32 2.0, %v4364_v9  ;;  %v793_v11 = vpop.f32.mrb[3].mxu1 }
 0x1f8   : > { %v802_v12 = vmul.f32 2.0, %v793_v11 }
 0x1f9   : > { %v805_v13 = vsub.f32 %v4357_v7, %v803_v10 }
 0x1fa   : > { %v804_v14 = vsub.f32 %v712_v8, %v802_v12  ;;  %v902_v12 = vpop.f32.mrb[0].mxu0  ;;  %v952_v41 = vpop.f32.mrb[4].mxu1 }
 0x1fb   : > { %v811_v16 = vxor.u32 4294967295, %v805_v13  ;;  %vm809_vm2 = vcmp.lt.s32.totalorder %v805_v13, 0  ;;  %v4375_v44 = vpop.f32.mrb[5].mxu1 }
 0x1fc   : > { %v810_v17 = vxor.u32 4294967295, %v804_v14  ;;  %vm808_vm3 = vcmp.lt.s32.totalorder %v804_v14, 0  ;;  %v955_v45 = vpop.f32.mrb[6].mxu1 }
 0x1fd   : > { %v813_v18 = vxor.u32 2147483648, %v811_v16  ;;  %v4376_v48 = vpop.f32.mrb[7].mxu1 }
 0x1fe   : > { %v812_v19 = vxor.u32 2147483648, %v810_v17 }
 0x1ff   : > { %v815_v21 = vsel %vm809_vm2, %v813_v18, %v805_v13  ;;  %v4369_v13 = vpop.f32.mrb[1].mxu0  ;;  %vm1066_vm2 = vcmask 261120  }
 0x200   : > { %v819_v22 = vand.u32 4294967280, %v815_v21  ;;  %v814_v23 = vsel %vm808_vm3, %v812_v19, %v804_v14  ;;  %v905_v14 = vpop.f32.mrb[2].mxu0 }
 0x201   : > { %v818_v24 = vand.u32 4294967280, %v814_v23  ;;  %v5509_v16 = vpack.c.bf16 %v905_v14, %v902_v12  ;;  %v4370_v17 = vpop.f32.mrb[3].mxu0 }
 0x202   : > { %v821_v25 = vor.u32 %v819_v22, %v5485_v20 }
 0x203   : > { %v820_v26 = vor.u32 %v818_v24, %v5485_v20  ;;  %4378 = vmatpush3.bf16.msra.mxu0 %v5509_v16 }
 0x204   : > { %v838_v28 = vsel %vm822_vm4, %v821_v25, 2147483647  ;;  %4391 = vmatprep.subr.bf16.mxu0 %v5099_v42 }
 0x205   : > { %v823_v27 = vsel %vm822_vm4, %v820_v26, 2147483647  ;;  %v840_v31 = vshra.s32 %v838_v28, 16  ;;  %v839_v36 = vand.u32 65535, %v838_v28 }
 0x206   : > { %v825_v29 = vshra.s32 %v823_v27, 16  ;;  %v824_v33 = vand.u32 65535, %v823_v27 }
 0x207   : > { %v842_v32 = vcvt.s32.f32 %v840_v31  ;;  %v841_v39 = vcvt.s32.f32 %v839_v36 }
 0x208   : > { %v827_v30 = vcvt.s32.f32 %v825_v29  ;;  %v826_v35 = vcvt.s32.f32 %v824_v33 }
 0x20a   : > { %828 = vmin.xlane.f32.xlu0 %v827_v30 }
 0x20e   : > { %843 = vmin.xlane.f32.xlu0 %v842_v32 }
 0x297   : > { %v829_v34 = vpop.xlane.xlu0 %828 }
 0x298   : > { %vm830_vm5 = vcmp.eq.f32.partialorder %v827_v30, %v829_v34  ;;  %v835_v49 = vcvt.f32.s32 %v829_v34 }
 0x299   : > { %v831_v37 = vsel %vm830_vm5, %v826_v35, inf }
 0x29a   : > { %832 = vmin.xlane.f32.xlu1 %v831_v37  ;;  %v836_v51 = vshll.u32 %v835_v49, 16 }
 0x29b   : > { %v844_v38 = vpop.xlane.xlu0 %843 }
 0x29c   : > { %vm845_vm6 = vcmp.eq.f32.partialorder %v842_v32, %v844_v38  ;;  %v850_v52 = vcvt.f32.s32 %v844_v38 }
 0x29d   : > { %v846_v40 = vsel %vm845_vm6, %v841_v39, inf  ;;  %vm1144_vm6 = vcmask 523264  }
 0x29e   : > { %847 = vmin.xlane.f32.xlu1 %v846_v40  ;;  %v851_v56 = vshll.u32 %v850_v52, 16  ;;  %v4077_v40 = vld [vmem:[#allocation7] ss:$0 sm:$0xff] }
 0x29f   : > { %v953_v43 = vadd.f32 %v4077_v40, %v952_v41  ;;  %v956_v47 = vadd.f32 %v4077_v40, %v955_v45 }
 0x2a1   : > { %v5526_v46 = vsub.f32 %v953_v43, %v902_v12  ;;  %v5528_v49 = vsub.f32 %v956_v47, %v905_v14 }
 0x327   : > { %v833_v50 = vpop.xlane.xlu1 %832 }
 0x328   : > { %v834_v53 = vcvt.f32.s32 %v833_v50  ;;  %v5530_v50 = vld [vmem:[#allocation8] sm:$0xff]  }
 0x329   : > { %4384 = vmatpush3.bf16.msra.mxu1 %v5530_v50 }
 0x32a   : > { %v837_v54 = vadd.s32 %v836_v51, %v834_v53  ;;  %4385 = vmatprep.subr.bf16.mxu1 %v5099_v42  ;;  %v5534_v51 = vld [vmem:[#allocation8 + $0x8] sm:$0xff]  }
 0x32b   : > { %v848_v55 = vpop.xlane.xlu1 %847 }
 0x32c   : > { %vm853_vm10 = vcmp.eq.s32.totalorder %v820_v26, %v837_v54  ;;  %v849_v57 = vcvt.f32.s32 %v848_v55 }
 0x32d   : > { %v855_v58 = vsel %vm853_vm10, 2147483647, %v820_v26  ;;  %4386 = vmatpush3.bf16.msra.mxu1 %v5534_v51 }
 0x32e   : > { %v852_v59 = vadd.s32 %v851_v56, %v849_v57  ;;  %v962_v60 = vsel %vm822_vm4, %v855_v58, 2147483647  ;;  %4403 = vmatprep.subr.bf16.mxu1 %v5099_v42 }
 0x32f   : > { %v964_v61 = vshra.s32 %v962_v60, 16  ;;  %v963_v4 = vand.u32 65535, %v962_v60  ;;  %v5541_v60 = vld [vmem:[%s6111_s6] sm:$0xff]  }
 0x330   : > { %vm854_vm11 = vcmp.eq.s32.totalorder %v821_v25, %v852_v59 }
 0x331   : > { %v966_v62 = vcvt.s32.f32 %v964_v61  ;;  %v856_v63 = vsel %vm854_vm11, 2147483647, %v821_v25  ;;  %v965_v6 = vcvt.s32.f32 %v963_v4  ;;  %v5547_v61 = vld [vmem:[%s6111_s6 + $0x8] sm:$0xff]  }
 0x332   : > { %v977_v1 = vsel %vm822_vm4, %v856_v63, 2147483647 }
 0x333   : > { %967 = vmin.xlane.f32.xlu0 %v966_v62  ;;  %v979_v2 = vshra.s32 %v977_v1, 16  ;;  %v978_v7 = vand.u32 65535, %v977_v1 }
 0x335   : > { %v981_v3 = vcvt.s32.f32 %v979_v2  ;;  %v980_v10 = vcvt.s32.f32 %v978_v7 }
 0x337   : > { %982 = vmin.xlane.f32.xlu1 %v981_v3 }
 0x3c0   : > { %v968_v5 = vpop.xlane.xlu0 %967 }
 0x3c1   : > { %vm969_vm12 = vcmp.eq.f32.partialorder %v966_v62, %v968_v5  ;;  %v974_v18 = vcvt.f32.s32 %v968_v5 }
 0x3c2   : > { %v970_v8 = vsel %vm969_vm12, %v965_v6, inf }
 0x3c3   : > { %971 = vmin.xlane.f32.xlu0 %v970_v8  ;;  %v975_v21 = vshll.u32 %v974_v18, 16 }
 0x3c4   : > { %v983_v9 = vpop.xlane.xlu1 %982 }
 0x3c5   : > { %vm984_vm13 = vcmp.eq.f32.partialorder %v981_v3, %v983_v9  ;;  %v989_v22 = vcvt.f32.s32 %v983_v9 }
 0x3c6   : > { %v985_v11 = vsel %vm984_vm13, %v980_v10, inf }
 0x3c7   : > { %986 = vmin.xlane.f32.xlu1 %v985_v11  ;;  %v990_v26 = vshll.u32 %v989_v22, 16 }
 0x450   : > { %v972_v19 = vpop.xlane.xlu0 %971 }
 0x451   : > { %v973_v23 = vcvt.f32.s32 %v972_v19 }
 0x453   : > { %v976_v24 = vadd.s32 %v975_v21, %v973_v23 }
 0x454   : > { %v987_v25 = vpop.xlane.xlu1 %986 }
 0x455   : > { %vm992_vm14 = vcmp.eq.s32.totalorder %v855_v58, %v976_v24  ;;  %v988_v27 = vcvt.f32.s32 %v987_v25 }
 0x456   : > { %v5513_v28 = vsel %vm992_vm14, 2147483647, %v855_v58  ;;  %v996_v32 = vsel %vm992_vm14, 1.0, %v5099_v42 }
 0x457   : > { %v991_v29 = vadd.s32 %v990_v26, %v988_v27  ;;  %v1193_v30 = vsel %vm822_vm4, %v5513_v28, 2147483647 }
 0x458   : > { %v1195_v31 = vshra.s32 %v1193_v30, 16  ;;  %v1194_v52 = vand.u32 65535, %v1193_v30 }
 0x459   : > { %vm993_vm15 = vcmp.eq.s32.totalorder %v856_v63, %v991_v29 }
 0x45a   : > { %v997_v33 = vsel %vm993_vm15, 1.0, %v5099_v42  ;;  %v1197_v34 = vcvt.s32.f32 %v1195_v31  ;;  %v5519_v35 = vsel %vm993_vm15, 2147483647, %v856_v63  ;;  %v1196_v54 = vcvt.s32.f32 %v1194_v52 }
 0x45b   : > { %v998_v36 = vpack.c.bf16 %v997_v33, %v996_v32  ;;  %v1208_v37 = vsel %vm822_vm4, %v5519_v35, 2147483647  ;;  %v5583_v32 = vld [vmem:[%s6111_s6 + $0x10] sm:$0xff]   ;;  %v5590_v33 = vld [vmem:[%s6111_s6 + $0x18] sm:$0xff]  }
 0x45c   : > { %1198 = vmin.xlane.f32.xlu0 %v1197_v34  ;;  %v1210_v38 = vshra.s32 %v1208_v37, 16  ;;  %v1209_v55 = vand.u32 65535, %v1208_v37 }
 0x45d   : > { %4380 = vmatmul.mubr.msk.bf16.vlgmr.msra.gmra.mrb[4].mxu0 %vm822_vm4, %v998_v36 }
 0x45e   : > { %v1212_v39 = vcvt.s32.f32 %v1210_v38  ;;  %4399 = vmatprep.mubr.msk.bf16.mxu0 %vm5101_vm9, %v5099_v42  ;;  %v1211_v58 = vcvt.s32.f32 %v1209_v55  ;;  %4392 = vmatpush3.bf16.msra.mxu0 %v5541_v60 }
 0x45f   : > { %4393 = vmatprep.subr.bf16.mxu0 %v5099_v42 }
 0x460   : > { %1213 = vmin.xlane.f32.xlu1 %v1212_v39 }
 0x462   : > { %4394 = vmatpush3.bf16.msra.mxu0 %v5547_v61 }
 0x463   : > { %4395 = vmatprep.subr.bf16.mxu0 %v5099_v42 }
 0x466   : > { %4396 = vmatpush3.bf16.msra.mxu0 %v5583_v32 }
 0x467   : > { %4397 = vmatprep.subr.bf16.mxu0 %v5099_v42 }
 0x46a   : > { %4398 = vmatpush3.bf16.msra.mxu0 %v5590_v33 }
 0x46b   : > { %4417 = vmatprep.subr.bf16.mxu0 %v5099_v42 }
 0x4e9   : > { %v1199_v53 = vpop.xlane.xlu0 %1198 }
 0x4ea   : > { %vm1200_vm0 = vcmp.eq.f32.partialorder %v1197_v34, %v1199_v53  ;;  %v1205_v8 = vcvt.f32.s32 %v1199_v53  ;;  %v5594_v34 = vld [vmem:[#allocation10] ss:$0 sm:$0xff] }
 0x4eb   : > { %v1201_v56 = vsel %vm1200_vm0, %v1196_v54, inf  ;;  %vm4556_vm0 = vmpackc.low %vm1144_vm6, %vm1144_vm6 }
 0x4ec   : > { %1202 = vmin.xlane.f32.xlu0 %v1201_v56  ;;  %v1206_v10 = vshll.u32 %v1205_v8, 16 }
 0x4ed   : > { %v1214_v57 = vpop.xlane.xlu1 %1213 }
 0x4ee   : > { %vm1215_vm1 = vcmp.eq.f32.partialorder %v1212_v39, %v1214_v57  ;;  %v1220_v11 = vcvt.f32.s32 %v1214_v57 }
 0x4ef   : > { %v1216_v59 = vsel %vm1215_vm1, %v1211_v58, inf }
 0x4f0   : > { %1217 = vmin.xlane.f32.xlu1 %v1216_v59  ;;  %v1221_v17 = vshll.u32 %v1220_v11, 16 }
 0x530   : > { %v1036_v62 = vpop.f32.mrb[4].mxu0 }
 0x531   : > { %v1043_v63 = vadd.f32 %v1036_v62, %v5526_v46  ;;  %v4381_v1 = vpop.f32.mrb[5].mxu0 }
 0x532   : > { %v1039_v2 = vpop.f32.mrb[6].mxu0 }
 0x533   : > { %v1044_v3 = vadd.f32 %v1039_v2, %v5528_v49  ;;  %v4382_v4 = vpop.f32.mrb[7].mxu0  ;;  %v1045_v5 = vmax.f32 %v1043_v63, 0.0 }
 0x535   : > { %v1046_v6 = vmax.f32 %v1044_v3, 0.0 }
 0x537   : > { %v1047_v7 = vpack.c.bf16 %v1046_v6, %v1045_v5 }
 0x539   : > { %4388 = vmatmul.mubr.msk.bf16.vlgmr.msra.gmra.mrb[8].mxu1 %vm1066_vm2, %v1047_v7 }
 0x53a   : > { %4404 = vmatpush3.bf16.msra.mxu1 %v5509_v16  ;;  %4405 = vmatprep.mubr.msk.bf16.mxu1 %vm5101_vm9, %v5099_v42 }
 0x53b   : > { %4409 = vmatprep.subr.bf16.mxu1 %v5099_v42 }
 0x579   : > { %v1203_v9 = vpop.xlane.xlu0 %1202 }
 0x57a   : > { %v1204_v12 = vcvt.f32.s32 %v1203_v9 }
 0x57c   : > { %v1207_v13 = vadd.s32 %v1206_v10, %v1204_v12 }
 0x57d   : > { %v1218_v14 = vpop.xlane.xlu1 %1217 }
 0x57e   : > { %vm1223_vm3 = vcmp.eq.s32.totalorder %v5513_v28, %v1207_v13  ;;  %v1219_v18 = vcvt.f32.s32 %v1218_v14 }
 0x57f   : > { %v5561_v19 = vsel %vm1223_vm3, 2147483647, %v5513_v28  ;;  %v1227_v24 = vsel %vm1223_vm3, 1.0, %v5099_v42 }
 0x580   : > { %v1222_v21 = vadd.s32 %v1221_v17, %v1219_v18  ;;  %v1374_v22 = vsel %vm822_vm4, %v5561_v19, 2147483647 }
 0x581   : > { %v1376_v23 = vshra.s32 %v1374_v22, 16  ;;  %v1375_v39 = vand.u32 65535, %v1374_v22 }
 0x582   : > { %vm1224_vm5 = vcmp.eq.s32.totalorder %v5519_v35, %v1222_v21 }
 0x583   : > { %v1228_v25 = vsel %vm1224_vm5, 1.0, %v5099_v42  ;;  %v1378_v26 = vcvt.s32.f32 %v1376_v23  ;;  %v5569_v27 = vsel %vm1224_vm5, 2147483647, %v5519_v35  ;;  %v1377_v47 = vcvt.s32.f32 %v1375_v39 }
 0x584   : > { %v1229_v29 = vpack.c.bf16 %v1228_v25, %v1227_v24  ;;  %v1389_v28 = vsel %vm822_vm4, %v5569_v27, 2147483647 }
 0x585   : > { %1379 = vmin.xlane.f32.xlu0 %v1378_v26  ;;  %v1391_v30 = vshra.s32 %v1389_v28, 16  ;;  %v1390_v48 = vand.u32 65535, %v1389_v28 }
 0x586   : > { %4406 = vmatmul.mubr.msk.bf16.vlgmr.msra.gmra.mrb[12].mxu1 %vm822_vm4, %v1229_v29 }
 0x587   : > { %v1393_v31 = vcvt.s32.f32 %v1391_v30  ;;  %4410 = vmatpush3.bf16.msra.mxu1 %v5530_v50  ;;  %4413 = vmatprep.mubr.msk.bf16.mxu1 %vm5101_vm9, %v5099_v42  ;;  %v1392_v55 = vcvt.s32.f32 %v1390_v48 }
 0x588   : > { %4411 = vmatprep.subr.bf16.mxu1 %v5099_v42 }
 0x589   : > { %1394 = vmin.xlane.f32.xlu1 %v1393_v31 }
 0x58b   : > { %4412 = vmatpush3.bf16.msra.mxu1 %v5534_v51 }
 0x58c   : > { %4429 = vmatprep.subr.bf16.mxu1 %v5099_v42 }
 0x60c   : > { %v1104_v35 = vpop.f32.mrb[8].mxu1 }
 0x60d   : > { %v1105_v36 = vadd.f32 %v5594_v34, %v1104_v35  ;;  %v4389_v37 = vpop.f32.mrb[9].mxu1 }
 0x60e   : > { %v1107_v38 = vpop.f32.mrb[10].mxu1 }
 0x60f   : > { %v1108_v40 = vadd.f32 %v5594_v34, %v1107_v38  ;;  %v4390_v41 = vpop.f32.mrb[11].mxu1  ;;  %v1111_v43 = vmax.f32 %v1105_v36, 0.0 }
 0x611   : > { %v1112_v44 = vmax.f32 %v1108_v40, 0.0 }
 0x612   : > { %v1380_v45 = vpop.xlane.xlu0 %1379 }
 0x613   : > { %v1113_v52 = vpack.c.bf16 %v1112_v44, %v1111_v43  ;;  %vm1381_vm7 = vcmp.eq.f32.partialorder %v1378_v26, %v1380_v45  ;;  %v1386_v5 = vcvt.f32.s32 %v1380_v45 }
 0x614   : > { %v1382_v53 = vsel %vm1381_vm7, %v1377_v47, inf }
 0x615   : > { %1383 = vmin.xlane.f32.xlu0 %v1382_v53  ;;  %4400 = vmatmul.mubr.msk.bf16.vlgmr.msra.gmra.mrb[8].mxu0 %vm1144_vm6, %v1113_v52  ;;  %v1387_v7 = vshll.u32 %v1386_v5, 16 }
 0x616   : > { %v1395_v54 = vpop.xlane.xlu1 %1394  ;;  %4418 = vmatpush3.bf16.msra.mxu0 %v5541_v60  ;;  %4425 = vmatprep.mubr.msk.bf16.mxu0 %vm5101_vm9, %v5099_v42 }
 0x617   : > { %vm1396_vm8 = vcmp.eq.f32.partialorder %v1393_v31, %v1395_v54  ;;  %4419 = vmatprep.subr.bf16.mxu0 %v5099_v42  ;;  %v1401_v8 = vcvt.f32.s32 %v1395_v54 }
 0x618   : > { %v1397_v56 = vsel %vm1396_vm8, %v1392_v55, inf }
 0x619   : > { %1398 = vmin.xlane.f32.xlu1 %v1397_v56  ;;  %v1402_v12 = vshll.u32 %v1401_v8, 16 }
 0x61a   : > { %4420 = vmatpush3.bf16.msra.mxu0 %v5547_v61 }
 0x61b   : > { %4421 = vmatprep.subr.bf16.mxu0 %v5099_v42 }
 0x61e   : > { %4422 = vmatpush3.bf16.msra.mxu0 %v5583_v32 }
 0x61f   : > { %4423 = vmatprep.subr.bf16.mxu0 %v5099_v42 }
 0x622   : > { %4424 = vmatpush3.bf16.msra.mxu0 %v5590_v33 }
 0x623   : > { %4443 = vmatprep.subr.bf16.mxu0 %v5099_v42 }
 0x659   : > { %v1267_v57 = vpop.f32.mrb[12].mxu1 }
 0x65a   : > { %v1274_v58 = vadd.f32 %v1267_v57, %v5526_v46  ;;  %v4407_v59 = vpop.f32.mrb[13].mxu1 }
 0x65b   : > { %v1270_v62 = vpop.f32.mrb[14].mxu1 }
 0x65c   : > { %v1275_v63 = vadd.f32 %v1270_v62, %v5528_v49  ;;  %v4408_v1 = vpop.f32.mrb[15].mxu1  ;;  %v1276_v2 = vmax.f32 %v1274_v58, 0.0 }
 0x65e   : > { %v1277_v3 = vmax.f32 %v1275_v63, 0.0 }
 0x660   : > { %v1278_v4 = vpack.c.bf16 %v1277_v3, %v1276_v2 }
 0x662   : > { %4414 = vmatmul.mubr.msk.bf16.vlgmr.msra.gmra.mrb[16].mxu1 %vm1066_vm2, %v1278_v4 }
 0x663   : > { %4430 = vmatpush3.bf16.msra.mxu1 %v5509_v16  ;;  %4431 = vmatprep.mubr.msk.bf16.mxu1 %vm5101_vm9, %v5099_v42 }
 0x664   : > { %4435 = vmatprep.subr.bf16.mxu1 %v5099_v42 }
 0x6a2   : > { %v1384_v6 = vpop.xlane.xlu0 %1383 }
 0x6a3   : > { %v1385_v9 = vcvt.f32.s32 %v1384_v6 }
 0x6a5   : > { %v1388_v10 = vadd.s32 %v1387_v7, %v1385_v9 }
 0x6a6   : > { %v1399_v11 = vpop.xlane.xlu1 %1398 }
 0x6a7   : > { %vm1404_vm10 = vcmp.eq.s32.totalorder %v5561_v19, %v1388_v10  ;;  %v1400_v13 = vcvt.f32.s32 %v1399_v11 }
 0x6a8   : > { %v5618_v14 = vsel %vm1404_vm10, 2147483647, %v5561_v19  ;;  %v1408_v22 = vsel %vm1404_vm10, 1.0, %v5099_v42 }
 0x6a9   : > { %v1403_v17 = vadd.s32 %v1402_v12, %v1400_v13  ;;  %v1555_v18 = vsel %vm822_vm4, %v5618_v14, 2147483647 }
 0x6aa   : > { %v1557_v21 = vshra.s32 %v1555_v18, 16  ;;  %v1556_v40 = vand.u32 65535, %v1555_v18 }
 0x6ab   : > { %vm1405_vm11 = vcmp.eq.s32.totalorder %v5569_v27, %v1403_v17 }
 0x6ac   : > { %v1409_v23 = vsel %vm1405_vm11, 1.0, %v5099_v42  ;;  %v1559_v24 = vcvt.s32.f32 %v1557_v21  ;;  %v5626_v25 = vsel %vm1405_vm11, 2147483647, %v5569_v27  ;;  %v1558_v48 = vcvt.s32.f32 %v1556_v40 }
 0x6ad   : > { %v1410_v26 = vpack.c.bf16 %v1409_v23, %v1408_v22  ;;  %v1570_v19 = vsel %vm822_vm4, %v5626_v25, 2147483647 }
 0x6ae   : > { %1560 = vmin.xlane.f32.xlu0 %v1559_v24  ;;  %v1572_v29 = vshra.s32 %v1570_v19, 16  ;;  %v1571_v52 = vand.u32 65535, %v1570_v19 }
 0x6af   : > { %4432 = vmatmul.mubr.msk.bf16.vlgmr.msra.gmra.mrb[20].mxu1 %vm822_vm4, %v1410_v26 }
 0x6b0   : > { %v1574_v28 = vcvt.s32.f32 %v1572_v29  ;;  %4436 = vmatpush3.bf16.msra.mxu1 %v5530_v50  ;;  %4439 = vmatprep.mubr.msk.bf16.mxu1 %vm5101_vm9, %v5099_v42  ;;  %v1573_v56 = vcvt.s32.f32 %v1571_v52 }
 0x6b1   : > { %4437 = vmatprep.subr.bf16.mxu1 %v5099_v42 }
 0x6b2   : > { %1575 = vmin.xlane.f32.xlu1 %v1574_v28 }
 0x6b4   : > { %4438 = vmatpush3.bf16.msra.mxu1 %v5534_v51 }
 0x6b5   : > { %4455 = vmatprep.subr.bf16.mxu1 %v5099_v42 }
 0x6e8   : > { %v5637_v27 = vpop.f32.mrb[8].mxu0 }
 0x6e9   : > { %v4401_v30 = vpop.f32.mrb[9].mxu0 }
 0x6ea   : > { %v5639_v31 = vpop.f32.mrb[10].mxu0 }
 0x6eb   : > { %v4402_v35 = vpop.f32.mrb[11].mxu0 }
 0x735   : > { %v1316_v36 = vpop.f32.mrb[16].mxu1 }
 0x736   : > { %v1317_v37 = vadd.f32 %v5594_v34, %v1316_v36  ;;  %v4415_v38 = vpop.f32.mrb[17].mxu1 }
 0x737   : > { %v1319_v39 = vpop.f32.mrb[18].mxu1 }
 0x738   : > { %v1320_v41 = vadd.f32 %v5594_v34, %v1319_v39  ;;  %v4416_v43 = vpop.f32.mrb[19].mxu1  ;;  %v1323_v44 = vmax.f32 %v1317_v37, 0.0 }
 0x73a   : > { %v1324_v45 = vmax.f32 %v1320_v41, 0.0 }
 0x73b   : > { %v1561_v47 = vpop.xlane.xlu0 %1560 }
 0x73c   : > { %v1325_v53 = vpack.c.bf16 %v1324_v45, %v1323_v44  ;;  %vm1562_vm12 = vcmp.eq.f32.partialorder %v1559_v24, %v1561_v47  ;;  %v1567_v6 = vcvt.f32.s32 %v1561_v47 }
 0x73d   : > { %v1563_v54 = vsel %vm1562_vm12, %v1558_v48, inf }
 0x73e   : > { %1564 = vmin.xlane.f32.xlu0 %v1563_v54  ;;  %4426 = vmatmul.mubr.msk.bf16.vlgmr.msra.gmra.mrb[12].mxu0 %vm1144_vm6, %v1325_v53  ;;  %v1568_v8 = vshll.u32 %v1567_v6, 16 }
 0x73f   : > { %v1576_v55 = vpop.xlane.xlu1 %1575  ;;  %4444 = vmatpush3.bf16.msra.mxu0 %v5541_v60  ;;  %4451 = vmatprep.mubr.msk.bf16.mxu0 %vm5101_vm9, %v5099_v42 }
 0x740   : > { %vm1577_vm13 = vcmp.eq.f32.partialorder %v1574_v28, %v1576_v55  ;;  %4445 = vmatprep.subr.bf16.mxu0 %v5099_v42  ;;  %v1582_v9 = vcvt.f32.s32 %v1576_v55 }
 0x741   : > { %v1578_v57 = vsel %vm1577_vm13, %v1573_v56, inf }
 0x742   : > { %1579 = vmin.xlane.f32.xlu1 %v1578_v57  ;;  %v1583_v13 = vshll.u32 %v1582_v9, 16 }
 0x743   : > { %4446 = vmatpush3.bf16.msra.mxu0 %v5547_v61 }
 0x744   : > { %4447 = vmatprep.subr.bf16.mxu0 %v5099_v42 }
 0x747   : > { %4448 = vmatpush3.bf16.msra.mxu0 %v5583_v32 }
 0x748   : > { %4449 = vmatprep.subr.bf16.mxu0 %v5099_v42 }
 0x74b   : > { %4450 = vmatpush3.bf16.msra.mxu0 %v5590_v33 }
 0x74c   : > { %4469 = vmatprep.subr.bf16.mxu0 %v5099_v42 }
 0x782   : > { %v1448_v58 = vpop.f32.mrb[20].mxu1 }
 0x783   : > { %v1455_v59 = vadd.f32 %v1448_v58, %v5526_v46  ;;  %v4433_v62 = vpop.f32.mrb[21].mxu1 }
 0x784   : > { %v1451_v63 = vpop.f32.mrb[22].mxu1 }
 0x785   : > { %v1456_v1 = vadd.f32 %v1451_v63, %v5528_v49  ;;  %v4434_v2 = vpop.f32.mrb[23].mxu1  ;;  %v1457_v3 = vmax.f32 %v1455_v59, 0.0 }
 0x787   : > { %v1458_v4 = vmax.f32 %v1456_v1, 0.0 }
 0x789   : > { %v1459_v5 = vpack.c.bf16 %v1458_v4, %v1457_v3 }
 0x78b   : > { %4440 = vmatmul.mubr.msk.bf16.vlgmr.msra.gmra.mrb[24].mxu1 %vm1066_vm2, %v1459_v5 }
 0x78c   : > { %4456 = vmatpush3.bf16.msra.mxu1 %v5509_v16  ;;  %4457 = vmatprep.mubr.msk.bf16.mxu1 %vm5101_vm9, %v5099_v42 }
 0x78d   : > { %4461 = vmatprep.subr.bf16.mxu1 %v5099_v42 }
 0x7cb   : > { %v1565_v7 = vpop.xlane.xlu0 %1564 }
 0x7cc   : > { %v1566_v10 = vcvt.f32.s32 %v1565_v7 }
 0x7ce   : > { %v1569_v11 = vadd.s32 %v1568_v8, %v1566_v10 }
 0x7cf   : > { %v1580_v12 = vpop.xlane.xlu1 %1579 }
 0x7d0   : > { %v1581_v17 = vcvt.f32.s32 %v1580_v12  ;;  %vm1585_vm14 = vcmp.eq.s32.totalorder %v5618_v14, %v1569_v11  ;;  %v5671_v14 = vld [vmem:[#allocation11] ss:$0 sm:$0xff] }
 0x7d1   : > { %v1587_v16 = vsel %vm1585_vm14, 1.0, %v5099_v42  ;;  %v1183_v23 = vadd.f32 %v5671_v14, %v5637_v27  ;;  %v1186_v24 = vadd.f32 %v5671_v14, %v5639_v31 }
 0x7d2   : > { %v1584_v18 = vadd.s32 %v1583_v13, %v1581_v17  ;;  %v4715_v13 = vld [vmem:[#allocation13] sm:$0xff]  }
 0x7d3   : > { %v1190_v19 = vmax.f32 %v1186_v24, 0.0 }
 0x7d4   : > { %vm1586_vm15 = vcmp.eq.s32.totalorder %v5626_v25, %v1584_v18  ;;  %v1189_v25 = vmax.f32 %v1183_v23, 0.0  ;;  %v4716_v18 = vld [vmem:[#allocation13 + $0x8] sm:$0xff]  }
 0x7d5   : > { %v1588_v21 = vsel %vm1586_vm15, 1.0, %v5099_v42  ;;  %v1192_v37 = vmax.f32 %v1190_v19, 0.0 }
 0x7d6   : > { %v1589_v22 = vpack.c.bf16 %v1588_v21, %v1587_v16  ;;  %v1191_v30 = vmax.f32 %v1189_v25, 0.0  ;;  %v4717_v16 = vld [vmem:[#allocation13 + $0x10] sm:$0xff]  }
 0x7d8   : > { %4458 = vmatmul.mubr.msk.bf16.vlgmr.msra.gmra.mrb[28].mxu1 %vm822_vm4, %v1589_v22 }
 0x7d9   : > { %4462 = vmatpush3.bf16.msra.mxu1 %v5530_v50  ;;  %4465 = vmatprep.mubr.msk.bf16.mxu1 %vm5101_vm9, %v5099_v42 }
 0x7da   : > { %4463 = vmatprep.subr.bf16.mxu1 %v5099_v42 }
 0x7dd   : > { %4464 = vmatpush3.bf16.msra.mxu1 %v5534_v51 }
 0x811   : > { %v1363_v26 = vpop.f32.mrb[12].mxu0 }
 0x812   : > { %v1364_v50 = vadd.f32 %v5671_v14, %v1363_v26  ;;  %v4427_v29 = vpop.f32.mrb[13].mxu0 }
 0x813   : > { %v1366_v28 = vpop.f32.mrb[14].mxu0 }
 0x814   : > { %v1370_v35 = vmax.f32 %v1364_v50, 0.0  ;;  %v1367_v36 = vadd.f32 %v5671_v14, %v1366_v28  ;;  %v4428_v51 = vpop.f32.mrb[15].mxu0 }
 0x816   : > { %v1372_v38 = vmax.f32 %v1191_v30, %v1370_v35  ;;  %v1371_v39 = vmax.f32 %v1367_v36, 0.0 }
 0x818   : > { %v1373_v40 = vmax.f32 %v1192_v37, %v1371_v39  ;;  %v4720_v37 = vld [vmem:[%s6113_s8 + $0x8] sm:$0xff]  }
 0x85e   : > { %v1497_v27 = vpop.f32.mrb[24].mxu1 }
 0x85f   : > { %v1498_v41 = vadd.f32 %v5594_v34, %v1497_v27  ;;  %v4441_v31 = vpop.f32.mrb[25].mxu1 }
 0x860   : > { %v1500_v43 = vpop.f32.mrb[26].mxu1 }
 0x861   : > { %v1501_v44 = vadd.f32 %v5594_v34, %v1500_v43  ;;  %v4442_v45 = vpop.f32.mrb[27].mxu1  ;;  %v1504_v47 = vmax.f32 %v1498_v41, 0.0 }
 0x863   : > { %v1505_v48 = vmax.f32 %v1501_v44, 0.0 }
 0x865   : > { %v1506_v52 = vpack.c.bf16 %v1505_v48, %v1504_v47 }
 0x867   : > { %4452 = vmatmul.mubr.msk.bf16.vlgmr.msra.gmra.mrb[16].mxu0 %vm1144_vm6, %v1506_v52 }
 0x868   : > { %4470 = vmatpush3.bf16.msra.mxu0 %v5541_v60  ;;  %4477 = vmatprep.mubr.msk.bf16.mxu0 %vm5101_vm9, %v5099_v42 }
 0x869   : > { %4471 = vmatprep.subr.bf16.mxu0 %v5099_v42 }
 0x86c   : > { %4472 = vmatpush3.bf16.msra.mxu0 %v5547_v61 }
 0x86d   : > { %4473 = vmatprep.subr.bf16.mxu0 %v5099_v42 }
 0x870   : > { %4474 = vmatpush3.bf16.msra.mxu0 %v5583_v32 }
 0x871   : > { %4475 = vmatprep.subr.bf16.mxu0 %v5099_v42 }
 0x874   : > { %4476 = vmatpush3.bf16.msra.mxu0 %v5590_v33 }
 0x875   : > { %4495 = vmatprep.subr.bf16.mxu0 %v5099_v42 }
 0x8ab   : > { %v1627_v53 = vpop.f32.mrb[28].mxu1 }
 0x8ac   : > { %v1634_v60 = vadd.f32 %v1627_v53, %v5526_v46  ;;  %v4459_v54 = vpop.f32.mrb[29].mxu1 }
 0x8ad   : > { %v1630_v55 = vpop.f32.mrb[30].mxu1 }
 0x8ae   : > { %v1635_v56 = vadd.f32 %v1630_v55, %v5528_v49  ;;  %v4460_v57 = vpop.f32.mrb[31].mxu1  ;;  %v1636_v58 = vmax.f32 %v1634_v60, 0.0 }
 0x8b0   : > { %v1637_v61 = vmax.f32 %v1635_v56, 0.0 }
 0x8b2   : > { %v1638_v59 = vpack.c.bf16 %v1637_v61, %v1636_v58 }
 0x8b4   : > { %4466 = vmatmul.mubr.msk.bf16.vlgmr.msra.gmra.mrb[32].mxu1 %vm1066_vm2, %v1638_v59 }
 0x8b5   : > { %4485 = vmatprep.mubr.msk.f32.mxu1 %vm1144_vm6, %v5098_v0 }
 0x93a   : > { %v1544_v32 = vpop.f32.mrb[16].mxu0 }
 0x93b   : > { %v1545_v33 = vadd.f32 %v5671_v14, %v1544_v32  ;;  %v4453_v62 = vpop.f32.mrb[17].mxu0 }
 0x93c   : > { %v1547_v63 = vpop.f32.mrb[18].mxu0 }
 0x93d   : > { %v1551_v1 = vmax.f32 %v1545_v33, 0.0  ;;  %v1548_v46 = vadd.f32 %v5671_v14, %v1547_v63  ;;  %v4454_v2 = vpop.f32.mrb[19].mxu0  ;;  %v4112_v63 = vld [vmem:[%s6115_s10] ss:$0 sm:$0xff] }
 0x93f   : > { %v1553_v3 = vmax.f32 %v1372_v38, %v1551_v1  ;;  %v1552_v49 = vmax.f32 %v1548_v46, 0.0  ;;  %v4722_v38 = vld [vmem:[%s6113_s8 + $0x18] sm:$0xff]  }
 0x941   : > { %v1554_v4 = vmax.f32 %v1373_v40, %v1552_v49 }
 0x987   : > { %v1676_v5 = vpop.f32.mrb[32].mxu1 }
 0x988   : > { %v1677_v6 = vadd.f32 %v5594_v34, %v1676_v5  ;;  %v4467_v7 = vpop.f32.mrb[33].mxu1 }
 0x989   : > { %v1679_v8 = vpop.f32.mrb[34].mxu1 }
 0x98a   : > { %v1680_v9 = vadd.f32 %v5594_v34, %v1679_v8  ;;  %v4468_v10 = vpop.f32.mrb[35].mxu1  ;;  %v1683_v11 = vmax.f32 %v1677_v6, 0.0  ;;  %v4718_v34 = vld [vmem:[#allocation13 + $0x18] sm:$0xff]  }
 0x98c   : > { %v1684_v12 = vmax.f32 %v1680_v9, 0.0 }
 0x98e   : > { %v1685_v17 = vpack.c.bf16 %v1684_v12, %v1683_v11 }
 0x990   : > { %4478 = vmatmul.mubr.msk.bf16.vlgmr.msra.gmra.mrb[20].mxu0 %vm1144_vm6, %v1685_v17 }
 0x991   : > { %4496 = vmatpush3.bf16.msra.mxu0 %v4715_v13  ;;  %4503 = vmatprep.mubr.msk.bf16.mxu0 %vm5101_vm9, %v5099_v42 }
 0x992   : > { %4497 = vmatprep.subr.bf16.mxu0 %v5099_v42 }
 0x995   : > { %4498 = vmatpush3.bf16.msra.mxu0 %v4716_v18 }
 0x996   : > { %4499 = vmatprep.subr.bf16.mxu0 %v5099_v42 }
 0x999   : > { %4500 = vmatpush3.bf16.msra.mxu0 %v4717_v16 }
 0x99a   : > { %4501 = vmatprep.subr.bf16.mxu0 %v5099_v42 }
 0x99d   : > { %4502 = vmatpush3.bf16.msra.mxu0 %v4718_v34 }
 0x99e   : > { %4519 = vmatprep.subr.bf16.mxu0 %v5099_v42 }
 0xa63   : > { %v1723_v21 = vpop.f32.mrb[20].mxu0 }
 0xa64   : > { %v1724_v22 = vadd.f32 %v5671_v14, %v1723_v21  ;;  %v4479_v23 = vpop.f32.mrb[21].mxu0 }
 0xa65   : > { %v1726_v24 = vpop.f32.mrb[22].mxu0 }
 0xa66   : > { %v1730_v25 = vmax.f32 %v1724_v22, 0.0  ;;  %v1727_v26 = vadd.f32 %v5671_v14, %v1726_v24  ;;  %v4480_v19 = vpop.f32.mrb[23].mxu0  ;;  %v4719_v14 = vld [vmem:[%s6113_s8] sm:$0xff]  }
 0xa68   : > { %v1732_v50 = vmax.f32 %v1553_v3, %v1730_v25  ;;  %v1731_v29 = vmax.f32 %v1727_v26, 0.0 }
 0xa6a   : > { %v1733_v28 = vmax.f32 %v1554_v4, %v1731_v29  ;;  %v1768_v30 = vmul.f32 %v1732_v50, %v1732_v50 }
 0xa6c   : > { %v1769_v35 = vmul.f32 %v1733_v28, %v1733_v28  ;;  %v4561_v36 = vpack.c.bf16 %v1733_v28, %v1732_v50 }
 0xa6e   : > { %4504 = vmatmul.mubr.msk.bf16.vlgmr.msra.gmra.mrb[24].mxu0 %vm1144_vm6, %v4561_v36  ;;  %v4555_v51 = vpack.c.bf16 %v1769_v35, %v1768_v30 }
 0xa6f   : > { %4521 = vmatprep.mubr.msk.bf16.mxu0 %vm5101_vm9, %v5099_v42 }
 0xa70   : > { %4557 = vmatprep.subr.msk.bf16.mxu1 %vm4556_vm0, %v4555_v51 }
 0xa71   : > { %4560 = vmatpush3.bf16.xpose.msk.msra.mxu1 %vm4556_vm0, %v4555_v51 }
 0xa72   : > { %4563 = vmatprep.subr.msk.bf16.mxu1 %vm4556_vm0, %v4561_v36 }
 0xa78   : > { %4486 = vmatmul.mubr.msk.f32.vlgmr.msra.gmra.mrb[36].mxu1 %vm1144_vm6, %v5098_v0  ;;  %v4721_v0 = vld [vmem:[%s6113_s8 + $0x10] sm:$0xff]  }
 0xa79   : > { %4566 = vmatpush3.bf16.xpose.msk.msra.mxu1 %vm4556_vm0, %v4561_v36  ;;  %4492 = vmatprep.mubr.msk.f32.mxu1 %vm1144_vm6, %v1732_v50 }
 0xa7a   : > { %4507 = vmatprep.subr.bf16.mxu1 %v5099_v42 }
 0xa80   : > { %4493 = vmatmul.mubr.msk.f32.vlgmr.msra.gmra.mrb[38].mxu1 %vm1144_vm6, %v1733_v28 }
 0xa81   : > { %4508 = vmatpush3.bf16.msra.mxu1 %v4719_v14  ;;  %4515 = vmatprep.mubr.msk.bf16.mxu1 %vm5101_vm9, %v5099_v42 }
 0xa82   : > { %4509 = vmatprep.subr.bf16.mxu1 %v5099_v42 }
 0xa85   : > { %4510 = vmatpush3.bf16.msra.mxu1 %v4720_v37 }
 0xa86   : > { %4511 = vmatprep.subr.bf16.mxu1 %v5099_v42 }
 0xa89   : > { %4512 = vmatpush3.bf16.msra.mxu1 %v4721_v0 }
 0xa8a   : > { %4513 = vmatprep.subr.bf16.mxu1 %v5099_v42 }
 0xa8d   : > { %4514 = vmatpush3.bf16.msra.mxu1 %v4722_v38 }
 0xa90   : > { %4516 = vmatmul.mubr.msk.bf16.vlgmr.msra.gmra.mrb[40].mxu1 %vm1144_vm6, %v4561_v36 }
 0xb41   : > { %v2048_v39 = vpop.f32.mrb[24].mxu0 }
 0xb42   : > { %v4505_v40 = vpop.f32.mrb[25].mxu0 }
 0xb43   : > { %v2051_v27 = vpop.f32.mrb[26].mxu0 }
 0xb44   : > { %v5738_v41 = vpack.c.bf16 %v2051_v27, %v2048_v39  ;;  %v4506_v31 = vpop.f32.mrb[27].mxu0 }
 0xb46   : > { %4520 = vmatpush3.bf16.msra.mxu0 %v5738_v41 }
 0xb47   : > { %4525 = vmatprep.subr.bf16.mxu0 %v5099_v42 }
 0xb4b   : > { %v4487_v43 = vpop.f32.mrb[36].mxu1 }
 0xb4c   : > { %v1844_v44 = vpop.f32.mrb[37].mxu1 }
 0xb53   : > { %v4494_v45 = vpop.f32.mrb[38].mxu1 }
 0xb54   : > { %v1935_v47 = vmul.f32 2.0, %v4494_v45  ;;  %v1925_v48 = vpop.f32.mrb[39].mxu1 }
 0xb55   : > { %v1934_v52 = vmul.f32 2.0, %v1925_v48 }
 0xb56   : > { %v1937_v53 = vsub.f32 %v4487_v43, %v1935_v47 }
 0xb57   : > { %v1936_v60 = vsub.f32 %v1844_v44, %v1934_v52 }
 0xb58   : > { %v1943_v54 = vxor.u32 4294967295, %v1937_v53  ;;  %vm1941_vm1 = vcmp.lt.s32.totalorder %v1937_v53, 0 }
 0xb59   : > { %v1942_v55 = vxor.u32 4294967295, %v1936_v60  ;;  %vm1940_vm2 = vcmp.lt.s32.totalorder %v1936_v60, 0 }
 0xb5a   : > { %v1945_v56 = vxor.u32 2147483648, %v1943_v54 }
 0xb5b   : > { %v1944_v57 = vxor.u32 2147483648, %v1942_v55 }
 0xb5c   : > { %v1947_v58 = vsel %vm1941_vm1, %v1945_v56, %v1937_v53 }
 0xb5d   : > { %v1949_v61 = vand.u32 4294967280, %v1947_v58  ;;  %v1946_v59 = vsel %vm1940_vm2, %v1944_v57, %v1936_v60 }
 0xb5e   : > { %v1948_v32 = vand.u32 4294967280, %v1946_v59 }
 0xb5f   : > { %v1951_v33 = vor.u32 %v1949_v61, %v5485_v20 }
 0xb60   : > { %v1950_v62 = vor.u32 %v1948_v32, %v5485_v20 }
 0xb61   : > { %v1967_v1 = vsel %vm822_vm4, %v1951_v33, 2147483647 }
 0xb62   : > { %v1969_v46 = vshra.s32 %v1967_v1, 16  ;;  %v1952_v2 = vsel %vm822_vm4, %v1950_v62, 2147483647  ;;  %v1968_v12 = vand.u32 65535, %v1967_v1 }
 0xb63   : > { %v2119_v3 = vpop.f32.mrb[40].mxu1  ;;  %v1954_v49 = vshra.s32 %v1952_v2, 16  ;;  %v1953_v13 = vand.u32 65535, %v1952_v2 }
 0xb64   : > { %v2120_v4 = vadd.f32 %v4112_v63, %v2119_v3  ;;  %v4517_v5 = vpop.f32.mrb[41].mxu1  ;;  %v1971_v6 = vcvt.s32.f32 %v1969_v46  ;;  %v1970_v18 = vcvt.s32.f32 %v1968_v12  ;;  %v5781_v12 = vld [vmem:[#allocation14 + $0x24] ss:$8 sps:$4 sm:$0xff]  }
 0xb65   : > { %v2122_v7 = vpop.f32.mrb[42].mxu1  ;;  %v1956_v8 = vcvt.s32.f32 %v1954_v49  ;;  %v1955_v34 = vcvt.s32.f32 %v1953_v13  ;;  %v5784_v13 = vld [vmem:[#allocation14 + $0x20] ss:$8 sps:$4 sm:$0xff]  }
 0xb66   : > { %v5749_v9 = vsub.f32 %v2120_v4, %v2048_v39  ;;  %v2123_v10 = vadd.f32 %v4112_v63, %v2122_v7  ;;  %1972 = vmin.xlane.f32.xlu1 %v1971_v6  ;;  %v4518_v20 = vpop.f32.mrb[43].mxu1  ;;  %v5769_v7 = vld [vmem:[#allocation14 + $0x4] ss:$8 sps:$4 sm:$0xff]  }
 0xb67   : > { %1957 = vmin.xlane.f32.xlu0 %v1956_v8  ;;  %2306 = vmatprep.subr.bf16.mxu1 %v5769_v7  ;;  %v5778_v20 = vld [vmem:[#allocation14 + $0x10] ss:$8 sps:$4 sm:$0xff]  }
 0xb68   : > { %v5751_v11 = vsub.f32 %v2123_v10, %v2051_v27  ;;  %v5773_v10 = vld [vmem:[#allocation14 + $0x14] ss:$8 sps:$4 sm:$0xff]  }
 0xbf3   : > { %v1973_v17 = vpop.xlane.xlu1 %1972 }
 0xbf4   : > { %v1958_v16 = vpop.xlane.xlu0 %1957  ;;  %vm1974_vm3 = vcmp.eq.f32.partialorder %v1971_v6, %v1973_v17  ;;  %v1979_v23 = vcvt.f32.s32 %v1973_v17  ;;  %v5787_v17 = vld [vmem:[#allocation14 + $0x34] ss:$8 sps:$4 sm:$0xff]  }
 0xbf5   : > { %v1975_v21 = vsel %vm1974_vm3, %v1970_v18, inf  ;;  %vm1959_vm5 = vcmp.eq.f32.partialorder %v1956_v8, %v1958_v16  ;;  %v1964_v24 = vcvt.f32.s32 %v1958_v16  ;;  %v5771_v8 = vld [vmem:[#allocation14] ss:$8 sps:$4 sm:$0xff]   ;;  %v5790_v18 = vld [vmem:[#allocation14 + $0x30] ss:$8 sps:$4 sm:$0xff]  }
 0xbf6   : > { %1976 = vmin.xlane.f32.xlu1 %v1975_v21  ;;  %v1960_v22 = vsel %vm1959_vm5, %v1955_v34, inf  ;;  %v1980_v26 = vshll.u32 %v1979_v23, 16  ;;  %2307 = vmatpush1.bf16.msra.mxu1 %v5771_v8  ;;  %v5793_v16 = vld [vmem:[#allocation14 + $0x44] ss:$8 sps:$4 sm:$0xff]   ;;  %v5796_v34 = vld [vmem:[#allocation14 + $0x40] ss:$8 sps:$4 sm:$0xff]  }
 0xbf7   : > { %1961 = vmin.xlane.f32.xlu0 %v1960_v22  ;;  %v1965_v29 = vshll.u32 %v1964_v24, 16  ;;  %2308 = vmatprep.subr.bf16.mxu1 %v5773_v10  ;;  %v5799_v21 = vld [vmem:[#allocation14 + $0x54] ss:$8 sps:$4 sm:$0xff]   ;;  %v5802_v22 = vld [vmem:[#allocation14 + $0x50] ss:$8 sps:$4 sm:$0xff]  }
 0xbf8   : > { %v5806_v23 = vld [vmem:[#allocation14 + $0x64] ss:$8 sps:$4 sm:$0xff]   ;;  %v5808_v24 = vld [vmem:[#allocation14 + $0x60] ss:$8 sps:$4 sm:$0xff]  }
 0xbfa   : > { %2309 = vmatpush1.bf16.msra.mxu1 %v5778_v20 }
 0xbfb   : > { %2310 = vmatprep.subr.bf16.mxu1 %v5781_v12 }
 0xbfe   : > { %2311 = vmatpush1.bf16.msra.mxu1 %v5784_v13 }
 0xbff   : > { %2312 = vmatprep.subr.bf16.mxu1 %v5787_v17 }
 0xc02   : > { %2313 = vmatpush1.bf16.msra.mxu1 %v5790_v18 }
 0xc03   : > { %2314 = vmatprep.subr.bf16.mxu1 %v5793_v16 }
 0xc06   : > { %2315 = vmatpush1.bf16.msra.mxu1 %v5796_v34 }
 0xc07   : > { %2316 = vmatprep.subr.bf16.mxu1 %v5799_v21 }
 0xc0a   : > { %2317 = vmatpush1.bf16.msra.mxu1 %v5802_v22 }
 0xc0b   : > { %2318 = vmatprep.subr.bf16.mxu1 %v5806_v23 }
 0xc0e   : > { %2319 = vmatpush1.bf16.msra.mxu1 %v5808_v24 }
 0xc83   : > { %v1977_v25 = vpop.xlane.xlu1 %1976 }
 0xc84   : > { %v1978_v19 = vcvt.f32.s32 %v1977_v25  ;;  %v1962_v50 = vpop.xlane.xlu0 %1961  ;;  %v5812_v25 = vld [vmem:[#allocation14 + $0x74] ss:$8 sps:$4 sm:$0xff]  }
 0xc85   : > { %v1963_v28 = vcvt.f32.s32 %v1962_v50  ;;  %2320 = vmatprep.subr.bf16.mxu1 %v5812_v25 }
 0xc86   : > { %v1981_v30 = vadd.s32 %v1980_v26, %v1978_v19  ;;  %v5814_v26 = vld [vmem:[#allocation14 + $0x70] ss:$8 sps:$4 sm:$0xff]   ;;  %v5102_v19 = vmov 0  }
 0xc87   : > { %v1966_v35 = vadd.s32 %v1965_v29, %v1963_v28  ;;  %2321 = vmatpush1.bf16.msra.mxu1 %v5814_v26  ;;  %2338 = vmatprep.mubr.bf16.mxu1 %v5102_v19 }
 0xc88   : > { %vm1983_vm6 = vcmp.eq.s32.totalorder %v1951_v33, %v1981_v30  ;;  %4531 = vmatprep.subr.bf16.mxu1 %v5099_v42 }
 0xc89   : > { %vm1982_vm7 = vcmp.eq.s32.totalorder %v1950_v62, %v1966_v35  ;;  %v1985_v36 = vsel %vm1983_vm6, 2147483647, %v1951_v33 }
 0xc8a   : > { %v2144_v51 = vsel %vm822_vm4, %v1985_v36, 2147483647  ;;  %v1984_v14 = vsel %vm1982_vm7, 2147483647, %v1950_v62 }
 0xc8b   : > { %v2146_v37 = vshra.s32 %v2144_v51, 16  ;;  %v2129_v0 = vsel %vm822_vm4, %v1984_v14, 2147483647  ;;  %v2145_v27 = vand.u32 65535, %v2144_v51 }
 0xc8c   : > { %v2131_v38 = vshra.s32 %v2129_v0, 16  ;;  %v2130_v31 = vand.u32 65535, %v2129_v0 }
 0xc8d   : > { %v2148_v39 = vcvt.s32.f32 %v2146_v37  ;;  %v2147_v44 = vcvt.s32.f32 %v2145_v27 }
 0xc8e   : > { %v2133_v40 = vcvt.s32.f32 %v2131_v38  ;;  %v2132_v47 = vcvt.s32.f32 %v2130_v31 }
 0xc8f   : > { %2149 = vmin.xlane.f32.xlu1 %v2148_v39 }
 0xc90   : > { %2134 = vmin.xlane.f32.xlu0 %v2133_v40 }
 0xd1c   : > { %v2150_v43 = vpop.xlane.xlu1 %2149 }
 0xd1d   : > { %v2135_v45 = vpop.xlane.xlu0 %2134  ;;  %vm2151_vm8 = vcmp.eq.f32.partialorder %v2148_v39, %v2150_v43  ;;  %v2156_v53 = vcvt.f32.s32 %v2150_v43 }
 0xd1e   : > { %v2152_v48 = vsel %vm2151_vm8, %v2147_v44, inf  ;;  %vm2136_vm10 = vcmp.eq.f32.partialorder %v2133_v40, %v2135_v45  ;;  %v2141_v60 = vcvt.f32.s32 %v2135_v45 }
 0xd1f   : > { %2153 = vmin.xlane.f32.xlu1 %v2152_v48  ;;  %v2137_v52 = vsel %vm2136_vm10, %v2132_v47, inf  ;;  %v2157_v55 = vshll.u32 %v2156_v53, 16 }
 0xd20   : > { %2138 = vmin.xlane.f32.xlu0 %v2137_v52  ;;  %v2142_v58 = vshll.u32 %v2141_v60, 16 }
 0xdac   : > { %v2154_v54 = vpop.xlane.xlu1 %2153 }
 0xdad   : > { %v2155_v56 = vcvt.f32.s32 %v2154_v54  ;;  %v2139_v57 = vpop.xlane.xlu0 %2138 }
 0xdae   : > { %v2140_v61 = vcvt.f32.s32 %v2139_v57 }
 0xdaf   : > { %v2158_v59 = vadd.s32 %v2157_v55, %v2155_v56 }
 0xdb0   : > { %v2143_v32 = vadd.s32 %v2142_v58, %v2140_v61 }
 0xdb1   : > { %vm2160_vm11 = vcmp.eq.s32.totalorder %v1985_v36, %v2158_v59 }
 0xdb2   : > { %v2164_v33 = vsel %vm2160_vm11, 1.0, %v5099_v42  ;;  %vm2159_vm12 = vcmp.eq.s32.totalorder %v1984_v14, %v2143_v32  ;;  %v5756_v62 = vsel %vm2160_vm11, 2147483647, %v1985_v36 }
 0xdb3   : > { %v2163_v63 = vsel %vm2159_vm12, 1.0, %v5099_v42  ;;  %v2372_v1 = vsel %vm822_vm4, %v5756_v62, 2147483647  ;;  %v5761_v46 = vsel %vm2159_vm12, 2147483647, %v1984_v14 }
 0xdb4   : > { %v2165_v2 = vpack.c.bf16 %v2164_v33, %v2163_v63  ;;  %v2374_v3 = vshra.s32 %v2372_v1, 16  ;;  %v2357_v49 = vsel %vm822_vm4, %v5761_v46, 2147483647  ;;  %v2373_v50 = vand.u32 65535, %v2372_v1 }
 0xdb5   : > { %v2359_v4 = vshra.s32 %v2357_v49, 16  ;;  %v2358_v29 = vand.u32 65535, %v2357_v49 }
 0xdb6   : > { %4522 = vmatmul.mubr.msk.bf16.vlgmr.msra.gmra.mrb[28].mxu0 %vm822_vm4, %v2165_v2  ;;  %v2376_v5 = vcvt.s32.f32 %v2374_v3  ;;  %v2375_v30 = vcvt.s32.f32 %v2373_v50 }
 0xdb7   : > { %4526 = vmatpush3.bf16.msra.mxu0 %v5738_v41  ;;  %v2361_v6 = vcvt.s32.f32 %v2359_v4  ;;  %4527 = vmatprep.mubr.msk.bf16.mxu0 %vm5101_vm9, %v5099_v42  ;;  %v2360_v36 = vcvt.s32.f32 %v2358_v29 }
 0xdb8   : > { %2377 = vmin.xlane.f32.xlu1 %v2376_v5  ;;  %2443 = vmatprep.subr.bf16.mxu0 %v5769_v7 }
 0xdb9   : > { %2362 = vmin.xlane.f32.xlu0 %v2361_v6 }
 0xe45   : > { %v2378_v28 = vpop.xlane.xlu1 %2377 }
 0xe46   : > { %v2363_v35 = vpop.xlane.xlu0 %2362  ;;  %vm2379_vm13 = vcmp.eq.f32.partialorder %v2376_v5, %v2378_v28  ;;  %v2384_v45 = vcvt.f32.s32 %v2378_v28 }
 0xe47   : > { %v2380_v51 = vsel %vm2379_vm13, %v2375_v30, inf  ;;  %vm2364_vm14 = vcmp.eq.f32.partialorder %v2361_v6, %v2363_v35  ;;  %v2369_v47 = vcvt.f32.s32 %v2363_v35 }
 0xe48   : > { %2381 = vmin.xlane.f32.xlu1 %v2380_v51  ;;  %v2365_v14 = vsel %vm2364_vm14, %v2360_v36, inf  ;;  %v2385_v52 = vshll.u32 %v2384_v45, 16 }
 0xe49   : > { %2366 = vmin.xlane.f32.xlu0 %v2365_v14  ;;  %v2370_v54 = vshll.u32 %v2369_v47, 16 }
 0xe89   : > { %v2203_v37 = vpop.f32.mrb[28].mxu0 }
 0xe8a   : > { %v2210_v0 = vadd.f32 %v2203_v37, %v5749_v9  ;;  %v4523_v38 = vpop.f32.mrb[29].mxu0 }
 0xe8b   : > { %v2206_v39 = vpop.f32.mrb[30].mxu0 }
 0xe8c   : > { %v2211_v40 = vadd.f32 %v2206_v39, %v5751_v11  ;;  %v4524_v27 = vpop.f32.mrb[31].mxu0  ;;  %v2212_v31 = vmax.f32 %v2210_v0, 0.0 }
 0xe8e   : > { %v2213_v43 = vmax.f32 %v2211_v40, 0.0 }
 0xe90   : > { %v2214_v44 = vpack.c.bf16 %v2213_v43, %v2212_v31 }
 0xe92   : > { %2339 = vmatmul.mubr.bf16.vlgmr.msra.gmra.mrb[44].mxu1 %v2214_v44 }
 0xe93   : > { %4532 = vmatpush3.bf16.msra.mxu1 %v5738_v41  ;;  %4533 = vmatprep.mubr.msk.bf16.mxu1 %vm5101_vm9, %v5099_v42 }
 0xe94   : > { %2580 = vmatprep.subr.bf16.mxu1 %v5769_v7 }
 0xed5   : > { %v2382_v48 = vpop.xlane.xlu1 %2381 }
 0xed6   : > { %v2383_v53 = vcvt.f32.s32 %v2382_v48  ;;  %v2367_v60 = vpop.xlane.xlu0 %2366 }
 0xed7   : > { %v2368_v55 = vcvt.f32.s32 %v2367_v60 }
 0xed8   : > { %v2386_v56 = vadd.s32 %v2385_v52, %v2383_v53 }
 0xed9   : > { %v2371_v57 = vadd.s32 %v2370_v54, %v2368_v55 }
 0xeda   : > { %vm2388_vm15 = vcmp.eq.s32.totalorder %v5756_v62, %v2386_v56 }
 0xedb   : > { %v2392_v58 = vsel %vm2388_vm15, 1.0, %v5099_v42  ;;  %vm2387_vm0 = vcmp.eq.s32.totalorder %v5761_v46, %v2371_v57  ;;  %v5830_v61 = vsel %vm2388_vm15, 2147483647, %v5756_v62 }
 0xedc   : > { %v2391_v59 = vsel %vm2387_vm0, 1.0, %v5099_v42  ;;  %v2509_v32 = vsel %vm822_vm4, %v5830_v61, 2147483647  ;;  %v5836_v33 = vsel %vm2387_vm0, 2147483647, %v5761_v46 }
 0xedd   : > { %v2393_v63 = vpack.c.bf16 %v2392_v58, %v2391_v59  ;;  %v2511_v1 = vshra.s32 %v2509_v32, 16  ;;  %v2494_v2 = vsel %vm822_vm4, %v5836_v33, 2147483647  ;;  %v2510_v50 = vand.u32 65535, %v2509_v32 }
 0xede   : > { %v2496_v3 = vshra.s32 %v2494_v2, 16  ;;  %v2495_v29 = vand.u32 65535, %v2494_v2 }
 0xedf   : > { %4528 = vmatmul.mubr.msk.bf16.vlgmr.msra.gmra.mrb[32].mxu0 %vm822_vm4, %v2393_v63  ;;  %v2513_v49 = vcvt.s32.f32 %v2511_v1  ;;  %v2512_v30 = vcvt.s32.f32 %v2510_v50  ;;  %v1767_v50 = vld [vmem:[%s6117_s12] sm:$0x3] }
 0xee0   : > { %v2498_v4 = vcvt.s32.f32 %v2496_v3  ;;  %2444 = vmatpush1.bf16.msra.mxu0 %v5771_v8  ;;  %2475 = vmatprep.mubr.bf16.mxu0 %v5102_v19  ;;  %v2497_v36 = vcvt.s32.f32 %v2495_v29 }
 0xee1   : > { %2514 = vmin.xlane.f32.xlu1 %v2513_v49  ;;  %2445 = vmatprep.subr.bf16.mxu0 %v5773_v10 }
 0xee2   : > { %2499 = vmin.xlane.f32.xlu0 %v2498_v4 }
 0xee4   : > { %2446 = vmatpush1.bf16.msra.mxu0 %v5778_v20 }
 0xee5   : > { %2447 = vmatprep.subr.bf16.mxu0 %v5781_v12 }
 0xee8   : > { %2448 = vmatpush1.bf16.msra.mxu0 %v5784_v13 }
 0xee9   : > { %2449 = vmatprep.subr.bf16.mxu0 %v5787_v17 }
 0xeec   : > { %2450 = vmatpush1.bf16.msra.mxu0 %v5790_v18 }
 0xeed   : > { %2451 = vmatprep.subr.bf16.mxu0 %v5793_v16 }
 0xef0   : > { %2452 = vmatpush1.bf16.msra.mxu0 %v5796_v34 }
 0xef1   : > { %2453 = vmatprep.subr.bf16.mxu0 %v5799_v21 }
 0xef4   : > { %2454 = vmatpush1.bf16.msra.mxu0 %v5802_v22 }
 0xef5   : > { %2455 = vmatprep.subr.bf16.mxu0 %v5806_v23 }
 0xef8   : > { %2456 = vmatpush1.bf16.msra.mxu0 %v5808_v24 }
 0xef9   : > { %2457 = vmatprep.subr.bf16.mxu0 %v5812_v25 }
 0xefc   : > { %2458 = vmatpush1.bf16.msra.mxu0 %v5814_v26 }
 0xefd   : > { %4537 = vmatprep.subr.bf16.mxu0 %v5099_v42 }
 0xf65   : > { %v5858_v62 = vpop.f32.mrb[44].mxu1 }
 0xf66   : > { %v5860_v46 = vpop.f32.mrb[45].mxu1 }
 0xf67   : > { %v5862_v5 = vpop.f32.mrb[46].mxu1 }
 0xf68   : > { %v5864_v6 = vpop.f32.mrb[47].mxu1 }
 0xf6e   : > { %v2515_v28 = vpop.xlane.xlu1 %2514 }
 0xf6f   : > { %v2500_v35 = vpop.xlane.xlu0 %2499  ;;  %vm2516_vm1 = vcmp.eq.f32.partialorder %v2513_v49, %v2515_v28  ;;  %v2521_v45 = vcvt.f32.s32 %v2515_v28 }
 0xf70   : > { %v2517_v51 = vsel %vm2516_vm1, %v2512_v30, inf  ;;  %vm2501_vm2 = vcmp.eq.f32.partialorder %v2498_v4, %v2500_v35  ;;  %v2506_v47 = vcvt.f32.s32 %v2500_v35 }
 0xf71   : > { %2518 = vmin.xlane.f32.xlu1 %v2517_v51  ;;  %v2502_v14 = vsel %vm2501_vm2, %v2497_v36, inf  ;;  %v2522_v52 = vshll.u32 %v2521_v45, 16 }
 0xf72   : > { %2503 = vmin.xlane.f32.xlu0 %v2502_v14  ;;  %v2507_v54 = vshll.u32 %v2506_v47, 16 }
 0xfb2   : > { %v2431_v37 = vpop.f32.mrb[32].mxu0 }
 0xfb3   : > { %v2438_v0 = vadd.f32 %v2431_v37, %v5749_v9  ;;  %v4529_v38 = vpop.f32.mrb[33].mxu0 }
 0xfb4   : > { %v2434_v39 = vpop.f32.mrb[34].mxu0 }
 0xfb5   : > { %v2439_v40 = vadd.f32 %v2434_v39, %v5751_v11  ;;  %v4530_v27 = vpop.f32.mrb[35].mxu0  ;;  %v2440_v31 = vmax.f32 %v2438_v0, 0.0 }
 0xfb7   : > { %v2441_v43 = vmax.f32 %v2439_v40, 0.0 }
 0xfb9   : > { %v2442_v44 = vpack.c.bf16 %v2441_v43, %v2440_v31 }
 0xfbb   : > { %2476 = vmatmul.mubr.bf16.vlgmr.msra.gmra.mrb[36].mxu0 %v2442_v44 }
 0xfbc   : > { %4538 = vmatpush3.bf16.msra.mxu0 %v5738_v41  ;;  %4539 = vmatprep.mubr.msk.bf16.mxu0 %vm5101_vm9, %v5099_v42 }
 0xfbd   : > { %2715 = vmatprep.subr.bf16.mxu0 %v5769_v7 }
 0xffe   : > { %v2519_v48 = vpop.xlane.xlu1 %2518 }
 0xfff   : > { %v2520_v53 = vcvt.f32.s32 %v2519_v48  ;;  %v2504_v60 = vpop.xlane.xlu0 %2503 }
0x1000   : > { %v2505_v55 = vcvt.f32.s32 %v2504_v60 }
0x1001   : > { %v2523_v56 = vadd.s32 %v2522_v52, %v2520_v53 }
0x1002   : > { %v2508_v57 = vadd.s32 %v2507_v54, %v2505_v55 }
0x1003   : > { %vm2525_vm3 = vcmp.eq.s32.totalorder %v5830_v61, %v2523_v56 }
0x1004   : > { %v2529_v58 = vsel %vm2525_vm3, 1.0, %v5099_v42  ;;  %vm2524_vm5 = vcmp.eq.s32.totalorder %v5836_v33, %v2508_v57  ;;  %v5876_v41 = vsel %vm2525_vm3, 2147483647, %v5830_v61 }
0x1005   : > { %v2528_v7 = vsel %vm2524_vm5, 1.0, %v5099_v42  ;;  %v5881_v59 = vsel %vm822_vm4, %v5876_v41, 2147483647  ;;  %v5884_v32 = vsel %vm2524_vm5, 2147483647, %v5836_v33  ;;  %v5913_v33 = vshrl.u32 %v816_v15, 7 }
0x1006   : > { %v2530_v63 = vpack.c.bf16 %v2529_v58, %v2528_v7  ;;  %v2648_v1 = vshra.s32 %v5881_v59, 16  ;;  %v5889_v2 = vsel %vm822_vm4, %v5884_v32, 2147483647  ;;  %v2647_v60 = vand.u32 65535, %v5881_v59 }
0x1007   : > { %v2633_v3 = vshra.s32 %v5889_v2, 16  ;;  %v2218_v4 = vsub.s32 0, %v5913_v33  ;;  %v2222_v29 = vsub.s32 1, %v5913_v33  ;;  %v2632_v57 = vand.u32 65535, %v5889_v2 }
0x1008   : > { %4534 = vmatmul.mubr.msk.bf16.vlgmr.msra.gmra.mrb[48].mxu1 %vm822_vm4, %v2530_v63  ;;  %v2650_v61 = vcvt.s32.f32 %v2648_v1  ;;  %v2649_v1 = vcvt.s32.f32 %v2647_v60  ;;  %v2804_v60 = vld [vmem:[#allocation16 + $0x120] sm:$0xff] }
0x1009   : > { %v5893_v49 = vcvt.s32.f32 %v2633_v3  ;;  %2581 = vmatpush1.bf16.msra.mxu1 %v5771_v8  ;;  %2612 = vmatprep.mubr.bf16.mxu1 %v5102_v19  ;;  %v5922_v28 = vrot.slane %v1767_v50, %v2218_v4  ;;  %v5926_v30 = vrot.slane %v1767_v50, %v2222_v29  ;;  %v2634_v50 = vcvt.s32.f32 %v2632_v57  ;;  %v2808_v57 = vld [vmem:[#allocation16 + $0x140] sm:$0xff] }
0x100a   : > { %2651 = vmin.xlane.f32.xlu1 %v2650_v61  ;;  %2582 = vmatprep.subr.bf16.mxu1 %v5773_v10 }
0x100b   : > { %2636 = vmin.xlane.f32.xlu0 %v5893_v49  ;;  %v2341_v15 = vadd.f32 %v5858_v62, %v5922_v28  ;;  %v2343_v35 = vadd.f32 %v5860_v46, %v5926_v30  ;;  %v2345_v36 = vadd.f32 %v5862_v5, %v5922_v28  ;;  %v2347_v51 = vadd.f32 %v5864_v6, %v5926_v30 }
0x100d   : > { %2583 = vmatpush1.bf16.msra.mxu1 %v5778_v20  ;;  %v2349_v14 = vmax.f32 %v2341_v15, 0.0  ;;  %v2350_v37 = vmax.f32 %v2343_v35, 0.0  ;;  %v2351_v38 = vmax.f32 %v2345_v36, 0.0  ;;  %v2352_v27 = vmax.f32 %v2347_v51, 0.0 }
0x100e   : > { %2584 = vmatprep.subr.bf16.mxu1 %v5781_v12 }
0x100f   : > { %v2353_v43 = vmax.f32 %v2349_v14, 0.0  ;;  %v2354_v5 = vmax.f32 %v2350_v37, 0.0  ;;  %v2355_v48 = vmax.f32 %v2351_v38, 0.0  ;;  %v2356_v54 = vmax.f32 %v2352_v27, 0.0 }
0x1011   : > { %2585 = vmatpush1.bf16.msra.mxu1 %v5784_v13 }
0x1012   : > { %2586 = vmatprep.subr.bf16.mxu1 %v5787_v17 }
0x1015   : > { %2587 = vmatpush1.bf16.msra.mxu1 %v5790_v18 }
0x1016   : > { %2588 = vmatprep.subr.bf16.mxu1 %v5793_v16 }
0x1019   : > { %2589 = vmatpush1.bf16.msra.mxu1 %v5796_v34 }
0x101a   : > { %2590 = vmatprep.subr.bf16.mxu1 %v5799_v21 }
0x101d   : > { %2591 = vmatpush1.bf16.msra.mxu1 %v5802_v22 }
0x101e   : > { %2592 = vmatprep.subr.bf16.mxu1 %v5806_v23 }
0x1021   : > { %2593 = vmatpush1.bf16.msra.mxu1 %v5808_v24 }
0x1022   : > { %2594 = vmatprep.subr.bf16.mxu1 %v5812_v25 }
0x1025   : > { %2595 = vmatpush1.bf16.msra.mxu1 %v5814_v26 }
0x108e   : > { %v2477_v0 = vpop.f32.mrb[36].mxu0 }
0x108f   : > { %v2478_v39 = vadd.f32 %v2477_v0, %v5922_v28  ;;  %v2479_v40 = vpop.f32.mrb[37].mxu0 }
0x1090   : > { %v2480_v31 = vadd.f32 %v2479_v40, %v5926_v30  ;;  %v2481_v62 = vpop.f32.mrb[38].mxu0 }
0x1091   : > { %v2486_v44 = vmax.f32 %v2478_v39, 0.0  ;;  %v2482_v46 = vadd.f32 %v2481_v62, %v5922_v28  ;;  %v2483_v45 = vpop.f32.mrb[39].mxu0 }
0x1092   : > { %v2487_v47 = vmax.f32 %v2480_v31, 0.0  ;;  %v2484_v6 = vadd.f32 %v2483_v45, %v5926_v30 }
0x1093   : > { %v5940_v52 = vmax.f32 %v2353_v43, %v2486_v44  ;;  %v2488_v53 = vmax.f32 %v2482_v46, 0.0 }
0x1094   : > { %v5943_v55 = vmax.f32 %v2354_v5, %v2487_v47  ;;  %v2489_v56 = vmax.f32 %v2484_v6, 0.0 }
0x1095   : > { %v5946_v58 = vmax.f32 %v2355_v48, %v2488_v53  ;;  %v2800_v53 = vld [vmem:[#allocation16 + $0x100] sm:$0xff] }
0x1096   : > { %v5948_v7 = vmax.f32 %v2356_v54, %v2489_v56  ;;  %v4171_v54 = vcombine.high %v2800_v53, %v2804_v60  ;;  %v4170_v56 = vcombine.low %v2800_v53, %v2804_v60 }
0x1097   : > { %v2652_v63 = vpop.xlane.xlu1 %2651 }
0x1098   : > { %v2637_v3 = vpop.xlane.xlu0 %2636  ;;  %vm2653_vm9 = vcmp.eq.f32.partialorder %v2650_v61, %v2652_v63  ;;  %v2658_v61 = vcvt.f32.s32 %v2652_v63  ;;  %v2812_v63 = vld [vmem:[#allocation16 + $0x160] sm:$0xff] }
0x1099   : > { %v2654_v15 = vsel %vm2653_vm9, %v2649_v1, inf  ;;  %vm2638_vm6 = vcmp.eq.f32.partialorder %v5893_v49, %v2637_v3  ;;  %v2643_v40 = vcvt.f32.s32 %v2637_v3  ;;  %v4179_v1 = vcombine.high %v2808_v57, %v2812_v63 }
0x109a   : > { %2655 = vmin.xlane.f32.xlu1 %v2654_v15  ;;  %v2639_v59 = vsel %vm2638_vm6, %v2634_v50, inf  ;;  %v2659_v31 = vshll.u32 %v2658_v61, 16  ;;  %v4178_v3 = vcombine.low %v2808_v57, %v2812_v63  ;;  %v2816_v50 = vld [vmem:[#allocation16 + $0x180] sm:$0xff] }
0x109b   : > { %2640 = vmin.xlane.f32.xlu0 %v2639_v59  ;;  %v2644_v43 = vshll.u32 %v2643_v40, 16  ;;  %v2820_v15 = vld [vmem:[#allocation16 + $0x1a0] sm:$0xff] }
0x109c   : > { %v4187_v59 = vcombine.high %v2816_v50, %v2820_v15  ;;  %v2840_v61 = vld [vmem:[#allocation16 + $0x240] sm:$0xff] }
0x109d   : > { %v2844_v40 = vld [vmem:[#allocation16 + $0x260] sm:$0xff] }
0x10db   : > { %v2568_v35 = vpop.f32.mrb[48].mxu1 }
0x10dc   : > { %v2575_v36 = vadd.f32 %v2568_v35, %v5749_v9  ;;  %v4535_v51 = vpop.f32.mrb[49].mxu1  ;;  %v4186_v35 = vcombine.low %v2816_v50, %v2820_v15 }
0x10dd   : > { %v2571_v2 = vpop.f32.mrb[50].mxu1  ;;  %v2828_v51 = vld [vmem:[#allocation16 + $0x1e0] sm:$0xff] }
0x10de   : > { %v2576_v14 = vadd.f32 %v2571_v2, %v5751_v11  ;;  %v4536_v37 = vpop.f32.mrb[51].mxu1  ;;  %v2577_v0 = vmax.f32 %v2575_v36, 0.0  ;;  %v2824_v36 = vld [vmem:[#allocation16 + $0x1c0] sm:$0xff] }
0x10df   : > { %v4195_v2 = vcombine.high %v2824_v36, %v2828_v51  ;;  %v2832_v37 = vld [vmem:[#allocation16 + $0x200] sm:$0xff] }
0x10e0   : > { %v2578_v38 = vmax.f32 %v2576_v14, 0.0  ;;  %v4194_v14 = vcombine.low %v2824_v36, %v2828_v51  ;;  %v2789_v36 = vld [vmem:[#allocation16 + $0xa8] sm:$0xff] }
0x10e1   : > { %v2793_v51 = vld [vmem:[#allocation16 + $0xc8] sm:$0xff] }
0x10e2   : > { %v2579_v39 = vpack.c.bf16 %v2578_v38, %v2577_v0  ;;  %v2836_v0 = vld [vmem:[#allocation16 + $0x220] sm:$0xff] }
0x10e3   : > { %v4203_v38 = vcombine.high %v2832_v37, %v2836_v0 }
0x10e4   : > { %2613 = vmatmul.mubr.bf16.vlgmr.msra.gmra.mrb[52].mxu1 %v2579_v39  ;;  %v4202_v39 = vcombine.low %v2832_v37, %v2836_v0  ;;  %v2801_v37 = vld [vmem:[#allocation16 + $0x108] sm:$0xff] }
0x10e5   : > { %v2805_v0 = vld [vmem:[#allocation16 + $0x128] sm:$0xff] }
0x1127   : > { %v2656_v27 = vpop.xlane.xlu1 %2655 }
0x1128   : > { %v2657_v49 = vcvt.f32.s32 %v2656_v27  ;;  %v2641_v62 = vpop.xlane.xlu0 %2640  ;;  %v4211_v27 = vcombine.high %v2840_v61, %v2844_v40 }
0x1129   : > { %v2642_v44 = vcvt.f32.s32 %v2641_v62  ;;  %v2852_v62 = vld [vmem:[#allocation16 + $0x2a0] sm:$0xff] }
0x112a   : > { %v2660_v46 = vadd.s32 %v2659_v31, %v2657_v49  ;;  %v4210_v31 = vcombine.low %v2840_v61, %v2844_v40  ;;  %v2848_v49 = vld [vmem:[#allocation16 + $0x280] sm:$0xff]  ;;  %v2809_v61 = vld [vmem:[#allocation16 + $0x148] sm:$0xff] }
0x112b   : > { %v2645_v45 = vadd.s32 %v2644_v43, %v2642_v44  ;;  %v4219_v43 = vcombine.high %v2848_v49, %v2852_v62  ;;  %v4218_v44 = vcombine.low %v2848_v49, %v2852_v62  ;;  %v2813_v40 = vld [vmem:[#allocation16 + $0x168] sm:$0xff] }
0x112c   : > { %vm2662_vm7 = vcmp.eq.s32.totalorder %v5876_v41, %v2660_v46  ;;  %v2796_v41 = vld [vmem:[#allocation16 + $0xe0] sm:$0xff]  ;;  %v2825_v62 = vld [vmem:[#allocation16 + $0x1c8] sm:$0xff] }
0x112d   : > { %v2664_v5 = vsel %vm2662_vm7, 1.0, %v5099_v42  ;;  %vm2661_vm8 = vcmp.eq.s32.totalorder %v5884_v32, %v2645_v45  ;;  %v2856_v46 = vld [vmem:[#allocation16 + $0x2c0] sm:$0xff] }
0x112e   : > { %v2663_v47 = vsel %vm2661_vm8, 1.0, %v5099_v42  ;;  %v2768_v42 = vld [vmem:[#allocation16] sm:$0xff] }
0x112f   : > { %v2665_v6 = vpack.c.bf16 %v2664_v5, %v2663_v47  ;;  %v2860_v45 = vld [vmem:[#allocation16 + $0x2e0] sm:$0xff] }
0x1130   : > { %v4227_v47 = vcombine.high %v2856_v46, %v2860_v45 }
0x1131   : > { %4540 = vmatmul.mubr.msk.bf16.vlgmr.msra.gmra.mrb[40].mxu0 %vm822_vm4, %v2665_v6 }
0x1132   : > { %2716 = vmatpush1.bf16.msra.mxu0 %v5771_v8  ;;  %2747 = vmatprep.mubr.bf16.mxu0 %v5102_v19  ;;  %v2772_v8 = vld [vmem:[#allocation16 + $0x20] sm:$0xff] }
0x1133   : > { %2717 = vmatprep.subr.bf16.mxu0 %v5773_v10  ;;  %v5974_v10 = vld [vmem:[#allocation16 + $0x8] sm:$0xff]  ;;  %v2792_v19 = vld [vmem:[#allocation16 + $0xc0] sm:$0xff] }
0x1134   : > { %v4163_v32 = vcombine.high %v2792_v19, %v2796_v41  ;;  %v4162_v48 = vcombine.low %v2792_v19, %v2796_v41 }
0x1136   : > { %2718 = vmatpush1.bf16.msra.mxu0 %v5778_v20  ;;  %v4138_v20 = vcombine.low %v2768_v42, %v2772_v8 }
0x1137   : > { %2719 = vmatprep.subr.bf16.mxu0 %v5781_v12  ;;  %v4139_v12 = vcombine.high %v2768_v42, %v2772_v8 }
0x1139   : > { %3578 = vmatprep.subr.bf16.mxu1 %v4139_v12  ;;  %v4226_v12 = vcombine.low %v2856_v46, %v2860_v45  ;;  %v2833_v45 = vld [vmem:[#allocation16 + $0x208] sm:$0xff] }
0x113a   : > { %2720 = vmatpush1.bf16.msra.mxu0 %v5784_v13  ;;  %v5976_v13 = vld [vmem:[#allocation16 + $0x28] sm:$0xff]  ;;  %3579 = vmatpush1.bf16.msra.mxu1 %v4138_v20 }
0x113b   : > { %2721 = vmatprep.subr.bf16.mxu0 %v5787_v17  ;;  %v2776_v17 = vld [vmem:[#allocation16 + $0x40] sm:$0xff] }
0x113e   : > { %2722 = vmatpush1.bf16.msra.mxu0 %v5790_v18  ;;  %v2780_v18 = vld [vmem:[#allocation16 + $0x60] sm:$0xff] }
0x113f   : > { %2723 = vmatprep.subr.bf16.mxu0 %v5793_v16  ;;  %v4140_v16 = vcombine.low %v5974_v10, %v5976_v13 }
0x1142   : > { %2724 = vmatpush1.bf16.msra.mxu0 %v5796_v34  ;;  %v4141_v34 = vcombine.high %v5974_v10, %v5976_v13  ;;  %v4172_v10 = vcombine.low %v2801_v37, %v2805_v0  ;;  %v4181_v13 = vcombine.high %v2809_v61, %v2813_v40 }
0x1143   : > { %2725 = vmatprep.subr.bf16.mxu0 %v5799_v21  ;;  %v4147_v21 = vcombine.high %v2776_v17, %v2780_v18 }
0x1145   : > { %3580 = vmatprep.subr.bf16.mxu1 %v4147_v21  ;;  %v2864_v21 = vld [vmem:[#allocation16 + $0x300] sm:$0xff] }
0x1146   : > { %2726 = vmatpush1.bf16.msra.mxu0 %v5802_v22  ;;  %v4146_v22 = vcombine.low %v2776_v17, %v2780_v18 }
0x1147   : > { %2727 = vmatprep.subr.bf16.mxu0 %v5806_v23  ;;  %v2784_v23 = vld [vmem:[#allocation16 + $0x80] sm:$0xff] }
0x1148   : > { %3581 = vmatpush1.bf16.msra.mxu1 %v4146_v22  ;;  %v2868_v22 = vld [vmem:[#allocation16 + $0x320] sm:$0xff] }
0x114a   : > { %2728 = vmatpush1.bf16.msra.mxu0 %v5808_v24  ;;  %v2788_v24 = vld [vmem:[#allocation16 + $0xa0] sm:$0xff] }
0x114b   : > { %2729 = vmatprep.subr.bf16.mxu0 %v5812_v25  ;;  %v4155_v25 = vcombine.high %v2784_v23, %v2788_v24 }
0x114d   : > { %3582 = vmatprep.subr.bf16.mxu1 %v4155_v25  ;;  %v4235_v25 = vcombine.high %v2864_v21, %v2868_v22 }
0x114e   : > { %2730 = vmatpush1.bf16.msra.mxu0 %v5814_v26  ;;  %v4154_v26 = vcombine.low %v2784_v23, %v2788_v24 }
0x114f   : > { %3621 = vmatprep.subr.bf16.mxu0 %v4141_v34 }
0x1150   : > { %3583 = vmatpush1.bf16.msra.mxu1 %v4154_v26 }
0x1151   : > { %3584 = vmatprep.subr.bf16.mxu1 %v4163_v32 }
0x1154   : > { %3585 = vmatpush1.bf16.msra.mxu1 %v4162_v48  ;;  %v4234_v48 = vcombine.low %v2864_v21, %v2868_v22  ;;  %v2857_v22 = vld [vmem:[#allocation16 + $0x2c8] sm:$0xff] }
0x1155   : > { %3586 = vmatprep.subr.bf16.mxu1 %v4171_v54 }
0x1158   : > { %3587 = vmatpush1.bf16.msra.mxu1 %v4170_v56 }
0x1159   : > { %3588 = vmatprep.subr.bf16.mxu1 %v4179_v1  ;;  %v2777_v1 = vld [vmem:[#allocation16 + $0x48] sm:$0xff] }
0x115c   : > { %3589 = vmatpush1.bf16.msra.mxu1 %v4178_v3  ;;  %v2781_v3 = vld [vmem:[#allocation16 + $0x68] sm:$0xff] }
0x115d   : > { %3590 = vmatprep.subr.bf16.mxu1 %v4187_v59 }
0x1160   : > { %3591 = vmatpush1.bf16.msra.mxu1 %v4186_v35  ;;  %v2785_v35 = vld [vmem:[#allocation16 + $0x88] sm:$0xff] }
0x1161   : > { %3592 = vmatprep.subr.bf16.mxu1 %v4195_v2  ;;  %v2797_v2 = vld [vmem:[#allocation16 + $0xe8] sm:$0xff] }
0x1164   : > { %3593 = vmatpush1.bf16.msra.mxu1 %v4194_v14  ;;  %v4165_v14 = vcombine.high %v2793_v51, %v2797_v2 }
0x1165   : > { %3594 = vmatprep.subr.bf16.mxu1 %v4203_v38  ;;  %v4164_v38 = vcombine.low %v2793_v51, %v2797_v2 }
0x1168   : > { %3595 = vmatpush1.bf16.msra.mxu1 %v4202_v39  ;;  %v4173_v39 = vcombine.high %v2801_v37, %v2805_v0  ;;  %v2889_v37 = vld [vmem:[#allocation16 + $0x3c8] sm:$0xff] }
0x1169   : > { %3596 = vmatprep.subr.bf16.mxu1 %v4211_v27  ;;  %v2821_v27 = vld [vmem:[#allocation16 + $0x1a8] sm:$0xff] }
0x116c   : > { %3597 = vmatpush1.bf16.msra.mxu1 %v4210_v31  ;;  %v4180_v31 = vcombine.low %v2809_v61, %v2813_v40 }
0x116d   : > { %3598 = vmatprep.subr.bf16.mxu1 %v4219_v43  ;;  %v2829_v43 = vld [vmem:[#allocation16 + $0x1e8] sm:$0xff] }
0x116e   : > { %v4197_v46 = vcombine.high %v2825_v62, %v2829_v43 }
0x1170   : > { %3599 = vmatpush1.bf16.msra.mxu1 %v4218_v44 }
0x1171   : > { %3600 = vmatprep.subr.bf16.mxu1 %v4227_v47  ;;  %v4196_v47 = vcombine.low %v2825_v62, %v2829_v43 }
0x1174   : > { %3601 = vmatpush1.bf16.msra.mxu1 %v4226_v12 }
0x1175   : > { %3602 = vmatprep.subr.bf16.mxu1 %v4235_v25 }
0x1178   : > { %3603 = vmatpush1.bf16.msra.mxu1 %v4234_v48 }
0x11b7   : > { %v2614_v5 = vpop.f32.mrb[52].mxu1 }
0x11b8   : > { %v2615_v6 = vadd.f32 %v2614_v5, %v5922_v28  ;;  %v2616_v42 = vpop.f32.mrb[53].mxu1  ;;  %v2837_v5 = vld [vmem:[#allocation16 + $0x228] sm:$0xff] }
0x11b9   : > { %v2617_v8 = vadd.f32 %v2616_v42, %v5926_v30  ;;  %v2618_v20 = vpop.f32.mrb[54].mxu1  ;;  %v2841_v42 = vld [vmem:[#allocation16 + $0x248] sm:$0xff] }
0x11ba   : > { %v2623_v17 = vmax.f32 %v2615_v6, 0.0  ;;  %v2619_v18 = vadd.f32 %v2618_v20, %v5922_v28  ;;  %v2620_v34 = vpop.f32.mrb[55].mxu1  ;;  %v4205_v6 = vcombine.high %v2833_v45, %v2837_v5  ;;  %v4204_v20 = vcombine.low %v2833_v45, %v2837_v5 }
0x11bb   : > { %v2624_v23 = vmax.f32 %v2617_v8, 0.0  ;;  %v2621_v24 = vadd.f32 %v2620_v34, %v5926_v30  ;;  %v2845_v8 = vld [vmem:[#allocation16 + $0x268] sm:$0xff] }
0x11bc   : > { %v5987_v26 = vmax.f32 %v5940_v52, %v2623_v17  ;;  %v2625_v19 = vmax.f32 %v2619_v18, 0.0  ;;  %v4213_v12 = vcombine.high %v2841_v42, %v2845_v8  ;;  %v2849_v17 = vld [vmem:[#allocation16 + $0x288] sm:$0xff]  ;;  %v4212_v34 = vcombine.low %v2841_v42, %v2845_v8 }
0x11bd   : > { %v5990_v41 = vmax.f32 %v5943_v55, %v2624_v23  ;;  %v2626_v32 = vmax.f32 %v2621_v24, 0.0  ;;  %v2853_v18 = vld [vmem:[#allocation16 + $0x2a8] sm:$0xff] }
0x11be   : > { %v5993_v53 = vmax.f32 %v5946_v58, %v2625_v19  ;;  %v4149_v58 = vcombine.high %v2777_v1, %v2781_v3  ;;  %v4221_v21 = vcombine.high %v2849_v17, %v2853_v18  ;;  %v2861_v23 = vld [vmem:[#allocation16 + $0x2e8] sm:$0xff]  ;;  %v4220_v24 = vcombine.low %v2849_v17, %v2853_v18 }
0x11bf   : > { %v5996_v60 = vmax.f32 %v5948_v7, %v2626_v32  ;;  %v4148_v7 = vcombine.low %v2777_v1, %v2781_v3  ;;  %v4229_v25 = vcombine.high %v2857_v22, %v2861_v23  ;;  %v2865_v19 = vld [vmem:[#allocation16 + $0x308] sm:$0xff]  ;;  %v4228_v48 = vcombine.low %v2857_v22, %v2861_v23 }
0x11c0   : > { %v2869_v32 = vld [vmem:[#allocation16 + $0x328] sm:$0xff] }
0x11c1   : > { %v2877_v1 = vld [vmem:[#allocation16 + $0x368] sm:$0xff] }
0x1204   : > { %v2703_v54 = vpop.f32.mrb[40].mxu0 }
0x1205   : > { %v2710_v56 = vadd.f32 %v2703_v54, %v5749_v9  ;;  %v4541_v52 = vpop.f32.mrb[41].mxu0  ;;  %v4157_v9 = vcombine.high %v2785_v35, %v2789_v36  ;;  %v4237_v54 = vcombine.high %v2865_v19, %v2869_v32 }
0x1206   : > { %v2706_v57 = vpop.f32.mrb[42].mxu0  ;;  %v2872_v52 = vld [vmem:[#allocation16 + $0x340] sm:$0xff] }
0x1207   : > { %v2711_v63 = vadd.f32 %v2706_v57, %v5751_v11  ;;  %v4542_v55 = vpop.f32.mrb[43].mxu0  ;;  %v2712_v50 = vmax.f32 %v2710_v56, 0.0  ;;  %v4156_v11 = vcombine.low %v2785_v35, %v2789_v36  ;;  %v4236_v56 = vcombine.low %v2865_v19, %v2869_v32  ;;  %v2876_v57 = vld [vmem:[#allocation16 + $0x360] sm:$0xff]  ;;  %v2881_v35 = vld [vmem:[#allocation16 + $0x388] sm:$0xff]  ;;  %v2782_v19 = vld [vmem:[#allocation16 + $0x70] sm:$0xff] }
0x1208   : > { %v4243_v55 = vcombine.high %v2872_v52, %v2876_v57  ;;  %v4242_v3 = vcombine.low %v2872_v52, %v2876_v57  ;;  %v2779_v32 = vld [vmem:[#allocation16 + $0x58] sm:$0xff] }
0x1209   : > { %v2713_v15 = vmax.f32 %v2711_v63, 0.0  ;;  %v2873_v63 = vld [vmem:[#allocation16 + $0x348] sm:$0xff]  ;;  %v2787_v52 = vld [vmem:[#allocation16 + $0x98] sm:$0xff] }
0x120a   : > { %3604 = vmatprep.subr.bf16.mxu1 %v4243_v55  ;;  %v2794_v55 = vld [vmem:[#allocation16 + $0xd0] sm:$0xff] }
0x120b   : > { %v2714_v59 = vpack.c.bf16 %v2713_v15, %v2712_v50  ;;  %v4244_v50 = vcombine.low %v2873_v63, %v2877_v1  ;;  %v4245_v15 = vcombine.high %v2873_v63, %v2877_v1  ;;  %3605 = vmatpush1.bf16.msra.mxu1 %v4242_v3  ;;  %v2798_v1 = vld [vmem:[#allocation16 + $0xf0] sm:$0xff]  ;;  %v2795_v3 = vld [vmem:[#allocation16 + $0xd8] sm:$0xff] }
0x120d   : > { %2748 = vmatmul.mubr.bf16.vlgmr.msra.gmra.mrb[44].mxu0 %v2714_v59  ;;  %v2880_v59 = vld [vmem:[#allocation16 + $0x380] sm:$0xff] }
0x120e   : > { %3622 = vmatpush1.bf16.msra.mxu0 %v4140_v16  ;;  %v2817_v16 = vld [vmem:[#allocation16 + $0x188] sm:$0xff] }
0x120f   : > { %3623 = vmatprep.subr.bf16.mxu0 %v4149_v58  ;;  %v4189_v49 = vcombine.high %v2817_v16, %v2821_v27  ;;  %v4188_v44 = vcombine.low %v2817_v16, %v2821_v27  ;;  %v2884_v58 = vld [vmem:[#allocation16 + $0x3a0] sm:$0xff]  ;;  %v2771_v16 = vld [vmem:[#allocation16 + $0x18] sm:$0xff] }
0x1210   : > { %v4251_v36 = vcombine.high %v2880_v59, %v2884_v58 }
0x1212   : > { %3624 = vmatpush1.bf16.msra.mxu0 %v4148_v7  ;;  %v2885_v7 = vld [vmem:[#allocation16 + $0x3a8] sm:$0xff]  ;;  %3606 = vmatprep.subr.bf16.mxu1 %v4251_v36  ;;  %v2802_v36 = vld [vmem:[#allocation16 + $0x110] sm:$0xff] }
0x1213   : > { %3625 = vmatprep.subr.bf16.mxu0 %v4157_v9  ;;  %v4250_v9 = vcombine.low %v2880_v59, %v2884_v58  ;;  %v4252_v51 = vcombine.low %v2881_v35, %v2885_v7  ;;  %v4253_v2 = vcombine.high %v2881_v35, %v2885_v7  ;;  %v4167_v58 = vcombine.high %v2794_v55, %v2798_v1  ;;  %v2806_v7 = vld [vmem:[#allocation16 + $0x130] sm:$0xff] }
0x1215   : > { %3607 = vmatpush1.bf16.msra.mxu1 %v4250_v9  ;;  %v2803_v9 = vld [vmem:[#allocation16 + $0x118] sm:$0xff] }
0x1216   : > { %3626 = vmatpush1.bf16.msra.mxu0 %v4156_v11  ;;  %v2888_v11 = vld [vmem:[#allocation16 + $0x3c0] sm:$0xff] }
0x1217   : > { %3627 = vmatprep.subr.bf16.mxu0 %v4165_v14  ;;  %v2892_v14 = vld [vmem:[#allocation16 + $0x3e0] sm:$0xff] }
0x1218   : > { %v4259_v0 = vcombine.high %v2888_v11, %v2892_v14 }
0x121a   : > { %3628 = vmatpush1.bf16.msra.mxu0 %v4164_v38  ;;  %v2893_v38 = vld [vmem:[#allocation16 + $0x3e8] sm:$0xff]  ;;  %3608 = vmatprep.subr.bf16.mxu1 %v4259_v0  ;;  %v2810_v0 = vld [vmem:[#allocation16 + $0x150] sm:$0xff] }
0x121b   : > { %3629 = vmatprep.subr.bf16.mxu0 %v4173_v39  ;;  %v4258_v39 = vcombine.low %v2888_v11, %v2892_v14  ;;  %v4260_v61 = vcombine.low %v2889_v37, %v2893_v38  ;;  %v4261_v40 = vcombine.high %v2889_v37, %v2893_v38  ;;  %v4175_v14 = vcombine.high %v2802_v36, %v2806_v7  ;;  %v2814_v38 = vld [vmem:[#allocation16 + $0x170] sm:$0xff] }
0x121d   : > { %3609 = vmatpush1.bf16.msra.mxu1 %v4258_v39  ;;  %v2811_v39 = vld [vmem:[#allocation16 + $0x158] sm:$0xff] }
0x121e   : > { %3630 = vmatpush1.bf16.msra.mxu0 %v4172_v10  ;;  %v2770_v10 = vld [vmem:[#allocation16 + $0x10] sm:$0xff] }
0x121f   : > { %3631 = vmatprep.subr.bf16.mxu0 %v4181_v13  ;;  %v2774_v13 = vld [vmem:[#allocation16 + $0x30] sm:$0xff] }
0x1220   : > { %v4143_v27 = vcombine.high %v2770_v10, %v2774_v13 }
0x1222   : > { %3632 = vmatpush1.bf16.msra.mxu0 %v4180_v31  ;;  %v2775_v31 = vld [vmem:[#allocation16 + $0x38] sm:$0xff]  ;;  %3664 = vmatprep.subr.bf16.mxu1 %v4143_v27  ;;  %v2818_v27 = vld [vmem:[#allocation16 + $0x190] sm:$0xff] }
0x1223   : > { %3633 = vmatprep.subr.bf16.mxu0 %v4189_v49  ;;  %v4142_v49 = vcombine.low %v2770_v10, %v2774_v13  ;;  %v4144_v62 = vcombine.low %v2771_v16, %v2775_v31  ;;  %v4145_v43 = vcombine.high %v2771_v16, %v2775_v31  ;;  %v4183_v13 = vcombine.high %v2810_v0, %v2814_v38  ;;  %v2822_v31 = vld [vmem:[#allocation16 + $0x1b0] sm:$0xff] }
0x1226   : > { %3634 = vmatpush1.bf16.msra.mxu0 %v4188_v44 }
0x1227   : > { %3635 = vmatprep.subr.bf16.mxu0 %v4197_v46 }
0x122a   : > { %3636 = vmatpush1.bf16.msra.mxu0 %v4196_v47 }
0x122b   : > { %3637 = vmatprep.subr.bf16.mxu0 %v4205_v6 }
0x122e   : > { %3638 = vmatpush1.bf16.msra.mxu0 %v4204_v20 }
0x122f   : > { %3639 = vmatprep.subr.bf16.mxu0 %v4213_v12 }
0x1232   : > { %3640 = vmatpush1.bf16.msra.mxu0 %v4212_v34 }
0x1233   : > { %3641 = vmatprep.subr.bf16.mxu0 %v4221_v21 }
0x1236   : > { %3642 = vmatpush1.bf16.msra.mxu0 %v4220_v24  ;;  %v2778_v24 = vld [vmem:[#allocation16 + $0x50] sm:$0xff] }
0x1237   : > { %3643 = vmatprep.subr.bf16.mxu0 %v4229_v25 }
0x123a   : > { %3644 = vmatpush1.bf16.msra.mxu0 %v4228_v48 }
0x123b   : > { %3645 = vmatprep.subr.bf16.mxu0 %v4237_v54  ;;  %v2786_v54 = vld [vmem:[#allocation16 + $0x90] sm:$0xff] }
0x123e   : > { %3646 = vmatpush1.bf16.msra.mxu0 %v4236_v56  ;;  %v2790_v56 = vld [vmem:[#allocation16 + $0xb0] sm:$0xff] }
0x123f   : > { %3647 = vmatprep.subr.bf16.mxu0 %v4245_v15  ;;  %v4159_v57 = vcombine.high %v2786_v54, %v2790_v56  ;;  %v4158_v15 = vcombine.low %v2786_v54, %v2790_v56  ;;  %v2843_v54 = vld [vmem:[#allocation16 + $0x258] sm:$0xff] }
0x1242   : > { %3648 = vmatpush1.bf16.msra.mxu0 %v4244_v50  ;;  %v2799_v50 = vld [vmem:[#allocation16 + $0xf8] sm:$0xff] }
0x1243   : > { %3649 = vmatprep.subr.bf16.mxu0 %v4253_v2  ;;  %v4169_v35 = vcombine.high %v2795_v3, %v2799_v50  ;;  %v4166_v2 = vcombine.low %v2794_v55, %v2798_v1  ;;  %v4168_v11 = vcombine.low %v2795_v3, %v2799_v50 }
0x1246   : > { %3650 = vmatpush1.bf16.msra.mxu0 %v4252_v51  ;;  %v2807_v51 = vld [vmem:[#allocation16 + $0x138] sm:$0xff] }
0x1247   : > { %3651 = vmatprep.subr.bf16.mxu0 %v4261_v40  ;;  %v4177_v37 = vcombine.high %v2803_v9, %v2807_v51  ;;  %v4174_v40 = vcombine.low %v2802_v36, %v2806_v7  ;;  %v4176_v10 = vcombine.low %v2803_v9, %v2807_v51 }
0x124a   : > { %3652 = vmatpush1.bf16.msra.mxu0 %v4260_v61  ;;  %v2815_v61 = vld [vmem:[#allocation16 + $0x178] sm:$0xff] }
0x124b   : > { %3707 = vmatprep.subr.bf16.mxu0 %v4145_v43  ;;  %v4185_v16 = vcombine.high %v2811_v39, %v2815_v61  ;;  %v4182_v43 = vcombine.low %v2810_v0, %v2814_v38 }
0x12e0   : > { %v2749_v44 = vpop.f32.mrb[44].mxu0 }
0x12e1   : > { %v2750_v46 = vadd.f32 %v2749_v44, %v5922_v28  ;;  %v2751_v45 = vpop.f32.mrb[45].mxu0  ;;  %v4184_v44 = vcombine.low %v2811_v39, %v2815_v61 }
0x12e2   : > { %v2752_v5 = vadd.f32 %v2751_v45, %v5926_v30  ;;  %v2753_v47 = vpop.f32.mrb[46].mxu0 }
0x12e3   : > { %v2758_v6 = vmax.f32 %v2750_v46, 0.0  ;;  %v2754_v42 = vadd.f32 %v2753_v47, %v5922_v28  ;;  %v2755_v8 = vpop.f32.mrb[47].mxu0  ;;  %v2783_v28 = vld [vmem:[#allocation16 + $0x78] sm:$0xff]  ;;  %v4191_v46 = vcombine.high %v2818_v27, %v2822_v31  ;;  %v2830_v47 = vld [vmem:[#allocation16 + $0x1f0] sm:$0xff] }
0x12e4   : > { %v2759_v20 = vmax.f32 %v2752_v5, 0.0  ;;  %v2756_v12 = vadd.f32 %v2755_v8, %v5926_v30  ;;  %v4151_v30 = vcombine.high %v2778_v24, %v2782_v19  ;;  %v2826_v5 = vld [vmem:[#allocation16 + $0x1d0] sm:$0xff]  ;;  %v4190_v8 = vcombine.low %v2818_v27, %v2822_v31 }
0x12e5   : > { %v2762_v17 = vmax.f32 %v5987_v26, %v2758_v6  ;;  %v2760_v18 = vmax.f32 %v2754_v42, 0.0  ;;  %v4153_v26 = vcombine.high %v2779_v32, %v2783_v28  ;;  %v2827_v6 = vld [vmem:[#allocation16 + $0x1d8] sm:$0xff] }
0x12e6   : > { %v2763_v34 = vmax.f32 %v5990_v41, %v2759_v20  ;;  %v2761_v21 = vmax.f32 %v2756_v12, 0.0  ;;  %v2791_v41 = vld [vmem:[#allocation16 + $0xb8] sm:$0xff]  ;;  %v4199_v12 = vcombine.high %v2826_v5, %v2830_v47 }
0x12e7   : > { %v2764_v22 = vmax.f32 %v5993_v53, %v2760_v18  ;;  %v4150_v53 = vcombine.low %v2778_v24, %v2782_v19  ;;  %v4161_v63 = vcombine.high %v2787_v52, %v2791_v41  ;;  %v4160_v59 = vcombine.low %v2787_v52, %v2791_v41  ;;  %v2831_v42 = vld [vmem:[#allocation16 + $0x1f8] sm:$0xff]  ;;  %v2834_v18 = vld [vmem:[#allocation16 + $0x210] sm:$0xff] }
0x12e8   : > { %v2765_v23 = vmax.f32 %v5996_v60, %v2761_v21  ;;  %v4152_v60 = vcombine.low %v2779_v32, %v2783_v28  ;;  %v2835_v21 = vld [vmem:[#allocation16 + $0x218] sm:$0xff]  ;;  %v4200_v24 = vcombine.low %v2827_v6, %v2831_v42  ;;  %v2842_v28 = vld [vmem:[#allocation16 + $0x250] sm:$0xff] }
0x12e9   : > { %v6011_v25 = vpack.c.bf16 %v2764_v22, %v2762_v17  ;;  %v4201_v17 = vcombine.high %v2827_v6, %v2831_v42  ;;  %v2839_v22 = vld [vmem:[#allocation16 + $0x238] sm:$0xff] }
0x12ea   : > { %v2767_v48 = vpack.c.bf16 %v2765_v23, %v2763_v34  ;;  %v2838_v34 = vld [vmem:[#allocation16 + $0x230] sm:$0xff]  ;;  %v4198_v23 = vcombine.low %v2826_v5, %v2830_v47  ;;  %v4209_v32 = vcombine.high %v2835_v21, %v2839_v22  ;;  %v4208_v56 = vcombine.low %v2835_v21, %v2839_v22 }
0x12eb   : > { %v4207_v19 = vcombine.high %v2834_v18, %v2838_v34 }
0x12ec   : > { %3610 = vmatprep.mubr.bf16.mxu1 %v2767_v48  ;;  %3653 = vmatprep.mubr.bf16.mxu0 %v2767_v48 }
0x12ed   : > { %3611 = vmatmul.mubr.bf16.vlgmr.msra.gmra.mrb[56].mxu1 %v6011_v25  ;;  %3654 = vmatmul.mubr.bf16.vlgmr.msra.gmra.mrb[48].mxu0 %v6011_v25 }
0x12ee   : > { %3665 = vmatpush1.bf16.msra.mxu1 %v4142_v49  ;;  %3708 = vmatpush1.bf16.msra.mxu0 %v4144_v62  ;;  %v2819_v49 = vld [vmem:[#allocation16 + $0x198] sm:$0xff] }
0x12ef   : > { %3696 = vmatprep.mubr.bf16.mxu1 %v2767_v48  ;;  %3739 = vmatprep.mubr.bf16.mxu0 %v2767_v48  ;;  %v2823_v62 = vld [vmem:[#allocation16 + $0x1b8] sm:$0xff]  ;;  %v2846_v48 = vld [vmem:[#allocation16 + $0x270] sm:$0xff] }
0x12f0   : > { %3666 = vmatprep.subr.bf16.mxu1 %v4151_v30  ;;  %3709 = vmatprep.subr.bf16.mxu0 %v4153_v26  ;;  %v4193_v45 = vcombine.high %v2819_v49, %v2823_v62  ;;  %v4192_v20 = vcombine.low %v2819_v49, %v2823_v62  ;;  %v2847_v30 = vld [vmem:[#allocation16 + $0x278] sm:$0xff]  ;;  %v4206_v26 = vcombine.low %v2834_v18, %v2838_v34 }
0x12f1   : > { %v4215_v52 = vcombine.high %v2842_v28, %v2846_v48  ;;  %v4217_v41 = vcombine.high %v2843_v54, %v2847_v30  ;;  %v4214_v55 = vcombine.low %v2842_v28, %v2846_v48  ;;  %v4216_v1 = vcombine.low %v2843_v54, %v2847_v30 }
0x12f2   : > { %3667 = vmatpush1.bf16.msra.mxu1 %v4150_v53  ;;  %3710 = vmatpush1.bf16.msra.mxu0 %v4152_v60  ;;  %v2850_v53 = vld [vmem:[#allocation16 + $0x290] sm:$0xff]  ;;  %v2912_v28 = vsub.s32 3, %v5913_v33 }
0x12f3   : > { %3668 = vmatprep.subr.bf16.mxu1 %v4159_v57  ;;  %3711 = vmatprep.subr.bf16.mxu0 %v4161_v63  ;;  %v2854_v60 = vld [vmem:[#allocation16 + $0x2b0] sm:$0xff]  ;;  %v2851_v57 = vld [vmem:[#allocation16 + $0x298] sm:$0xff] }
0x12f4   : > { %v2855_v63 = vld [vmem:[#allocation16 + $0x2b8] sm:$0xff]  ;;  %v4223_v3 = vcombine.high %v2850_v53, %v2854_v60  ;;  %v4222_v36 = vcombine.low %v2850_v53, %v2854_v60 }
0x12f5   : > { %v4225_v50 = vcombine.high %v2851_v57, %v2855_v63  ;;  %v4224_v7 = vcombine.low %v2851_v57, %v2855_v63 }
0x12f6   : > { %3669 = vmatpush1.bf16.msra.mxu1 %v4158_v15  ;;  %3712 = vmatpush1.bf16.msra.mxu0 %v4160_v59  ;;  %v2858_v15 = vld [vmem:[#allocation16 + $0x2d0] sm:$0xff] }
0x12f7   : > { %3670 = vmatprep.subr.bf16.mxu1 %v4167_v58  ;;  %3713 = vmatprep.subr.bf16.mxu0 %v4169_v35  ;;  %v2862_v59 = vld [vmem:[#allocation16 + $0x2f0] sm:$0xff]  ;;  %v2859_v58 = vld [vmem:[#allocation16 + $0x2d8] sm:$0xff] }
0x12f8   : > { %v2863_v35 = vld [vmem:[#allocation16 + $0x2f8] sm:$0xff]  ;;  %v4231_v9 = vcombine.high %v2858_v15, %v2862_v59  ;;  %v4230_v0 = vcombine.low %v2858_v15, %v2862_v59 }
0x12f9   : > { %v4233_v51 = vcombine.high %v2859_v58, %v2863_v35  ;;  %v4232_v38 = vcombine.low %v2859_v58, %v2863_v35 }
0x12fa   : > { %3671 = vmatpush1.bf16.msra.mxu1 %v4166_v2  ;;  %3714 = vmatpush1.bf16.msra.mxu0 %v4168_v11  ;;  %v2866_v2 = vld [vmem:[#allocation16 + $0x310] sm:$0xff] }
0x12fb   : > { %3672 = vmatprep.subr.bf16.mxu1 %v4175_v14  ;;  %3715 = vmatprep.subr.bf16.mxu0 %v4177_v37  ;;  %v2870_v11 = vld [vmem:[#allocation16 + $0x330] sm:$0xff]  ;;  %v2867_v14 = vld [vmem:[#allocation16 + $0x318] sm:$0xff] }
0x12fc   : > { %v2871_v37 = vld [vmem:[#allocation16 + $0x338] sm:$0xff]  ;;  %v4239_v39 = vcombine.high %v2866_v2, %v2870_v11  ;;  %v4238_v27 = vcombine.low %v2866_v2, %v2870_v11 }
0x12fd   : > { %v4241_v61 = vcombine.high %v2867_v14, %v2871_v37  ;;  %v4240_v31 = vcombine.low %v2867_v14, %v2871_v37 }
0x12fe   : > { %3673 = vmatpush1.bf16.msra.mxu1 %v4174_v40  ;;  %3716 = vmatpush1.bf16.msra.mxu0 %v4176_v10  ;;  %v2874_v40 = vld [vmem:[#allocation16 + $0x350] sm:$0xff] }
0x12ff   : > { %3674 = vmatprep.subr.bf16.mxu1 %v4183_v13  ;;  %3717 = vmatprep.subr.bf16.mxu0 %v4185_v16  ;;  %v2878_v10 = vld [vmem:[#allocation16 + $0x370] sm:$0xff]  ;;  %v2875_v13 = vld [vmem:[#allocation16 + $0x358] sm:$0xff] }
0x1300   : > { %v2879_v16 = vld [vmem:[#allocation16 + $0x378] sm:$0xff]  ;;  %v4247_v49 = vcombine.high %v2874_v40, %v2878_v10  ;;  %v4246_v5 = vcombine.low %v2874_v40, %v2878_v10 }
0x1301   : > { %v4249_v62 = vcombine.high %v2875_v13, %v2879_v16  ;;  %v4248_v47 = vcombine.low %v2875_v13, %v2879_v16 }
0x1302   : > { %3675 = vmatpush1.bf16.msra.mxu1 %v4182_v43  ;;  %3718 = vmatpush1.bf16.msra.mxu0 %v4184_v44  ;;  %v2882_v43 = vld [vmem:[#allocation16 + $0x390] sm:$0xff] }
0x1303   : > { %3676 = vmatprep.subr.bf16.mxu1 %v4191_v46  ;;  %3719 = vmatprep.subr.bf16.mxu0 %v4193_v45  ;;  %v2886_v44 = vld [vmem:[#allocation16 + $0x3b0] sm:$0xff]  ;;  %v2883_v46 = vld [vmem:[#allocation16 + $0x398] sm:$0xff] }
0x1304   : > { %v2887_v45 = vld [vmem:[#allocation16 + $0x3b8] sm:$0xff]  ;;  %v4255_v6 = vcombine.high %v2882_v43, %v2886_v44  ;;  %v4254_v18 = vcombine.low %v2882_v43, %v2886_v44 }
0x1305   : > { %v4257_v42 = vcombine.high %v2883_v46, %v2887_v45  ;;  %v4256_v34 = vcombine.low %v2883_v46, %v2887_v45 }
0x1306   : > { %3677 = vmatpush1.bf16.msra.mxu1 %v4190_v8  ;;  %3720 = vmatpush1.bf16.msra.mxu0 %v4192_v20  ;;  %v2890_v8 = vld [vmem:[#allocation16 + $0x3d0] sm:$0xff] }
0x1307   : > { %3678 = vmatprep.subr.bf16.mxu1 %v4199_v12  ;;  %3721 = vmatprep.subr.bf16.mxu0 %v4201_v17  ;;  %v2894_v20 = vld [vmem:[#allocation16 + $0x3f0] sm:$0xff]  ;;  %v2891_v12 = vld [vmem:[#allocation16 + $0x3d8] sm:$0xff] }
0x1308   : > { %v2895_v17 = vld [vmem:[#allocation16 + $0x3f8] sm:$0xff]  ;;  %v4263_v21 = vcombine.high %v2890_v8, %v2894_v20 }
0x1309   : > { %v4265_v22 = vcombine.high %v2891_v12, %v2895_v17 }
0x130a   : > { %3679 = vmatpush1.bf16.msra.mxu1 %v4198_v23  ;;  %3722 = vmatpush1.bf16.msra.mxu0 %v4200_v24  ;;  %v4262_v23 = vcombine.low %v2890_v8, %v2894_v20  ;;  %v4264_v24 = vcombine.low %v2891_v12, %v2895_v17 }
0x130b   : > { %3680 = vmatprep.subr.bf16.mxu1 %v4207_v19  ;;  %3723 = vmatprep.subr.bf16.mxu0 %v4209_v32  ;;  %v2908_v19 = vsub.s32 2, %v5913_v33  ;;  %v6021_v32 = vld [vmem:[%s6119_s14] sm:$0xff] }
0x130c   : > { %v2901_v48 = vrot.slane %v6021_v32, %v2218_v4  ;;  %v2905_v30 = vrot.slane %v6021_v32, %v2222_v29 }
0x130d   : > { %v2909_v54 = vrot.slane %v6021_v32, %v2908_v19 }
0x130e   : > { %3681 = vmatpush1.bf16.msra.mxu1 %v4206_v26  ;;  %3724 = vmatpush1.bf16.msra.mxu0 %v4208_v56 }
0x130f   : > { %3682 = vmatprep.subr.bf16.mxu1 %v4215_v52  ;;  %3725 = vmatprep.subr.bf16.mxu0 %v4217_v41 }
0x1312   : > { %3683 = vmatpush1.bf16.msra.mxu1 %v4214_v55  ;;  %3726 = vmatpush1.bf16.msra.mxu0 %v4216_v1 }
0x1313   : > { %3684 = vmatprep.subr.bf16.mxu1 %v4223_v3  ;;  %3727 = vmatprep.subr.bf16.mxu0 %v4225_v50 }
0x1316   : > { %3685 = vmatpush1.bf16.msra.mxu1 %v4222_v36  ;;  %3728 = vmatpush1.bf16.msra.mxu0 %v4224_v7 }
0x1317   : > { %3686 = vmatprep.subr.bf16.mxu1 %v4231_v9  ;;  %3729 = vmatprep.subr.bf16.mxu0 %v4233_v51 }
0x131a   : > { %3687 = vmatpush1.bf16.msra.mxu1 %v4230_v0  ;;  %3730 = vmatpush1.bf16.msra.mxu0 %v4232_v38 }
0x131b   : > { %3688 = vmatprep.subr.bf16.mxu1 %v4239_v39  ;;  %3731 = vmatprep.subr.bf16.mxu0 %v4241_v61 }
0x131e   : > { %3689 = vmatpush1.bf16.msra.mxu1 %v4238_v27  ;;  %3732 = vmatpush1.bf16.msra.mxu0 %v4240_v31  ;;  %v5103_v31 = vmov 1966171168  }
0x131f   : > { %3690 = vmatprep.subr.bf16.mxu1 %v4247_v49  ;;  %3733 = vmatprep.subr.bf16.mxu0 %v4249_v62  ;;  %v3835_v49 = vunpack.c.l.s4 %v5103_v31 }
0x1322   : > { %3691 = vmatpush1.bf16.msra.mxu1 %v4246_v5  ;;  %3734 = vmatpush1.bf16.msra.mxu0 %v4248_v47 }
0x1323   : > { %3692 = vmatprep.subr.bf16.mxu1 %v4255_v6  ;;  %3735 = vmatprep.subr.bf16.mxu0 %v4257_v42  ;;  %v3836_v42 = vunpack.c.0.s8 %v3835_v49 }
0x1326   : > { %3693 = vmatpush1.bf16.msra.mxu1 %v4254_v18  ;;  %3736 = vmatpush1.bf16.msra.mxu0 %v4256_v34 }
0x1327   : > { %3694 = vmatprep.subr.bf16.mxu1 %v4263_v21  ;;  %3737 = vmatprep.subr.bf16.mxu0 %v4265_v22 }
0x132a   : > { %3695 = vmatpush1.bf16.msra.mxu1 %v4262_v23  ;;  %3738 = vmatpush1.bf16.msra.mxu0 %v4264_v24  ;;  %v6033_v23 = vsub.s32 %v3836_v42, %v5913_v33 }
0x132d   : > { %3697 = vmatmul.mubr.bf16.vlgmr.msra.gmra.mrb[60].mxu1 %v6011_v25  ;;  %3740 = vmatmul.mubr.bf16.vlgmr.msra.gmra.mrb[52].mxu0 %v6011_v25  ;;  %v2913_v25 = vrot.slane %v6021_v32, %v2912_v28 }
0x13c0   : > { %v3612_v26 = vpop.f32.mrb[56].mxu1  ;;  %v3655_v56 = vpop.f32.mrb[48].mxu0 }
0x13c1   : > { %v3613_v52 = vadd.f32 %v3612_v26, %v2901_v48  ;;  %v3656_v41 = vadd.f32 %v3655_v56, %v2909_v54  ;;  %v3614_v53 = vpop.f32.mrb[57].mxu1  ;;  %v3657_v60 = vpop.f32.mrb[49].mxu0  ;;  %v2924_v26 = vsub.s32 6, %v5913_v33  ;;  %v2920_v56 = vsub.s32 5, %v5913_v33 }
0x13c2   : > { %v3615_v57 = vadd.f32 %v3614_v53, %v2905_v30  ;;  %v3658_v63 = vadd.f32 %v3657_v60, %v2913_v25  ;;  %v3616_v55 = vpop.f32.mrb[58].mxu1  ;;  %v3659_v1 = vpop.f32.mrb[50].mxu0 }
0x13c3   : > { %v3617_v3 = vadd.f32 %v3616_v55, %v2901_v48  ;;  %v3660_v4 = vadd.f32 %v3659_v1, %v2909_v54  ;;  %v3618_v50 = vpop.f32.mrb[59].mxu1  ;;  %v3661_v15 = vpop.f32.mrb[51].mxu0  ;;  %v3750_v35 = vmax.f32 %v3613_v52, 0.0  ;;  %v3752_v29 = vmax.f32 %v3656_v41, 0.0 }
0x13c4   : > { %v3619_v59 = vadd.f32 %v3618_v50, %v2905_v30  ;;  %v3662_v58 = vadd.f32 %v3661_v15, %v2913_v25  ;;  %v3751_v9 = vmax.f32 %v3615_v57, 0.0  ;;  %v3753_v51 = vmax.f32 %v3658_v63, 0.0 }
0x13c5   : > { %v3758_v36 = vmax.f32 %v3617_v3, 0.0  ;;  %v3760_v7 = vmax.f32 %v3660_v4, 0.0  ;;  %v2916_v25 = vsub.s32 4, %v5913_v33  ;;  %v2928_v52 = vsub.s32 7, %v5913_v33 }
0x13c6   : > { %v3759_v2 = vmax.f32 %v3619_v59, 0.0  ;;  %v3761_v11 = vmax.f32 %v3662_v58, 0.0  ;;  %v2925_v53 = vrot.slane %v6021_v32, %v2924_v26  ;;  %v2921_v60 = vrot.slane %v6021_v32, %v2920_v56 }
0x13c7   : > { %v3766_v14 = vmax.f32 %v3750_v35, %v3758_v36  ;;  %v3780_v37 = vmax.f32 %v3752_v29, %v3760_v7  ;;  %v2917_v41 = vrot.slane %v6021_v32, %v2916_v25  ;;  %v2929_v57 = vrot.slane %v6021_v32, %v2928_v52 }
0x13c8   : > { %v3773_v0 = vmax.f32 %v3751_v9, %v3759_v2  ;;  %v3787_v38 = vmax.f32 %v3753_v51, %v3761_v11 }
0x13c9   : > { %v3767_v39 = vrot.slane %v3766_v14, 4  ;;  %v3781_v61 = vrot.slane %v3780_v37, 4 }
0x13ca   : > { %v3774_v40 = vrot.slane %v3773_v0, 4  ;;  %v3788_v10 = vrot.slane %v3787_v38, 4 }
0x13cb   : > { %v3768_v13 = vmax.f32 %v3766_v14, %v3767_v39  ;;  %v3782_v16 = vmax.f32 %v3780_v37, %v3781_v61 }
0x13cc   : > { %v3775_v27 = vmax.f32 %v3773_v0, %v3774_v40  ;;  %v3789_v62 = vmax.f32 %v3787_v38, %v3788_v10 }
0x13cd   : > { %v3769_v43 = vrot.slane %v3768_v13, 2  ;;  %v3783_v44 = vrot.slane %v3782_v16, 2 }
0x13ce   : > { %v3776_v46 = vrot.slane %v3775_v27, 2  ;;  %v3790_v45 = vrot.slane %v3789_v62, 2 }
0x13cf   : > { %v3770_v5 = vmax.f32 %v3768_v13, %v3769_v43  ;;  %v3784_v47 = vmax.f32 %v3782_v16, %v3783_v44 }
0x13d0   : > { %v3777_v6 = vmax.f32 %v3775_v27, %v3776_v46  ;;  %v3791_v8 = vmax.f32 %v3789_v62, %v3790_v45 }
0x13d1   : > { %v3771_v20 = vrot.slane %v3770_v5, 1  ;;  %v3785_v12 = vrot.slane %v3784_v47, 1 }
0x13d2   : > { %v3778_v17 = vrot.slane %v3777_v6, 1  ;;  %v3792_v18 = vrot.slane %v3791_v8, 1 }
0x13d3   : > { %v3772_v34 = vmax.f32 %v3770_v5, %v3771_v20  ;;  %v3786_v21 = vmax.f32 %v3784_v47, %v3785_v12 }
0x13d4   : > { %v3779_v22 = vmax.f32 %v3777_v6, %v3778_v17  ;;  %v3793_v24 = vmax.f32 %v3791_v8, %v3792_v18 }
0x13d6   : > { %v3830_v19 = vcombine.low %v3772_v34, %v3779_v22  ;;  %v3831_v28 = vcombine.low %v3786_v21, %v3793_v24 }
0x13d8   : > { %v6036_v48 = vrot.slane %v3830_v19, %v6033_v23  ;;  %v6039_v54 = vrot.slane %v3831_v28, %v6033_v23 }
0x13da   : > { %v3862_v30 = vcombine.low %v6036_v48, %v6039_v54 }
0x1400   : > { %v3698_v63 = vpop.f32.mrb[60].mxu1  ;;  %v3741_v55 = vpop.f32.mrb[52].mxu0 }
0x1401   : > { %v3699_v1 = vadd.f32 %v3698_v63, %v2917_v41  ;;  %v3742_v3 = vadd.f32 %v3741_v55, %v2925_v53  ;;  %v3700_v4 = vpop.f32.mrb[61].mxu1  ;;  %v3743_v50 = vpop.f32.mrb[53].mxu0 }
0x1402   : > { %v3701_v15 = vadd.f32 %v3700_v4, %v2921_v60  ;;  %v3744_v59 = vadd.f32 %v3743_v50, %v2929_v57  ;;  %v3702_v58 = vpop.f32.mrb[62].mxu1  ;;  %v3745_v35 = vpop.f32.mrb[54].mxu0 }
0x1403   : > { %v3703_v29 = vadd.f32 %v3702_v58, %v2917_v41  ;;  %v3746_v33 = vadd.f32 %v3745_v35, %v2925_v53  ;;  %v3704_v36 = vpop.f32.mrb[63].mxu1  ;;  %v3747_v7 = vpop.f32.mrb[55].mxu0  ;;  %v3754_v2 = vmax.f32 %v3699_v1, 0.0  ;;  %v3756_v11 = vmax.f32 %v3742_v3, 0.0 }
0x1404   : > { %v3705_v9 = vadd.f32 %v3704_v36, %v2921_v60  ;;  %v3748_v51 = vadd.f32 %v3747_v7, %v2929_v57  ;;  %v3755_v37 = vmax.f32 %v3701_v15, 0.0  ;;  %v3757_v0 = vmax.f32 %v3744_v59, 0.0 }
0x1405   : > { %v3762_v14 = vmax.f32 %v3703_v29, 0.0  ;;  %v3764_v32 = vmax.f32 %v3746_v33, 0.0  ;;  %v3870_v53 = vrot.slane %v3862_v30, %v6033_v23 }
0x1406   : > { %v3763_v38 = vmax.f32 %v3705_v9, 0.0  ;;  %v3765_v39 = vmax.f32 %v3748_v51, 0.0 }
0x1407   : > { %v3794_v61 = vmax.f32 %v3754_v2, %v3762_v14  ;;  %v3808_v40 = vmax.f32 %v3756_v11, %v3764_v32 }
0x1408   : > { %v3801_v10 = vmax.f32 %v3755_v37, %v3763_v38  ;;  %v3815_v13 = vmax.f32 %v3757_v0, %v3765_v39 }
0x1409   : > { %v3795_v16 = vrot.slane %v3794_v61, 4  ;;  %v3809_v27 = vrot.slane %v3808_v40, 4 }
0x140a   : > { %v3802_v31 = vrot.slane %v3801_v10, 4  ;;  %v3816_v49 = vrot.slane %v3815_v13, 4 }
0x140b   : > { %v3796_v62 = vmax.f32 %v3794_v61, %v3795_v16  ;;  %v3810_v43 = vmax.f32 %v3808_v40, %v3809_v27 }
0x140c   : > { %v3803_v44 = vmax.f32 %v3801_v10, %v3802_v31  ;;  %v3817_v46 = vmax.f32 %v3815_v13, %v3816_v49 }
0x140d   : > { %v3797_v45 = vrot.slane %v3796_v62, 2  ;;  %v3811_v5 = vrot.slane %v3810_v43, 2 }
0x140e   : > { %v3804_v47 = vrot.slane %v3803_v44, 2  ;;  %v3818_v6 = vrot.slane %v3817_v46, 2 }
0x140f   : > { %v3798_v42 = vmax.f32 %v3796_v62, %v3797_v45  ;;  %v3812_v8 = vmax.f32 %v3810_v43, %v3811_v5 }
0x1410   : > { %v3805_v20 = vmax.f32 %v3803_v44, %v3804_v47  ;;  %v3819_v12 = vmax.f32 %v3817_v46, %v3818_v6 }
0x1411   : > { %v3799_v17 = vrot.slane %v3798_v42, 1  ;;  %v3813_v18 = vrot.slane %v3812_v8, 1 }
0x1412   : > { %v3806_v34 = vrot.slane %v3805_v20, 1  ;;  %v3820_v21 = vrot.slane %v3819_v12, 1 }
0x1413   : > { %v3800_v22 = vmax.f32 %v3798_v42, %v3799_v17  ;;  %v3814_v24 = vmax.f32 %v3812_v8, %v3813_v18 }
0x1414   : > { %v3807_v19 = vmax.f32 %v3805_v20, %v3806_v34  ;;  %v3821_v28 = vmax.f32 %v3819_v12, %v3820_v21 }
0x1416   : > { %v3832_v25 = vcombine.low %v3800_v22, %v3807_v19  ;;  %v3833_v26 = vcombine.low %v3814_v24, %v3821_v28 }
0x1418   : > { %v3854_v56 = vrot.slane %v3832_v25, %v6033_v23  ;;  %v3861_v52 = vrot.slane %v3833_v26, %v6033_v23 }
0x141a   : > { %v3863_v41 = vcombine.low %v3854_v56, %v3861_v52 }
0x141c   : > { %v3877_v60 = vrot.slane %v3863_v41, %v6033_v23 }
0x141e   : > { %v3878_v57 = vcombine.low %v3870_v53, %v3877_v60 }
0x1420   : > { %3880 = vst [vmem:[%s608_s29] sm:$0xff] %v3878_v57 }
0x1421   : > { %5012 = shalt.err (!%p5009_p9)
}
0x1422   : > { %s5013_s25 = scalar_lea.hbm %s6063_s4, 128  ;;  %s5017_s19 = scalar_lea.hbm %s6169_s23, 256 }
0x1423   : > { %p5014_p12 = scmp.ne.s32.totalorder %s6063_s4, %s5013_s25  ;;  %p5018_p3 = scmp.lt.u32.totalorder %s6063_s4, %s6169_s23 }
0x1424   : > { %p5019_p4 = scmp.lt.u32.totalorder %s5017_s19, %s5013_s25  ;;  %p5021_p8 = scmp.lt.u32.totalorder %s5013_s25, %s6063_s4 }
0x1425   : > { %p5015_p10 = pnand %p5014_p12, %p6170_p11 }
0x1426   : > { %p5020_p7 = por %p5019_p4, %p5018_p3 }
0x1427   : > { %p5016_p2 = pneg %p5015_p10 }
0x1428   : > { %p5022_p13 = por %p5021_p8, %p5020_p7 }
0x142a   : > { %p5023_p1 = pnand %p5022_p13, %p5016_p2 }
0x142c   : > { %5026 = shalt.err (!%p5023_p1)
}
0x142d   : > { %4603 = dma.vmem_to_hbm [thread:$0]  (%p6170_p11), %s6065_s28, 128, %s6063_s4, %s3882_s22  }
0x142e PF: > { %s6171_s29 = sld [smem:[#allocation27_spill]]  ;;  %s6172_s30 = sld [smem:[#allocation24_spill]] }
0x142f   : > { %s6173_s26 = sld [smem:[#allocation31_spill]] }
0x1434   : > { %p4655_p0 = scmp.ge.s32.totalorder %s6171_s29, 2  ;;  %s3908_s21 = sand.u32 1, %s6172_s30  }
0x1435   : > { %p6174_p6 = scmp.ne.s32.totalorder %s6173_s26, 0  ;;  %s3909_s16 = scalar_lea.sflag [#allocation4], %s3908_s21 }
0x1437   : > { %p4634_p5 = pnand %p4655_p0, %p6174_p6 }
0x1439   : > { %5064 = dma.done.wait (!%p4634_p5), %s3909_s16, 128  }
0x143a   : > { %5066 = vsyncadd (!%p4634_p5), %s3909_s16, 4294967168  ;;  %s6175_s21 = sld [smem:[#allocation28_spill]]  ;;  %s6176_s18 = sld [smem:[#allocation25_spill]] }
0x143b   : > { %s6177_s19 = sld [smem:[#allocation26_spill]]  ;;  %s6178_s20 = sld [smem:[#allocation29_spill]] }
0x1440   : > { %p30_p9 = scmp.ge.s32.totalorder %s6175_s21, 4  }
0x1442   :  { %32 = sbr.rel (!%p30_p9) target bundleno = 12 (0xc), region = 152 }
0x1449   :  { %3914 = vsyncpa [#allocation3], 1 }
0x144a   :  { %3916 = vsyncpa [#allocation3 + $0x1], 1 }
0x144b   :  { %3917 = vsyncpa [#allocation6], 1 }
0x144c   :  { %3918 = vsyncpa [#allocation9], 1 }
0x144d   :  { %3919 = vsyncpa [#allocation12], 1 }
0x144e   :  { %3920 = vsyncpa [#allocation15], 1 }
0x144f   :  { %3921 = vsyncpa [#allocation4], 1 }
0x1450   :  { %3923 = vsyncpa [#allocation4 + $0x1], 1 }

</bundles_post_ra>
